<compile_context>
chip_gen: v7x
topology: tpu7x:2x2x1
jax: 0.10.0
libtpu: 0.0.40
codegen_flags: <defaults>
</compile_context>

<pallas_src>
import jax
import jax.numpy as jnp
from jax import lax
from jax.experimental import pallas as pl
from jax.experimental.pallas import tpu as pltpu


# ---------------------------------------------------------------------------
# Pallas kernel: fused 2x bilinear upsample -> 3x3 conv -> BN -> PReLU
# One grid step = (batch element n, tile of TR output rows).
# ---------------------------------------------------------------------------
def _psp_upsample_kernel(x_ref, w_ref, shift_ref, alpha_ref, out_ref):
    H = x_ref.shape[1] - 2            # input height (x_ref is edge-padded by 1)
    W = x_ref.shape[2] - 2            # input width
    Cin_p = x_ref.shape[3]            # lane-padded input channels
    TR = out_ref.shape[1]             # output rows per tile (even)
    Cout_p = out_ref.shape[3] // 2    # lane dim packs (column parity, Cout_p)
    H2 = 2 * H
    HR = TR // 2 + 2                  # input rows needed (1-row halo each side)

    r = pl.program_id(1)
    y0 = r * TR                                   # first output row of this tile
    i0 = pl.multiple_of(r * (TR // 2), TR // 2)   # first padded-input row needed

    # Input rows i0 .. i0+HR-1 of the edge-padded image
    # (= original rows r*TR/2 - 1 .. r*TR/2 + TR/2, edge replication == clamp).
    xe = x_ref[0, pl.ds(i0, HR), :, :]            # (HR, W+2, Cin_p) f32

    # --- 2x bilinear upsample along H (align_corners=False).  Interleave is on
    #     the outer (row) dim only -> pure index reshuffle, no sublane relayout.
    #     Rows u = y0-1 .. y0+TR (includes the conv halo rows).
    ra, rb = xe[:HR - 1], xe[1:]
    up = jnp.stack([0.75 * ra + 0.25 * rb,        # odd rows  u = y0-1, y0+1, ...
                    0.25 * ra + 0.75 * rb],       # even rows u = y0,   y0+2, ...
                   axis=1).reshape(TR + 2, W + 2, Cin_p)

    # Zero the conv's zero-padding rows (u = -1 and u = H2; first/last tile only).
    u_ids = (y0 - 1) + lax.broadcasted_iota(jnp.int32, (TR + 2, 1, 1), 0)
    up = jnp.where((u_ids >= 0) & (u_ids < H2), up, 0.0)

    # --- 2x bilinear upsample along W, kept as two column-parity streams
    #     (no sublane interleave):  co[:, k] = upsampled col v = 2k-1,
    #                               ce[:, k] = upsampled col v = 2k.
    ca, cb = up[:, :W + 1, :], up[:, 1:, :]
    co = 0.75 * ca + 0.25 * cb
    ce = 0.25 * ca + 0.75 * cb
    # Zero the conv's zero-padding columns (v = -1 -> co[:,0]; v = 2W -> ce[:,W]).
    k_ids = lax.broadcasted_iota(jnp.int32, (1, W + 1, 1), 1)
    co = jnp.where(k_ids != 0, co, 0.0).astype(jnp.bfloat16)   # bf16 into the MXU
    ce = jnp.where(k_ids != W, ce, 0.0).astype(jnp.bfloat16)

    # --- 3x3 conv as channel matmuls on the MXU (bf16 in, f32 accumulate).
    #   even output col x=2j   taps cols (2j-1, 2j, 2j+1) = co[j], ce[j], co[j+1]
    #   odd  output col x=2j+1 taps cols (2j, 2j+1, 2j+2) = ce[j], co[j+1], ce[j+1]
    acc_e = jnp.zeros((TR * W, Cout_p), jnp.float32)
    acc_o = jnp.zeros((TR * W, Cout_p), jnp.float32)
    for dy in range(3):
        co0 = co[dy:dy + TR, 0:W, :].reshape(TR * W, Cin_p)
        co1 = co[dy:dy + TR, 1:W + 1, :].reshape(TR * W, Cin_p)
        ce0 = ce[dy:dy + TR, 0:W, :].reshape(TR * W, Cin_p)
        ce1 = ce[dy:dy + TR, 1:W + 1, :].reshape(TR * W, Cin_p)
        w0 = w_ref[3 * dy]
        w1 = w_ref[3 * dy + 1]
        w2 = w_ref[3 * dy + 2]
        acc_e += jnp.dot(co0, w0, preferred_element_type=jnp.float32)
        acc_e += jnp.dot(ce0, w1, preferred_element_type=jnp.float32)
        acc_e += jnp.dot(co1, w2, preferred_element_type=jnp.float32)
        acc_o += jnp.dot(ce0, w0, preferred_element_type=jnp.float32)
        acc_o += jnp.dot(co1, w1, preferred_element_type=jnp.float32)
        acc_o += jnp.dot(ce1, w2, preferred_element_type=jnp.float32)

    # --- BN (scale folded into the weights) + PReLU epilogue, f32.
    shift = shift_ref[...]                         # (1, Cout_p)
    alpha = alpha_ref[...]                         # (1, Cout_p)
    y_e = acc_e + shift
    y_o = acc_o + shift
    out_e = jnp.where(y_e > 0, y_e, alpha * y_e)
    out_o = jnp.where(y_o > 0, y_o, alpha * y_o)
    # Pack (parity, channel) on the lane dim: column x = 2j+p lives at lanes
    # [p*Cout_p : (p+1)*Cout_p] of width index j -> free reshape in the wrapper.
    out = jnp.concatenate([out_e, out_o], axis=-1)          # (TR*W, 2*Cout_p)
    out_ref[...] = out.reshape(1, TR, W, 2 * Cout_p)


def psp_upsample(x, conv_w, conv_b, bn_gamma, bn_beta, bn_mean, bn_var,
                 prelu_a, eps=1e-5, row_tile=None):
    N, Cin, H, W = x.shape
    Cout = conv_w.shape[0]
    H2, W2 = 2 * H, 2 * W

    LANE = 128
    Cin_p = ((Cin + LANE - 1) // LANE) * LANE       # lane-aligned contraction dim
    Cout_p = ((Cout + LANE - 1) // LANE) * LANE     # lane-dense output channels

    # Output-row tile: even, divides 2H, sized so each grid step does a healthy
    # chunk of MXU rows (amortizes the ~0.35us per-step overhead).
    if row_tile is None:
        row_tile = 2
        for t in range(2, H2 + 1, 2):
            if H2 % t == 0 and t * W2 <= 4096:
                row_tile = t
    assert row_tile % 2 == 0 and H2 % row_tile == 0
    TR = row_tile
    R = H2 // TR

    # NCHW -> NHWC, zero-pad channels to the lane width, 1-pixel edge-replicate
    # spatial pad (edge replication == the bilinear upsample's boundary clamp;
    # the conv's zero-padding ring is applied inside the kernel).
    x_nhwc = jnp.transpose(x, (0, 2, 3, 1)).astype(jnp.float32)
    x_nhwc = jnp.pad(x_nhwc, ((0, 0), (0, 0), (0, 0), (0, Cin_p - Cin)))
    x_ext = jnp.pad(x_nhwc, ((0, 0), (1, 1), (1, 1), (0, 0)), mode="edge")

    # Fold BN scale into the conv weights; fold conv bias + BN mean/beta into a
    # single per-channel shift -> kernel epilogue is just add + PReLU.
    scale = (bn_gamma / jnp.sqrt(bn_var + eps)).astype(jnp.float32)
    shift = (bn_beta + scale * (conv_b - bn_mean)).astype(jnp.float32)
    w_mat = jnp.transpose(conv_w.astype(jnp.float32) * scale[:, None, None, None],
                          (2, 3, 1, 0)).reshape(9, Cin, Cout)      # (tap, ci, co)
    w_mat = jnp.pad(w_mat, ((0, 0), (0, Cin_p - Cin), (0, Cout_p - Cout)))
    w_mat = w_mat.astype(jnp.bfloat16)
    shift_p = jnp.pad(shift, (0, Cout_p - Cout)).reshape(1, Cout_p)
    alpha_p = jnp.ones((1, Cout_p), jnp.float32) * jnp.asarray(prelu_a, jnp.float32)

    out_packed = pl.pallas_call(
        _psp_upsample_kernel,
        out_shape=jax.ShapeDtypeStruct((N, H2, W, 2 * Cout_p), jnp.float32),
        grid_spec=pltpu.PrefetchScalarGridSpec(
            num_scalar_prefetch=0,
            grid=(N, R),
            in_specs=[
                # whole (small) padded image per batch element; revisited across
                # the row-tile axis so it is only DMA'd once per n.
                pl.BlockSpec((1, H + 2, W + 2, Cin_p), lambda n, r: (n, 0, 0, 0)),
                pl.BlockSpec((9, Cin_p, Cout_p), lambda n, r: (0, 0, 0)),   # weights
                pl.BlockSpec((1, Cout_p), lambda n, r: (0, 0)),             # BN shift
                pl.BlockSpec((1, Cout_p), lambda n, r: (0, 0)),             # PReLU alpha
            ],
            out_specs=pl.BlockSpec((1, TR, W, 2 * Cout_p),
                                   lambda n, r: (n, r, 0, 0)),
        ),
        compiler_params=pltpu.CompilerParams(
            dimension_semantics=("parallel", "parallel"),
            vmem_limit_bytes=32 * 1024 * 1024,
        ),
    )(x_ext, w_mat, shift_p, alpha_p)

    # (N, H2, W, 2*Cout_p) -> (N, H2, W2, Cout_p): free (contiguous) reshape,
    # because the kernel packed (column parity, channel) on the lane dim.
    out_nhwc = out_packed.reshape(N, H2, W2, Cout_p)[..., :Cout]
    # TODO(synk): return NHWC directly if the consumer accepts it; this single
    # transpose is kept only to honor the PyTorch NCHW contract.
    return jnp.transpose(out_nhwc, (0, 3, 1, 2))


# ---------------------------------------------------------------------------
# Pure-JAX f32 reference (for the self-check only).
# ---------------------------------------------------------------------------
def _upsample2x_bilinear_nchw(x):
    def up_axis(a, axis):
        n = a.shape[axis]
        prev = jnp.concatenate(
            [lax.slice_in_dim(a, 0, 1, axis=axis),
             lax.slice_in_dim(a, 0, n - 1, axis=axis)], axis=axis)
        nxt = jnp.concatenate(
            [lax.slice_in_dim(a, 1, n, axis=axis),
             lax.slice_in_dim(a, n - 1, n, axis=axis)], axis=axis)
        even = 0.25 * prev + 0.75 * a
        odd = 0.75 * a + 0.25 * nxt
        stacked = jnp.stack([even, odd], axis=axis + 1)
        new_shape = list(a.shape)
        new_shape[axis] = 2 * n
        return stacked.reshape(new_shape)

    x = up_axis(x, 2)
    x = up_axis(x, 3)
    return x


if __name__ == "__main__":
    key = jax.random.PRNGKey(0)
    k_x, k_w, k_b, k_g, k_be, k_m, k_v = jax.random.split(key, 7)

    N, Cin, Cout, H, W = 2, 4, 8, 16, 16
    eps = 1e-5

    x = jax.random.normal(k_x, (N, Cin, H, W), dtype=jnp.float32)
    conv_w = 0.1 * jax.random.normal(k_w, (Cout, Cin, 3, 3), dtype=jnp.float32)
    conv_b = 0.1 * jax.random.normal(k_b, (Cout,), dtype=jnp.float32)
    bn_gamma = 1.0 + 0.1 * jax.random.normal(k_g, (Cout,), dtype=jnp.float32)
    bn_beta = 0.1 * jax.random.normal(k_be, (Cout,), dtype=jnp.float32)
    bn_mean = 0.1 * jax.random.normal(k_m, (Cout,), dtype=jnp.float32)
    bn_var = jax.random.uniform(k_v, (Cout,), minval=0.5, maxval=1.5,
                                dtype=jnp.float32)
    prelu_a = jnp.float32(0.25)   # nn.PReLU() default init

    fwd = jax.jit(psp_upsample, static_argnames=("eps", "row_tile"))
    out = fwd(x, conv_w, conv_b, bn_gamma, bn_beta, bn_mean, bn_var, prelu_a,
              eps=eps, row_tile=16)          # row_tile=16 -> 2 row tiles per image
    out = jax.block_until_ready(out)
    assert out.shape == (N, Cout, 2 * H, 2 * W)

    # Reference: f32 upsample + conv + BN + PReLU.
    up = _upsample2x_bilinear_nchw(x)
    ref = lax.conv_general_dilated(
        up, conv_w, window_strides=(1, 1), padding="SAME",
        dimension_numbers=("NCHW", "OIHW", "NCHW")) + conv_b[None, :, None, None]
    ref = (ref - bn_mean[None, :, None, None]) / jnp.sqrt(
        bn_var + eps)[None, :, None, None] * bn_gamma[None, :, None, None] \
        + bn_beta[None, :, None, None]
    ref = jnp.where(ref > 0, ref, prelu_a * ref)

    # bf16 MXU inputs vs. f32 reference -> relaxed (but still tight) tolerance.
    assert float(jnp.max(jnp.abs(out - ref))) < 7.5e-2
    print("KERNEL_OK")
</pallas_src>

<mosaic_0001>
module attributes {stable_mosaic.version = 11 : i64} {
  func.func @_psp_upsample_kernel(%arg0: i32, %arg1: i32, %arg2: memref<1x18x18x128xf32, #tpu.memory_space<vmem>>, %arg3: memref<9x128x128xbf16, #tpu.memory_space<vmem>>, %arg4: memref<1x128xf32, #tpu.memory_space<vmem>>, %arg5: memref<1x128xf32, #tpu.memory_space<vmem>>, %arg6: memref<1x16x16x256xf32, #tpu.memory_space<vmem>>) attributes {dimension_semantics = [#tpu.dimension_semantics<parallel>, #tpu.dimension_semantics<parallel>], iteration_bounds = array<i64: 2, 2>, scalar_prefetch = 0 : i64, scratch_operands = 0 : i64, tpu.core_type = #tpu.core_type<tc>, window_params = [{transform_indices = @transform_0, window_bounds = array<i64: 1, 18, 18, 128>}, {pipeline_mode = #tpu.pipeline_mode<synchronous>, transform_indices = @transform_1, window_bounds = array<i64: 9, 128, 128>}, {pipeline_mode = #tpu.pipeline_mode<synchronous>, transform_indices = @transform_2, window_bounds = array<i64: 1, 128>}, {pipeline_mode = #tpu.pipeline_mode<synchronous>, transform_indices = @transform_3, window_bounds = array<i64: 1, 128>}, {transform_indices = @transform_4, window_bounds = array<i64: 1, 16, 16, 256>}]} {
    %c16_i32 = arith.constant 16 : i32
    %0 = arith.muli %arg1, %c16_i32 : i32
    %c8_i32 = arith.constant 8 : i32
    %1 = arith.muli %arg1, %c8_i32 : i32
    %2 = tpu.assume_multiple %1, 8 : i32
    %c0 = arith.constant 0 : index
    %3 = arith.index_cast %2 : i32 to index
    %c0_0 = arith.constant 0 : index
    %c0_1 = arith.constant 0 : index
    %4 = vector.load %arg2[%c0, %3, %c0_0, %c0_1] : memref<1x18x18x128xf32, #tpu.memory_space<vmem>>, vector<1x10x18x128xf32>
    %5 = vector.shape_cast %4 : vector<1x10x18x128xf32> to vector<10x18x128xf32>
    %6 = vector.extract_strided_slice %5 {offsets = [0, 0, 0], sizes = [9, 18, 128], strides = [1, 1, 1]} : vector<10x18x128xf32> to vector<9x18x128xf32>
    %7 = vector.extract_strided_slice %5 {offsets = [1, 0, 0], sizes = [9, 18, 128], strides = [1, 1, 1]} : vector<10x18x128xf32> to vector<9x18x128xf32>
    %cst = arith.constant 7.500000e-01 : f32
    %8 = vector.broadcast %cst : f32 to vector<9x18x128xf32>
    %9 = arith.mulf %8, %6 : vector<9x18x128xf32>
    %cst_2 = arith.constant 2.500000e-01 : f32
    %10 = vector.broadcast %cst_2 : f32 to vector<9x18x128xf32>
    %11 = arith.mulf %10, %7 : vector<9x18x128xf32>
    %12 = arith.addf %9, %11 : vector<9x18x128xf32>
    %cst_3 = arith.constant 2.500000e-01 : f32
    %13 = vector.broadcast %cst_3 : f32 to vector<9x18x128xf32>
    %14 = arith.mulf %13, %6 : vector<9x18x128xf32>
    %cst_4 = arith.constant 7.500000e-01 : f32
    %15 = vector.broadcast %cst_4 : f32 to vector<9x18x128xf32>
    %16 = arith.mulf %15, %7 : vector<9x18x128xf32>
    %17 = arith.addf %14, %16 : vector<9x18x128xf32>
    %18 = vector.shape_cast %12 : vector<9x18x128xf32> to vector<9x1x18x128xf32>
    %19 = vector.shape_cast %17 : vector<9x18x128xf32> to vector<9x1x18x128xf32>
    %20 = tpu.concatenate %18, %19 in 1 : vector<9x1x18x128xf32>, vector<9x1x18x128xf32> -> vector<9x2x18x128xf32>
    %21 = vector.shape_cast %20 : vector<9x2x18x128xf32> to vector<18x18x128xf32>
    %c1_i32 = arith.constant 1 : i32
    %22 = arith.subi %0, %c1_i32 : i32
    %23 = tpu.iota {dimensions = array<i32: 0>} : vector<18x1x1xi32>
    %24 = vector.broadcast %22 : i32 to vector<18x1x1xi32>
    %25 = arith.addi %24, %23 : vector<18x1x1xi32>
    %c0_i32 = arith.constant 0 : i32
    %26 = vector.broadcast %c0_i32 : i32 to vector<18x1x1xi32>
    %27 = arith.cmpi sge, %25, %26 : vector<18x1x1xi32>
    %c32_i32 = arith.constant 32 : i32
    %28 = vector.broadcast %c32_i32 : i32 to vector<18x1x1xi32>
    %29 = arith.cmpi slt, %25, %28 : vector<18x1x1xi32>
    %30 = arith.andi %27, %29 : vector<18x1x1xi1>
    %cst_5 = arith.constant 0.000000e+00 : f32
    %31 = vector.shape_cast %30 : vector<18x1x1xi1> to vector<18x1x1xi1>
    %32 = vector.broadcast %31 : vector<18x1x1xi1> to vector<18x18x128xi1>
    %33 = vector.broadcast %cst_5 : f32 to vector<18x18x128xf32>
    %34 = arith.select %32, %21, %33 : vector<18x18x128xi1>, vector<18x18x128xf32>
    %35 = vector.extract_strided_slice %34 {offsets = [0, 0, 0], sizes = [18, 17, 128], strides = [1, 1, 1]} : vector<18x18x128xf32> to vector<18x17x128xf32>
    %36 = vector.extract_strided_slice %34 {offsets = [0, 1, 0], sizes = [18, 17, 128], strides = [1, 1, 1]} : vector<18x18x128xf32> to vector<18x17x128xf32>
    %cst_6 = arith.constant 7.500000e-01 : f32
    %37 = vector.broadcast %cst_6 : f32 to vector<18x17x128xf32>
    %38 = arith.mulf %37, %35 : vector<18x17x128xf32>
    %cst_7 = arith.constant 2.500000e-01 : f32
    %39 = vector.broadcast %cst_7 : f32 to vector<18x17x128xf32>
    %40 = arith.mulf %39, %36 : vector<18x17x128xf32>
    %41 = arith.addf %38, %40 : vector<18x17x128xf32>
    %cst_8 = arith.constant 2.500000e-01 : f32
    %42 = vector.broadcast %cst_8 : f32 to vector<18x17x128xf32>
    %43 = arith.mulf %42, %35 : vector<18x17x128xf32>
    %cst_9 = arith.constant 7.500000e-01 : f32
    %44 = vector.broadcast %cst_9 : f32 to vector<18x17x128xf32>
    %45 = arith.mulf %44, %36 : vector<18x17x128xf32>
    %46 = arith.addf %43, %45 : vector<18x17x128xf32>
    %47 = tpu.iota {dimensions = array<i32: 1>} : vector<1x17x1xi32>
    %c0_i32_10 = arith.constant 0 : i32
    %48 = vector.broadcast %c0_i32_10 : i32 to vector<1x17x1xi32>
    %49 = arith.cmpi ne, %47, %48 : vector<1x17x1xi32>
    %cst_11 = arith.constant 0.000000e+00 : f32
    %50 = vector.shape_cast %49 : vector<1x17x1xi1> to vector<1x17x1xi1>
    %51 = vector.broadcast %50 : vector<1x17x1xi1> to vector<18x17x128xi1>
    %52 = vector.broadcast %cst_11 : f32 to vector<18x17x128xf32>
    %53 = arith.select %51, %41, %52 : vector<18x17x128xi1>, vector<18x17x128xf32>
    %54 = arith.truncf %53 : vector<18x17x128xf32> to vector<18x17x128xbf16>
    %c16_i32_12 = arith.constant 16 : i32
    %55 = vector.broadcast %c16_i32_12 : i32 to vector<1x17x1xi32>
    %56 = arith.cmpi ne, %47, %55 : vector<1x17x1xi32>
    %cst_13 = arith.constant 0.000000e+00 : f32
    %57 = vector.shape_cast %56 : vector<1x17x1xi1> to vector<1x17x1xi1>
    %58 = vector.broadcast %57 : vector<1x17x1xi1> to vector<18x17x128xi1>
    %59 = vector.broadcast %cst_13 : f32 to vector<18x17x128xf32>
    %60 = arith.select %58, %46, %59 : vector<18x17x128xi1>, vector<18x17x128xf32>
    %61 = arith.truncf %60 : vector<18x17x128xf32> to vector<18x17x128xbf16>
    %cst_14 = arith.constant 0.000000e+00 : f32
    %62 = vector.broadcast %cst_14 : f32 to vector<256x128xf32>
    %cst_15 = arith.constant 0.000000e+00 : f32
    %63 = vector.broadcast %cst_15 : f32 to vector<256x128xf32>
    %64 = vector.extract_strided_slice %54 {offsets = [0, 0, 0], sizes = [16, 16, 128], strides = [1, 1, 1]} : vector<18x17x128xbf16> to vector<16x16x128xbf16>
    %65 = vector.shape_cast %64 : vector<16x16x128xbf16> to vector<256x128xbf16>
    %66 = vector.extract_strided_slice %54 {offsets = [0, 1, 0], sizes = [16, 16, 128], strides = [1, 1, 1]} : vector<18x17x128xbf16> to vector<16x16x128xbf16>
    %67 = vector.shape_cast %66 : vector<16x16x128xbf16> to vector<256x128xbf16>
    %68 = vector.extract_strided_slice %61 {offsets = [0, 0, 0], sizes = [16, 16, 128], strides = [1, 1, 1]} : vector<18x17x128xbf16> to vector<16x16x128xbf16>
    %69 = vector.shape_cast %68 : vector<16x16x128xbf16> to vector<256x128xbf16>
    %70 = vector.extract_strided_slice %61 {offsets = [0, 1, 0], sizes = [16, 16, 128], strides = [1, 1, 1]} : vector<18x17x128xbf16> to vector<16x16x128xbf16>
    %71 = vector.shape_cast %70 : vector<16x16x128xbf16> to vector<256x128xbf16>
    %c0_16 = arith.constant 0 : index
    %c0_17 = arith.constant 0 : index
    %c0_18 = arith.constant 0 : index
    %72 = vector.load %arg3[%c0_16, %c0_17, %c0_18] : memref<9x128x128xbf16, #tpu.memory_space<vmem>>, vector<1x128x128xbf16>
    %73 = vector.shape_cast %72 : vector<1x128x128xbf16> to vector<128x128xbf16>
    %c1 = arith.constant 1 : index
    %c0_19 = arith.constant 0 : index
    %c0_20 = arith.constant 0 : index
    %74 = vector.load %arg3[%c1, %c0_19, %c0_20] : memref<9x128x128xbf16, #tpu.memory_space<vmem>>, vector<1x128x128xbf16>
    %75 = vector.shape_cast %74 : vector<1x128x128xbf16> to vector<128x128xbf16>
    %c2 = arith.constant 2 : index
    %c0_21 = arith.constant 0 : index
    %c0_22 = arith.constant 0 : index
    %76 = vector.load %arg3[%c2, %c0_21, %c0_22] : memref<9x128x128xbf16, #tpu.memory_space<vmem>>, vector<1x128x128xbf16>
    %77 = vector.shape_cast %76 : vector<1x128x128xbf16> to vector<128x128xbf16>
    %cst_23 = arith.constant dense<0.000000e+00> : vector<256x128xf32>
    %78 = tpu.matmul %65, %73, %cst_23 {dimension_numbers = #tpu.dot_dimension_numbers<[1], [0], [0], [1], [0, 0, 1, 1], [], []>} : vector<256x128xbf16>, vector<128x128xbf16>, vector<256x128xf32> -> vector<256x128xf32>
    %79 = arith.addf %62, %78 : vector<256x128xf32>
    %cst_24 = arith.constant dense<0.000000e+00> : vector<256x128xf32>
    %80 = tpu.matmul %69, %75, %cst_24 {dimension_numbers = #tpu.dot_dimension_numbers<[1], [0], [0], [1], [0, 0, 1, 1], [], []>} : vector<256x128xbf16>, vector<128x128xbf16>, vector<256x128xf32> -> vector<256x128xf32>
    %81 = arith.addf %79, %80 : vector<256x128xf32>
    %cst_25 = arith.constant dense<0.000000e+00> : vector<256x128xf32>
    %82 = tpu.matmul %67, %77, %cst_25 {dimension_numbers = #tpu.dot_dimension_numbers<[1], [0], [0], [1], [0, 0, 1, 1], [], []>} : vector<256x128xbf16>, vector<128x128xbf16>, vector<256x128xf32> -> vector<256x128xf32>
    %83 = arith.addf %81, %82 : vector<256x128xf32>
    %cst_26 = arith.constant dense<0.000000e+00> : vector<256x128xf32>
    %84 = tpu.matmul %69, %73, %cst_26 {dimension_numbers = #tpu.dot_dimension_numbers<[1], [0], [0], [1], [0, 0, 1, 1], [], []>} : vector<256x128xbf16>, vector<128x128xbf16>, vector<256x128xf32> -> vector<256x128xf32>
    %85 = arith.addf %63, %84 : vector<256x128xf32>
    %cst_27 = arith.constant dense<0.000000e+00> : vector<256x128xf32>
    %86 = tpu.matmul %67, %75, %cst_27 {dimension_numbers = #tpu.dot_dimension_numbers<[1], [0], [0], [1], [0, 0, 1, 1], [], []>} : vector<256x128xbf16>, vector<128x128xbf16>, vector<256x128xf32> -> vector<256x128xf32>
    %87 = arith.addf %85, %86 : vector<256x128xf32>
    %cst_28 = arith.constant dense<0.000000e+00> : vector<256x128xf32>
    %88 = tpu.matmul %71, %77, %cst_28 {dimension_numbers = #tpu.dot_dimension_numbers<[1], [0], [0], [1], [0, 0, 1, 1], [], []>} : vector<256x128xbf16>, vector<128x128xbf16>, vector<256x128xf32> -> vector<256x128xf32>
    %89 = arith.addf %87, %88 : vector<256x128xf32>
    %90 = vector.extract_strided_slice %54 {offsets = [1, 0, 0], sizes = [16, 16, 128], strides = [1, 1, 1]} : vector<18x17x128xbf16> to vector<16x16x128xbf16>
    %91 = vector.shape_cast %90 : vector<16x16x128xbf16> to vector<256x128xbf16>
    %92 = vector.extract_strided_slice %54 {offsets = [1, 1, 0], sizes = [16, 16, 128], strides = [1, 1, 1]} : vector<18x17x128xbf16> to vector<16x16x128xbf16>
    %93 = vector.shape_cast %92 : vector<16x16x128xbf16> to vector<256x128xbf16>
    %94 = vector.extract_strided_slice %61 {offsets = [1, 0, 0], sizes = [16, 16, 128], strides = [1, 1, 1]} : vector<18x17x128xbf16> to vector<16x16x128xbf16>
    %95 = vector.shape_cast %94 : vector<16x16x128xbf16> to vector<256x128xbf16>
    %96 = vector.extract_strided_slice %61 {offsets = [1, 1, 0], sizes = [16, 16, 128], strides = [1, 1, 1]} : vector<18x17x128xbf16> to vector<16x16x128xbf16>
    %97 = vector.shape_cast %96 : vector<16x16x128xbf16> to vector<256x128xbf16>
    %c3 = arith.constant 3 : index
    %c0_29 = arith.constant 0 : index
    %c0_30 = arith.constant 0 : index
    %98 = vector.load %arg3[%c3, %c0_29, %c0_30] : memref<9x128x128xbf16, #tpu.memory_space<vmem>>, vector<1x128x128xbf16>
    %99 = vector.shape_cast %98 : vector<1x128x128xbf16> to vector<128x128xbf16>
    %c4 = arith.constant 4 : index
    %c0_31 = arith.constant 0 : index
    %c0_32 = arith.constant 0 : index
    %100 = vector.load %arg3[%c4, %c0_31, %c0_32] : memref<9x128x128xbf16, #tpu.memory_space<vmem>>, vector<1x128x128xbf16>
    %101 = vector.shape_cast %100 : vector<1x128x128xbf16> to vector<128x128xbf16>
    %c5 = arith.constant 5 : index
    %c0_33 = arith.constant 0 : index
    %c0_34 = arith.constant 0 : index
    %102 = vector.load %arg3[%c5, %c0_33, %c0_34] : memref<9x128x128xbf16, #tpu.memory_space<vmem>>, vector<1x128x128xbf16>
    %103 = vector.shape_cast %102 : vector<1x128x128xbf16> to vector<128x128xbf16>
    %cst_35 = arith.constant dense<0.000000e+00> : vector<256x128xf32>
    %104 = tpu.matmul %91, %99, %cst_35 {dimension_numbers = #tpu.dot_dimension_numbers<[1], [0], [0], [1], [0, 0, 1, 1], [], []>} : vector<256x128xbf16>, vector<128x128xbf16>, vector<256x128xf32> -> vector<256x128xf32>
    %105 = arith.addf %83, %104 : vector<256x128xf32>
    %cst_36 = arith.constant dense<0.000000e+00> : vector<256x128xf32>
    %106 = tpu.matmul %95, %101, %cst_36 {dimension_numbers = #tpu.dot_dimension_numbers<[1], [0], [0], [1], [0, 0, 1, 1], [], []>} : vector<256x128xbf16>, vector<128x128xbf16>, vector<256x128xf32> -> vector<256x128xf32>
    %107 = arith.addf %105, %106 : vector<256x128xf32>
    %cst_37 = arith.constant dense<0.000000e+00> : vector<256x128xf32>
    %108 = tpu.matmul %93, %103, %cst_37 {dimension_numbers = #tpu.dot_dimension_numbers<[1], [0], [0], [1], [0, 0, 1, 1], [], []>} : vector<256x128xbf16>, vector<128x128xbf16>, vector<256x128xf32> -> vector<256x128xf32>
    %109 = arith.addf %107, %108 : vector<256x128xf32>
    %cst_38 = arith.constant dense<0.000000e+00> : vector<256x128xf32>
    %110 = tpu.matmul %95, %99, %cst_38 {dimension_numbers = #tpu.dot_dimension_numbers<[1], [0], [0], [1], [0, 0, 1, 1], [], []>} : vector<256x128xbf16>, vector<128x128xbf16>, vector<256x128xf32> -> vector<256x128xf32>
    %111 = arith.addf %89, %110 : vector<256x128xf32>
    %cst_39 = arith.constant dense<0.000000e+00> : vector<256x128xf32>
    %112 = tpu.matmul %93, %101, %cst_39 {dimension_numbers = #tpu.dot_dimension_numbers<[1], [0], [0], [1], [0, 0, 1, 1], [], []>} : vector<256x128xbf16>, vector<128x128xbf16>, vector<256x128xf32> -> vector<256x128xf32>
    %113 = arith.addf %111, %112 : vector<256x128xf32>
    %cst_40 = arith.constant dense<0.000000e+00> : vector<256x128xf32>
    %114 = tpu.matmul %97, %103, %cst_40 {dimension_numbers = #tpu.dot_dimension_numbers<[1], [0], [0], [1], [0, 0, 1, 1], [], []>} : vector<256x128xbf16>, vector<128x128xbf16>, vector<256x128xf32> -> vector<256x128xf32>
    %115 = arith.addf %113, %114 : vector<256x128xf32>
    %116 = vector.extract_strided_slice %54 {offsets = [2, 0, 0], sizes = [16, 16, 128], strides = [1, 1, 1]} : vector<18x17x128xbf16> to vector<16x16x128xbf16>
    %117 = vector.shape_cast %116 : vector<16x16x128xbf16> to vector<256x128xbf16>
    %118 = vector.extract_strided_slice %54 {offsets = [2, 1, 0], sizes = [16, 16, 128], strides = [1, 1, 1]} : vector<18x17x128xbf16> to vector<16x16x128xbf16>
    %119 = vector.shape_cast %118 : vector<16x16x128xbf16> to vector<256x128xbf16>
    %120 = vector.extract_strided_slice %61 {offsets = [2, 0, 0], sizes = [16, 16, 128], strides = [1, 1, 1]} : vector<18x17x128xbf16> to vector<16x16x128xbf16>
    %121 = vector.shape_cast %120 : vector<16x16x128xbf16> to vector<256x128xbf16>
    %122 = vector.extract_strided_slice %61 {offsets = [2, 1, 0], sizes = [16, 16, 128], strides = [1, 1, 1]} : vector<18x17x128xbf16> to vector<16x16x128xbf16>
    %123 = vector.shape_cast %122 : vector<16x16x128xbf16> to vector<256x128xbf16>
    %c6 = arith.constant 6 : index
    %c0_41 = arith.constant 0 : index
    %c0_42 = arith.constant 0 : index
    %124 = vector.load %arg3[%c6, %c0_41, %c0_42] : memref<9x128x128xbf16, #tpu.memory_space<vmem>>, vector<1x128x128xbf16>
    %125 = vector.shape_cast %124 : vector<1x128x128xbf16> to vector<128x128xbf16>
    %c7 = arith.constant 7 : index
    %c0_43 = arith.constant 0 : index
    %c0_44 = arith.constant 0 : index
    %126 = vector.load %arg3[%c7, %c0_43, %c0_44] : memref<9x128x128xbf16, #tpu.memory_space<vmem>>, vector<1x128x128xbf16>
    %127 = vector.shape_cast %126 : vector<1x128x128xbf16> to vector<128x128xbf16>
    %c8 = arith.constant 8 : index
    %c0_45 = arith.constant 0 : index
    %c0_46 = arith.constant 0 : index
    %128 = vector.load %arg3[%c8, %c0_45, %c0_46] : memref<9x128x128xbf16, #tpu.memory_space<vmem>>, vector<1x128x128xbf16>
    %129 = vector.shape_cast %128 : vector<1x128x128xbf16> to vector<128x128xbf16>
    %cst_47 = arith.constant dense<0.000000e+00> : vector<256x128xf32>
    %130 = tpu.matmul %117, %125, %cst_47 {dimension_numbers = #tpu.dot_dimension_numbers<[1], [0], [0], [1], [0, 0, 1, 1], [], []>} : vector<256x128xbf16>, vector<128x128xbf16>, vector<256x128xf32> -> vector<256x128xf32>
    %131 = arith.addf %109, %130 : vector<256x128xf32>
    %cst_48 = arith.constant dense<0.000000e+00> : vector<256x128xf32>
    %132 = tpu.matmul %121, %127, %cst_48 {dimension_numbers = #tpu.dot_dimension_numbers<[1], [0], [0], [1], [0, 0, 1, 1], [], []>} : vector<256x128xbf16>, vector<128x128xbf16>, vector<256x128xf32> -> vector<256x128xf32>
    %133 = arith.addf %131, %132 : vector<256x128xf32>
    %cst_49 = arith.constant dense<0.000000e+00> : vector<256x128xf32>
    %134 = tpu.matmul %119, %129, %cst_49 {dimension_numbers = #tpu.dot_dimension_numbers<[1], [0], [0], [1], [0, 0, 1, 1], [], []>} : vector<256x128xbf16>, vector<128x128xbf16>, vector<256x128xf32> -> vector<256x128xf32>
    %135 = arith.addf %133, %134 : vector<256x128xf32>
    %cst_50 = arith.constant dense<0.000000e+00> : vector<256x128xf32>
    %136 = tpu.matmul %121, %125, %cst_50 {dimension_numbers = #tpu.dot_dimension_numbers<[1], [0], [0], [1], [0, 0, 1, 1], [], []>} : vector<256x128xbf16>, vector<128x128xbf16>, vector<256x128xf32> -> vector<256x128xf32>
    %137 = arith.addf %115, %136 : vector<256x128xf32>
    %cst_51 = arith.constant dense<0.000000e+00> : vector<256x128xf32>
    %138 = tpu.matmul %119, %127, %cst_51 {dimension_numbers = #tpu.dot_dimension_numbers<[1], [0], [0], [1], [0, 0, 1, 1], [], []>} : vector<256x128xbf16>, vector<128x128xbf16>, vector<256x128xf32> -> vector<256x128xf32>
    %139 = arith.addf %137, %138 : vector<256x128xf32>
    %cst_52 = arith.constant dense<0.000000e+00> : vector<256x128xf32>
    %140 = tpu.matmul %123, %129, %cst_52 {dimension_numbers = #tpu.dot_dimension_numbers<[1], [0], [0], [1], [0, 0, 1, 1], [], []>} : vector<256x128xbf16>, vector<128x128xbf16>, vector<256x128xf32> -> vector<256x128xf32>
    %141 = arith.addf %139, %140 : vector<256x128xf32>
    %c0_53 = arith.constant 0 : index
    %c0_54 = arith.constant 0 : index
    %142 = vector.load %arg4[%c0_53, %c0_54] : memref<1x128xf32, #tpu.memory_space<vmem>>, vector<1x128xf32>
    %c0_55 = arith.constant 0 : index
    %c0_56 = arith.constant 0 : index
    %143 = vector.load %arg5[%c0_55, %c0_56] : memref<1x128xf32, #tpu.memory_space<vmem>>, vector<1x128xf32>
    %144 = vector.broadcast %142 : vector<1x128xf32> to vector<256x128xf32>
    %145 = arith.addf %135, %144 : vector<256x128xf32>
    %146 = vector.broadcast %142 : vector<1x128xf32> to vector<256x128xf32>
    %147 = arith.addf %141, %146 : vector<256x128xf32>
    %cst_57 = arith.constant 0.000000e+00 : f32
    %148 = vector.broadcast %cst_57 : f32 to vector<256x128xf32>
    %149 = arith.cmpf ogt, %145, %148 : vector<256x128xf32>
    %150 = vector.broadcast %143 : vector<1x128xf32> to vector<256x128xf32>
    %151 = arith.mulf %150, %145 : vector<256x128xf32>
    %152 = arith.select %149, %145, %151 : vector<256x128xi1>, vector<256x128xf32>
    %cst_58 = arith.constant 0.000000e+00 : f32
    %153 = vector.broadcast %cst_58 : f32 to vector<256x128xf32>
    %154 = arith.cmpf ogt, %147, %153 : vector<256x128xf32>
    %155 = vector.broadcast %143 : vector<1x128xf32> to vector<256x128xf32>
    %156 = arith.mulf %155, %147 : vector<256x128xf32>
    %157 = arith.select %154, %147, %156 : vector<256x128xi1>, vector<256x128xf32>
    %158 = tpu.concatenate %152, %157 in 1 : vector<256x128xf32>, vector<256x128xf32> -> vector<256x256xf32>
    %159 = vector.shape_cast %158 : vector<256x256xf32> to vector<1x16x16x256xf32>
    %c0_59 = arith.constant 0 : index
    %c0_60 = arith.constant 0 : index
    %c0_61 = arith.constant 0 : index
    %c0_62 = arith.constant 0 : index
    %160 = vector.load %arg6[%c0_59, %c0_60, %c0_61, %c0_62] : memref<1x16x16x256xf32, #tpu.memory_space<vmem>>, vector<1x16x16x256xf32>
    tpu.vector_store %arg6[%c0_59, %c0_60, %c0_61, %c0_62], %159 {strides = array<i32>} : memref<1x16x16x256xf32, #tpu.memory_space<vmem>>, vector<1x16x16x256xf32>,
    return
  }
  func.func @transform_0(%arg0: i32, %arg1: i32) -> (i32, i32, i32, i32) {
    %c0_i32 = arith.constant 0 : i32
    %c0_i32_0 = arith.constant 0 : i32
    %c0_i32_1 = arith.constant 0 : i32
    %c0_i32_2 = arith.constant 0 : i32
    return %arg0, %c0_i32, %c0_i32_0, %c0_i32_1 : i32, i32, i32, i32
  }
  func.func @transform_1(%arg0: i32, %arg1: i32) -> (i32, i32, i32) {
    %c0_i32 = arith.constant 0 : i32
    %c0_i32_0 = arith.constant 0 : i32
    %c0_i32_1 = arith.constant 0 : i32
    %c0_i32_2 = arith.constant 0 : i32
    return %c0_i32, %c0_i32_0, %c0_i32_1 : i32, i32, i32
  }
  func.func @transform_2(%arg0: i32, %arg1: i32) -> (i32, i32) {
    %c0_i32 = arith.constant 0 : i32
    %c0_i32_0 = arith.constant 0 : i32
    %c0_i32_1 = arith.constant 0 : i32
    return %c0_i32, %c0_i32_0 : i32, i32
  }
  func.func @transform_3(%arg0: i32, %arg1: i32) -> (i32, i32) {
    %c0_i32 = arith.constant 0 : i32
    %c0_i32_0 = arith.constant 0 : i32
    %c0_i32_1 = arith.constant 0 : i32
    return %c0_i32, %c0_i32_0 : i32, i32
  }
  func.func @transform_4(%arg0: i32, %arg1: i32) -> (i32, i32, i32, i32) {
    %c0_i32 = arith.constant 0 : i32
    %c0_i32_0 = arith.constant 0 : i32
    %c0_i32_1 = arith.constant 0 : i32
    return %arg0, %arg1, %c0_i32, %c0_i32_0 : i32, i32, i32, i32
  }
}

</mosaic_0001>

<bundles_post_ra>
// kernel: mul.11
= control target key start
LH: loop header
LB: loop body
LE: loop exit
PB: predicated region body
PF: predicated region fallthrough
CT: control target
= control target key end

     0   :  { %s20_s0 = inlined_call_operand.<no memory space> [shape: f32[], index: 0, kind: input, shape index: {}]   ;;  %s21_s1 = inlined_call_operand.vmem [shape: f32[1,128], index: 1, kind: output, shape index: {}]  }
   0x1   :  { %v2_v0 = vstv %s20_s0 }
   0x2   :  { %3 = vst [vmem:[%s21_s1] sm:$0x1] %v2_v0 }

// kernel: psp_upsample.1
= control target key start
LH: loop header
LB: loop body
LE: loop exit
PB: predicated region body
PF: predicated region fallthrough
CT: control target
= control target key end

     0   :  { %s8525_s15 = smov 0   ;;  %s8527_s16 = smov 0   ;;  %s10797_s0 = inlined_call_operand.vmem [shape: f32[2,18,18,128], index: 0, kind: input, shape index: {}]   ;;  %s10798_s1 = inlined_call_operand.vmem [shape: bf16[9,128,128], index: 1, kind: input, shape index: {}]   ;;  %s10799_s2 = inlined_call_operand.vmem [shape: f32[1,128], index: 2, kind: input, shape index: {}]   ;;  %s10800_s3 = inlined_call_operand.vmem [shape: f32[1,128], index: 3, kind: input, shape index: {}]   ;;  %s10801_s4 = inlined_call_operand.vmem [shape: f32[2,32,16,256], index: 4, kind: output, shape index: {}]  }
   0x1   :  { %s8529_s17 = smov 0   ;;  %s8531_s18 = smov 0  }
   0x2   :  { %s8533_s19 = smov 0  }
   0x3 LB: > { %s23_s20 = sadd.s32 1, %s8489_s17  ;;  %s26_s21 = sadd.s32 1, %s8493_s18  ;;  %s8497_s19 = sphi %s8533_s19, %s14_s19   ;;  %s8493_s18 = sphi %s8531_s18, %s11296_s18   ;;  %s8489_s17 = sphi %s8529_s17, %s11295_s17   ;;  %s8485_s16 = sphi %s8527_s16, %s11294_s16   ;;  %s8481_s15 = sphi %s8525_s15, %s11293_s15  }
   0x4   : > { %p24_p0 = scmp.ge.s32.totalorder %s23_s20, 2  ;;  %p6179_p1 = scmp.ge.s32.totalorder %s8497_s19, 1 }
   0x5   : > { %p176_p2 = scmp.lt.s32.totalorder %s8497_s19, 5 }
   0x6   : > { %s11298_s20 = smov (%p24_p0, %s23_s20), 0  ;;  %s11300_s21 = smov (!%p24_p0, %s26_s21), %s8493_s18 }
   0x7   : > { %p177_p3 = pnand %p6179_p1, %p176_p2  ;;  %p28_p4 = scmp.ge.s32.totalorder %s11300_s21, 2 }
   0x9   : > { %s11302_s21 = smov (%p28_p4, %s11300_s21), 0  ;;  %180 = sbr.rel (%p177_p3) target bundleno = 948 (0x3b4), region = 36 }
  0x10   : > { %v8387_v0 = vld [vmem:[%s10798_s1 + $0x40] sm:$0xff]   ;;  %p207_p5 = scmp.lt.s32.totalorder %s8485_s16, 1  ;;  %v8388_v1 = vld [vmem:[%s10798_s1 + $0x48] sm:$0xff]   ;;  %s6181_s26 = sshll.u32 %s8481_s15, 4  ;;  %v8389_v2 = vld [vmem:[%s10798_s1 + $0x50] sm:$0xff]   ;;  %v1148_v3 = vlaneseq }
  0x11   : > { %6969 = vmatprep.subr.bf16.mxu0 %v8387_v0  ;;  %7113 = vmatprep.subr.bf16.mxu1 %v8387_v0  ;;  %p215_p6 = scmp.lt.s32.totalorder %s6181_s26, 31  ;;  %v8390_v4 = vld [vmem:[%s10798_s1 + $0x58] sm:$0xff]   ;;  %s6187_s13 = smul.u32 192, %s8481_s15  ;;  %v8391_v5 = vld [vmem:[%s10798_s1 + $0x60] sm:$0xff]   ;;  %v8392_v23 = vld [vmem:[%s10798_s1 + $0x68] sm:$0xff]  }
  0x12   : > { %s11304_s16 = smov (!%p207_p5, %s8485_s16), 1  ;;  %6970 = vmatpush3.bf16.msra.mxu0 %v8387_v0  ;;  %7114 = vmatpush3.bf16.msra.mxu1 %v8387_v0  ;;  %s6188_s14 = sadd.s32 4294967295, %s6181_s26  ;;  %v8583_v7 = vshrl.u32 %v1148_v3, 7  ;;  %v8393_v44 = vld [vmem:[%s10798_s1 + $0x70] sm:$0xff]  }
  0x13   : > { %6971 = vmatprep.subr.bf16.mxu0 %v8388_v1  ;;  %7115 = vmatprep.subr.bf16.mxu1 %v8388_v1  ;;  %s8345_s29 = smul.u32 432, %s11304_s16  ;;  %s6183_s5 = sshll.u32 %s11304_s16, 7  ;;  %v8581_v6 = vstv %s6188_s14 }
  0x14   : > { %s216_s30 = scalar_select %p215_p6, %s6181_s26, 31  ;;  %10983 = vst [vmem:[#allocation2_spill] sm:$0xff] %v8581_v6  ;;  %10984 = vst [vmem:[#allocation3_spill] sm:$0xff] %v8583_v7  ;;  %v8595_v11 = vadd.s32 2, %v8581_v6  ;;  %v8598_v12 = vadd.s32 3, %v8581_v6  ;;  %vm391_vm0 = vcmp.ge.s32.totalorder %v8581_v6, 0 }
  0x15   : > { %s211_s8 = scalar_lea.vmem %s10797_s0, %s8345_s29  ;;  %vm409_vm9 = vcmp.lt.s32.totalorder %v8581_v6, 32 }
  0x16   : > { %6972 = vmatpush3.bf16.msra.mxu0 %v8388_v1  ;;  %7116 = vmatpush3.bf16.msra.mxu1 %v8388_v1  ;;  %s6182_s9 = sshll.u32 %s216_s30, 2  ;;  %s8579_s23 = scalar_lea.vmem %s211_s8, %s6187_s13  ;;  %vm411_vm10 = vcmp.lt.s32.totalorder %v8595_v11, 32  ;;  %vm412_vm11 = vcmp.lt.s32.totalorder %v8598_v12, 32  ;;  %vm427_vm1 = vmand %vm391_vm0, %vm409_vm9  ;;  %vm10999_vm5 = vcmp.ge.s32.totalorder %v8595_v11, 0  ;;  %vm11000_vm8 = vcmp.ge.s32.totalorder %v8598_v12, 0 }
  0x17   : > { %6973 = vmatprep.subr.bf16.mxu0 %v8389_v2  ;;  %7117 = vmatprep.subr.bf16.mxu1 %v8389_v2  ;;  %s8573_s12 = sadd.s32 %s6183_s5, %s6182_s9  ;;  %v8586_v8 = vld [vmem:[%s8579_s23] sm:$0xff]  ;;  %v8589_v9 = vld [vmem:[%s8579_s23 + $0x8] sm:$0xff]  ;;  %v8592_v10 = vld [vmem:[%s8579_s23 + $0x10] sm:$0x3] }
  0x18   : > { %v231_v13 = vld [vmem:[%s8579_s23 + $0x18] sm:$0xff]  ;;  %v232_v14 = vld [vmem:[%s8579_s23 + $0x20] sm:$0xff]  ;;  %v233_v15 = vld [vmem:[%s8579_s23 + $0x28] sm:$0x3]  ;;  %v8604_v16 = vmul.f32 0.75, %v8586_v8  ;;  %v8607_v17 = vmul.f32 0.75, %v8589_v9 }
  0x19   : > { %v234_v18 = vld [vmem:[%s8579_s23 + $0x30] sm:$0xff]  ;;  %v235_v19 = vld [vmem:[%s8579_s23 + $0x38] sm:$0xff]  ;;  %v236_v20 = vld [vmem:[%s8579_s23 + $0x40] sm:$0x3]  ;;  %v8613_v21 = vmul.f32 0.75, %v8592_v10  ;;  %v8615_v22 = vmul.f32 0.75, %v231_v13 }
  0x1a   : > { %6974 = vmatpush3.bf16.msra.mxu0 %v8389_v2  ;;  %7118 = vmatpush3.bf16.msra.mxu1 %v8389_v2  ;;  %v237_v24 = vld [vmem:[%s8579_s23 + $0x48] sm:$0xff]  ;;  %v238_v25 = vld [vmem:[%s8579_s23 + $0x50] sm:$0xff]  ;;  %v239_v26 = vld [vmem:[%s8579_s23 + $0x58] sm:$0x3]  ;;  %v8623_v27 = vmul.f32 0.75, %v232_v14  ;;  %v8625_v28 = vmul.f32 0.75, %v233_v15 }
  0x1b   : > { %6975 = vmatprep.subr.bf16.mxu0 %v8390_v4  ;;  %7119 = vmatprep.subr.bf16.mxu1 %v8390_v4  ;;  %v240_v29 = vld [vmem:[%s8579_s23 + $0x60] sm:$0xff]  ;;  %v241_v30 = vld [vmem:[%s8579_s23 + $0x68] sm:$0xff]  ;;  %v242_v31 = vld [vmem:[%s8579_s23 + $0x70] sm:$0x3]  ;;  %v8630_v32 = vmul.f32 0.75, %v234_v18  ;;  %v8632_v33 = vmul.f32 0.75, %v235_v19 }
  0x1c   : > { %v243_v34 = vld [vmem:[%s8579_s23 + $0x78] sm:$0xff]  ;;  %v244_v35 = vld [vmem:[%s8579_s23 + $0x80] sm:$0xff]  ;;  %v245_v36 = vld [vmem:[%s8579_s23 + $0x88] sm:$0x3]  ;;  %v8637_v37 = vmul.f32 0.75, %v236_v20  ;;  %v8639_v38 = vmul.f32 0.75, %v237_v24 }
  0x1d   : > { %v246_v39 = vld [vmem:[%s8579_s23 + $0x90] sm:$0xff]  ;;  %v247_v40 = vld [vmem:[%s8579_s23 + $0x98] sm:$0xff]  ;;  %v248_v41 = vld [vmem:[%s8579_s23 + $0xa0] sm:$0x3]  ;;  %v8644_v42 = vmul.f32 0.75, %v238_v25  ;;  %v8646_v43 = vmul.f32 0.75, %v239_v26 }
  0x1e   : > { %6976 = vmatpush3.bf16.msra.mxu0 %v8390_v4  ;;  %7120 = vmatpush3.bf16.msra.mxu1 %v8390_v4  ;;  %v8651_v45 = vmul.f32 0.75, %v240_v29  ;;  %v8653_v46 = vmul.f32 0.75, %v241_v30  ;;  %v8655_v47 = vmul.f32 0.75, %v242_v31  ;;  %v8657_v48 = vmul.f32 0.75, %v243_v34  ;;  %vm429_vm6 = vmand %vm10999_vm5, %vm411_vm10  ;;  %s6184_s22 = sshll.u32 %s8573_s12, 3 }
  0x1f   : > { %6977 = vmatprep.subr.bf16.mxu0 %v8391_v5  ;;  %7121 = vmatprep.subr.bf16.mxu1 %v8391_v5  ;;  %v8659_v49 = vmul.f32 0.75, %v244_v35  ;;  %v8661_v50 = vmul.f32 0.75, %v245_v36  ;;  %v8663_v51 = vmul.f32 0.75, %v246_v39  ;;  %v8665_v52 = vmul.f32 0.75, %v247_v40  ;;  %vm430_vm7 = vmand %vm11000_vm8, %vm412_vm11  ;;  %s10578_s25 = scalar_lea.vmem %s10801_s4, %s6184_s22 }
  0x20   : > { %v8667_v53 = vmul.f32 0.75, %v248_v41  ;;  %v285_v54 = vmul.f32 0.25, %v231_v13  ;;  %v286_v55 = vmul.f32 0.25, %v232_v14  ;;  %v287_v56 = vmul.f32 0.25, %v233_v15 }
  0x21   : > { %10985 = vst [vmem:[#allocation4_spill] sm:$0xff] %v8663_v51  ;;  %10986 = vst [vmem:[#allocation5_spill] sm:$0xff] %v8665_v52  ;;  %v288_v57 = vmul.f32 0.25, %v234_v18  ;;  %v289_v58 = vmul.f32 0.25, %v235_v19  ;;  %v290_v59 = vmul.f32 0.25, %v236_v20  ;;  %v291_v60 = vmul.f32 0.25, %v237_v24 }
  0x22   : > { %6978 = vmatpush3.bf16.msra.mxu0 %v8391_v5  ;;  %7122 = vmatpush3.bf16.msra.mxu1 %v8391_v5  ;;  %10987 = vst [vmem:[#allocation6_spill] sm:$0xff] %v8667_v53  ;;  %v292_v61 = vmul.f32 0.25, %v238_v25  ;;  %v293_v62 = vmul.f32 0.25, %v239_v26  ;;  %v294_v63 = vmul.f32 0.25, %v240_v29  ;;  %v295_v0 = vmul.f32 0.25, %v241_v30  ;;  %v8394_v5 = vld [vmem:[%s10798_s1 + $0x78] sm:$0xff]  }
  0x23   : > { %6979 = vmatprep.subr.bf16.mxu0 %v8392_v23  ;;  %7123 = vmatprep.subr.bf16.mxu1 %v8392_v23  ;;  %v296_v1 = vmul.f32 0.25, %v242_v31  ;;  %v297_v2 = vmul.f32 0.25, %v243_v34  ;;  %v298_v3 = vmul.f32 0.25, %v244_v35  ;;  %v299_v4 = vmul.f32 0.25, %v245_v36 }
  0x24   : > { %v8672_v13 = vmul.f32 0.25, %v246_v39  ;;  %v8674_v14 = vmul.f32 0.25, %v247_v40  ;;  %v8676_v15 = vmul.f32 0.25, %v248_v41  ;;  %v8679_v18 = vadd.f32 %v285_v54, %v8604_v16  ;;  %v8728_v40 = vld [vmem:[%s10798_s1] sm:$0xff]  }
  0x25   : > { %v8682_v19 = vadd.f32 %v286_v55, %v8607_v17  ;;  %v8685_v20 = vadd.f32 %v287_v56, %v8613_v21  ;;  %v8691_v24 = vadd.f32 %v289_v58, %v8623_v27  ;;  %v8694_v25 = vadd.f32 %v290_v59, %v8625_v28 }
  0x26   : > { %6980 = vmatpush3.bf16.msra.mxu0 %v8392_v23  ;;  %7124 = vmatpush3.bf16.msra.mxu1 %v8392_v23  ;;  %10988 = vst [vmem:[#allocation7_spill] sm:$0xff] %v8672_v13  ;;  %10989 = vst [vmem:[#allocation8_spill] sm:$0xff] %v8674_v14  ;;  %v8688_v23 = vadd.f32 %v288_v57, %v8615_v22  ;;  %v8697_v26 = vadd.f32 %v291_v60, %v8630_v32  ;;  %v339_v31 = vmul.f32 0.25, %v8586_v8 }
  0x27   : > { %6981 = vmatprep.subr.bf16.mxu0 %v8393_v44  ;;  %7125 = vmatprep.subr.bf16.mxu1 %v8393_v44  ;;  %10990 = vst [vmem:[#allocation9_spill] sm:$0xff] %v8676_v15  ;;  %v8700_v16 = vadd.f32 %v292_v61, %v8632_v33  ;;  %v8703_v17 = vadd.f32 %v293_v62, %v8637_v37  ;;  %v340_v39 = vmul.f32 0.25, %v8589_v9  ;;  %v341_v7 = vmul.f32 0.25, %v8592_v10 }
  0x28   : > { %v8706_v21 = vadd.f32 %v294_v63, %v8639_v38  ;;  %v8709_v29 = vadd.f32 %v295_v0, %v8644_v42  ;;  %v8712_v30 = vadd.f32 %v296_v1, %v8646_v43  ;;  %v8716_v34 = vadd.f32 %v297_v2, %v8651_v45 }
  0x29   : > { %v8719_v35 = vadd.f32 %v298_v3, %v8653_v46  ;;  %v8722_v36 = vadd.f32 %v299_v4, %v8655_v47  ;;  %v8732_v8 = vadd.f32 %v8672_v13, %v8657_v48  ;;  %v8736_v41 = vadd.f32 %v8674_v14, %v8659_v49 }
  0x2a   : > { %6982 = vmatpush3.bf16.msra.mxu0 %v8393_v44  ;;  %7126 = vmatpush3.bf16.msra.mxu1 %v8393_v44  ;;  %v8740_v44 = vadd.f32 %v8676_v15, %v8661_v50  ;;  %v8744_v9 = vadd.f32 %v339_v31, %v8615_v22  ;;  %v349_v13 = vadd.f32 %v286_v55, %v8632_v33  ;;  %v377_v10 = vadd.s32 4, %v8581_v6 }
  0x2b   : > { %6983 = vmatprep.subr.bf16.mxu0 %v8394_v5  ;;  %7127 = vmatprep.subr.bf16.mxu1 %v8394_v5  ;;  %10991 = vst [vmem:[#allocation10_spill] sm:$0xff] %v8719_v35  ;;  %10992 = vst [vmem:[#allocation11_spill] sm:$0xff] %v8722_v36  ;;  %v8747_v36 = vadd.f32 %v340_v39, %v8623_v27  ;;  %v348_v35 = vadd.f32 %v285_v54, %v8630_v32  ;;  %v482_v54 = vsel %vm427_vm1, %v8682_v19, 0.0 }
  0x2c   : > { %10993 = vst [vmem:[#allocation12_spill] sm:$0xff] %v8732_v8  ;;  %10994 = vst [vmem:[#allocation13_spill] sm:$0xff] %v8736_v41  ;;  %v8752_v14 = vadd.f32 %v341_v7, %v8625_v28  ;;  %v350_v15 = vadd.f32 %v287_v56, %v8637_v37  ;;  %v352_v22 = vadd.f32 %v289_v58, %v8644_v42  ;;  %vm413_vm12 = vcmp.lt.s32.totalorder %v377_v10, 32 }
  0x2d   : > { %10995 = vst [vmem:[#allocation14_spill] sm:$0xff] %v8740_v44  ;;  %v351_v44 = vadd.f32 %v288_v57, %v8639_v38  ;;  %v353_v27 = vadd.f32 %v290_v59, %v8646_v43  ;;  %v8760_v31 = vadd.f32 %v291_v60, %v8651_v45  ;;  %v8763_v32 = vadd.f32 %v292_v61, %v8653_v46 }
  0x2e   : > { %6984 = vmatpush3.bf16.msra.mxu0 %v8394_v5  ;;  %7128 = vmatpush3.bf16.msra.mxu1 %v8394_v5  ;;  %v8767_v7 = vadd.f32 %v293_v62, %v8655_v47  ;;  %v8770_v28 = vadd.f32 %v294_v63, %v8657_v48  ;;  %v8773_v33 = vadd.f32 %v295_v0, %v8659_v49  ;;  %v378_v45 = vadd.s32 5, %v8581_v6 }
  0x2f   : > { %7017 = vmatprep.subr.bf16.mxu0 %v8728_v40  ;;  %v8776_v37 = vadd.f32 %v296_v1, %v8661_v50  ;;  %7161 = vmatprep.subr.bf16.mxu1 %v8728_v40  ;;  %v8780_v38 = vadd.f32 %v297_v2, %v8663_v51  ;;  %v8783_v42 = vadd.f32 %v298_v3, %v8665_v52  ;;  %v379_v46 = vadd.s32 6, %v8581_v6 }
  0x30   : > { %v8786_v43 = vadd.f32 %v299_v4, %v8667_v53  ;;  %v380_v47 = vadd.s32 7, %v8581_v6  ;;  %v381_v48 = vadd.s32 8, %v8581_v6  ;;  %v382_v49 = vadd.s32 9, %v8581_v6 }
  0x31   : > { %10996 = vst [vmem:[#allocation15_spill] sm:$0xff] %v8780_v38  ;;  %10997 = vst [vmem:[#allocation16_spill] sm:$0xff] %v8783_v42  ;;  %vm396_vm4 = vcmp.ge.s32.totalorder %v378_v45, 0  ;;  %vm414_vm13 = vcmp.lt.s32.totalorder %v378_v45, 32  ;;  %vm415_vm14 = vcmp.lt.s32.totalorder %v379_v46, 32  ;;  %v481_v50 = vsel %vm427_vm1, %v8679_v18, 0.0 }
  0x32   : > { %10998 = vst [vmem:[#allocation17_spill] sm:$0xff] %v8786_v43  ;;  %vm416_vm15 = vcmp.lt.s32.totalorder %v380_v47, 32  ;;  %vm417_vm2 = vcmp.lt.s32.totalorder %v381_v48, 32  ;;  %vm418_vm3 = vcmp.lt.s32.totalorder %v382_v49, 32  ;;  %v8808_v55 = vsel %vm427_vm1, %v8685_v20, 0.0  ;;  %vm432_vm1 = vmand %vm396_vm4, %vm414_vm13 }
  0x33   : > { %v487_v56 = vsel %vm429_vm6, %v8688_v23, 0.0  ;;  %v488_v57 = vsel %vm429_vm6, %v8691_v24, 0.0  ;;  %v8813_v58 = vsel %vm429_vm6, %v8694_v25, 0.0  ;;  %vm11001_vm0 = vcmp.ge.s32.totalorder %v377_v10, 0 }
  0x34   : > { %vm431_vm5 = vmand %vm11001_vm0, %vm413_vm12  ;;  %v490_v11 = vsel %vm430_vm7, %v348_v35, 0.0  ;;  %v491_v59 = vsel %vm430_vm7, %v349_v13, 0.0  ;;  %v8817_v60 = vsel %vm430_vm7, %v350_v15, 0.0  ;;  %v8819_v61 = vmul.f32 0.75, %v481_v50 }
  0x35   : > { %v493_v12 = vsel %vm431_vm5, %v8697_v26, 0.0  ;;  %v494_v62 = vsel %vm431_vm5, %v8700_v16, 0.0  ;;  %v8826_v63 = vsel %vm431_vm5, %v8703_v17, 0.0  ;;  %v8828_v0 = vmul.f32 0.75, %v482_v54  ;;  %v11010_v26 = vld [vmem:[#allocation10_spill] sm:$0xff]  ;;  %v11011_v17 = vld [vmem:[#allocation11_spill] sm:$0xff] }
  0x36   : > { %vm11002_vm6 = vcmp.ge.s32.totalorder %v379_v46, 0  ;;  %v496_v1 = vsel %vm432_vm1, %v351_v44, 0.0  ;;  %v497_v2 = vsel %vm432_vm1, %v352_v22, 0.0  ;;  %v8832_v3 = vsel %vm432_vm1, %v353_v27, 0.0 }
  0x37   : > { %vm433_vm8 = vmand %vm11002_vm6, %vm415_vm14  ;;  %11003 = vst [vmem:[#allocation18_spill] sm:$0xff] %v8832_v3  ;;  %v8835_v4 = vmul.f32 0.75, %v8808_v55  ;;  %vm11005_vm4 = vcmp.ge.s32.totalorder %v380_v47, 0  ;;  %v8844_v18 = vmul.f32 0.75, %v487_v56  ;;  %vm11007_vm9 = vcmp.ge.s32.totalorder %v381_v48, 0 }
  0x38   : > { %vm434_vm7 = vmand %vm11005_vm4, %vm416_vm15  ;;  %v499_v5 = vsel %vm433_vm8, %v8706_v21, 0.0  ;;  %v500_v13 = vsel %vm433_vm8, %v8709_v29, 0.0  ;;  %v8842_v15 = vsel %vm433_vm8, %v8712_v30, 0.0  ;;  %v8853_v24 = vmul.f32 0.75, %v488_v57 }
  0x39   : > { %11004 = vst [vmem:[#allocation19_spill] sm:$0xff] %v8835_v4  ;;  %11006 = vst [vmem:[#allocation20_spill] sm:$0xff] %v8842_v15  ;;  %v502_v19 = vsel %vm434_vm7, %v8760_v31, 0.0  ;;  %v503_v20 = vsel %vm434_vm7, %v8763_v32, 0.0  ;;  %v8851_v23 = vsel %vm434_vm7, %v8767_v7, 0.0  ;;  %vm11009_vm11 = vcmp.ge.s32.totalorder %v382_v49, 0 }
  0x3a   : > { %vm435_vm10 = vmand %vm11007_vm9, %vm417_vm2  ;;  %11008 = vst [vmem:[#allocation21_spill] sm:$0xff] %v8851_v23  ;;  %v8863_v29 = vmul.f32 0.75, %v8813_v58  ;;  %v8874_v44 = vmul.f32 0.75, %v490_v11  ;;  %v8879_v10 = vmul.f32 0.75, %v8817_v60  ;;  %v8881_v22 = vmul.f32 0.75, %v493_v12 }
  0x3b   : > { %vm436_vm12 = vmand %vm11009_vm11, %vm418_vm3  ;;  %v505_v25 = vsel %vm435_vm10, %v8716_v34, 0.0  ;;  %v506_v16 = vsel %vm435_vm10, %v11010_v26, 0.0  ;;  %v8860_v21 = vsel %vm435_vm10, %v11011_v17, 0.0  ;;  %v8876_v34 = vmul.f32 0.75, %v491_v59 }
  0x3c   : > { %11012 = vst [vmem:[#allocation10_spill] sm:$0xff] %v8860_v21  ;;  %11013 = vst [vmem:[#allocation11_spill] sm:$0xff] %v8863_v29  ;;  %v8866_v30 = vsel %vm436_vm12, %v8770_v28, 0.0  ;;  %v8869_v35 = vsel %vm436_vm12, %v8773_v33, 0.0  ;;  %v8872_v39 = vsel %vm436_vm12, %v8776_v37, 0.0  ;;  %v8883_v27 = vmul.f32 0.75, %v494_v62 }
  0x3d   : > { %11014 = vst [vmem:[#allocation22_spill] sm:$0xff] %v8866_v30  ;;  %11015 = vst [vmem:[#allocation23_spill] sm:$0xff] %v8869_v35  ;;  %v8886_v31 = vmul.f32 0.75, %v8826_v63  ;;  %v8888_v32 = vmul.f32 0.75, %v496_v1  ;;  %v8890_v7 = vmul.f32 0.75, %v497_v2  ;;  %v8893_v28 = vmul.f32 0.75, %v8832_v3 }
  0x3e   : > { %11016 = vst [vmem:[#allocation24_spill] sm:$0xff] %v8872_v39  ;;  %11017 = vst [vmem:[#allocation25_spill] sm:$0xff] %v8879_v10  ;;  %v8895_v33 = vmul.f32 0.75, %v499_v5  ;;  %v8897_v37 = vmul.f32 0.75, %v500_v13  ;;  %v8900_v45 = vmul.f32 0.75, %v8842_v15  ;;  %v8902_v46 = vmul.f32 0.75, %v502_v19 }
  0x3f   : > { %11018 = vst [vmem:[#allocation26_spill] sm:$0xff] %v8881_v22  ;;  %11019 = vst [vmem:[#allocation27_spill] sm:$0xff] %v8886_v31  ;;  %v8904_v47 = vmul.f32 0.75, %v503_v20  ;;  %v8907_v48 = vmul.f32 0.75, %v8851_v23  ;;  %v8909_v49 = vmul.f32 0.75, %v505_v25  ;;  %v8911_v26 = vmul.f32 0.75, %v506_v16 }
  0x40   : > { %11020 = vst [vmem:[#allocation28_spill] sm:$0xff] %v8888_v32  ;;  %11021 = vst [vmem:[#allocation29_spill] sm:$0xff] %v8890_v7  ;;  %vm697_vm2 = vcmask 1046528   ;;  %v8914_v17 = vmul.f32 0.75, %v8860_v21  ;;  %v8917_v53 = vmul.f32 0.75, %v8866_v30  ;;  %v8920_v52 = vmul.f32 0.75, %v8869_v35 }
  0x41   : > { %11022 = vst [vmem:[#allocation30_spill] sm:$0xff] %v8893_v28  ;;  %11023 = vst [vmem:[#allocation31_spill] sm:$0xff] %v8895_v33  ;;  %v8923_v51 = vmul.f32 0.75, %v8872_v39  ;;  %v8925_v43 = vmul.f32 0.25, %v481_v50  ;;  %v8927_v42 = vmul.f32 0.25, %v482_v54  ;;  %v8929_v38 = vmul.f32 0.25, %v487_v56 }
  0x42   : > { %11024 = vst [vmem:[#allocation32_spill] sm:$0xff] %v8897_v37  ;;  %11025 = vst [vmem:[#allocation33_spill] sm:$0xff] %v8900_v45  ;;  %v8931_v41 = vmul.f32 0.25, %v488_v57  ;;  %v8933_v8 = vmul.f32 0.25, %v490_v11  ;;  %v8935_v21 = vmul.f32 0.25, %v491_v59  ;;  %v8937_v30 = vmul.f32 0.25, %v493_v12 }
  0x43   : > { %11026 = vst [vmem:[#allocation34_spill] sm:$0xff] %v8904_v47  ;;  %11027 = vst [vmem:[#allocation35_spill] sm:$0xff] %v8907_v48  ;;  %v8941_v35 = vmul.f32 0.25, %v496_v1  ;;  %v8943_v39 = vmul.f32 0.25, %v497_v2  ;;  %v8945_v50 = vmul.f32 0.25, %v499_v5  ;;  %v8947_v54 = vmul.f32 0.25, %v500_v13 }
  0x44   : > { %11028 = vst [vmem:[#allocation36_spill] sm:$0xff] %v8914_v17  ;;  %11029 = vst [vmem:[#allocation37_spill] sm:$0xff] %v8917_v53  ;;  %v8939_v17 = vmul.f32 0.25, %v494_v62  ;;  %v8949_v56 = vmul.f32 0.25, %v502_v19  ;;  %v8951_v57 = vmul.f32 0.25, %v503_v20  ;;  %v8953_v11 = vmul.f32 0.25, %v505_v25 }
  0x45   : > { %11030 = vst [vmem:[#allocation38_spill] sm:$0xff] %v8923_v51  ;;  %11031 = vst [vmem:[#allocation39_spill] sm:$0xff] %v8945_v50  ;;  %v8955_v59 = vmul.f32 0.25, %v506_v16  ;;  %v698_v12 = vrot.slane %v8925_v43, 1  ;;  %v950_v5 = vrot.slane %v8819_v61, 1  ;;  %v951_v13 = vrot.slane %v8828_v0, 1 }
  0x46   : > { %11032 = vst [vmem:[#allocation40_spill] sm:$0xff] %v8947_v54  ;;  %11033 = vst [vmem:[#allocation41_spill] sm:$0xff] %v8953_v11  ;;  %v10821_v19 = vrot.slane %v8835_v4, 1  ;;  %v960_v20 = vrot.slane %v8844_v18, 1  ;;  %v961_v25 = vrot.slane %v8853_v24, 1  ;;  %v10824_v16 = vrot.slane %v8863_v29, 1 }
  0x47   : > { %11034 = vst [vmem:[#allocation42_spill] sm:$0xff] %v8955_v59  ;;  %v965_v51 = vrot.slane %v8874_v44, 1  ;;  %v966_v62 = vrot.slane %v8876_v34, 1  ;;  %v952_v1 = vsel %vm697_vm2, %v950_v5, %v951_v13  ;;  %v10825_v59 = vrot.slane %v8879_v10, 1 }
  0x48   : > { %v954_v2 = vsel %vm697_vm2, %v951_v13, %v10821_v19  ;;  %v970_v11 = vrot.slane %v8881_v22, 1  ;;  %v962_v23 = vsel %vm697_vm2, %v960_v20, %v961_v25  ;;  %v964_v15 = vsel %vm697_vm2, %v961_v25, %v10824_v16  ;;  %v11035_v16 = vld [vmem:[#allocation3_spill] sm:$0xff] }
  0x49   : > { %v967_v54 = vsel %vm697_vm2, %v965_v51, %v966_v62  ;;  %v971_v50 = vrot.slane %v8883_v27, 1  ;;  %v969_v5 = vsel %vm697_vm2, %v966_v62, %v10825_v59  ;;  %v10832_v13 = vrot.slane %v8886_v31, 1 }
  0x4a   : > { %v975_v19 = vrot.slane %v8888_v32, 1  ;;  %v976_v3 = vrot.slane %v8890_v7, 1  ;;  %v10833_v22 = vrot.slane %v8893_v28, 1  ;;  %vm1152_vm3 = vcmp.ne.s32.totalorder %v11035_v16, 0 }
  0x4b   : > { %v972_v20 = vsel %vm697_vm2, %v970_v11, %v971_v50  ;;  %v974_v62 = vsel %vm697_vm2, %v971_v50, %v10832_v13  ;;  %v985_v7 = vrot.slane %v8902_v46, 1  ;;  %v986_v25 = vrot.slane %v8904_v47, 1 }
  0x4c   : > { %v977_v59 = vsel %vm697_vm2, %v975_v19, %v976_v3  ;;  %v979_v11 = vsel %vm697_vm2, %v976_v3, %v10833_v22  ;;  %v10835_v51 = vrot.slane %v8907_v48, 1  ;;  %v1094_v13 = vadd.f32 %v952_v1, %v8925_v43 }
  0x4d   : > { %v987_v32 = vsel %vm697_vm2, %v985_v7, %v986_v25  ;;  %v1095_v22 = vadd.f32 %v954_v2, %v8927_v42  ;;  %v1100_v47 = vadd.f32 %v962_v23, %v8929_v38  ;;  %v1101_v33 = vadd.f32 %v964_v15, %v8931_v41 }
  0x4e   : > { %v989_v3 = vsel %vm697_vm2, %v986_v25, %v10835_v51  ;;  %v1103_v37 = vadd.f32 %v967_v54, %v8933_v8  ;;  %v1104_v50 = vadd.f32 %v969_v5, %v8935_v21  ;;  %v1106_v19 = vadd.f32 %v972_v20, %v8937_v30 }
  0x4f   : > { %v1107_v43 = vadd.f32 %v974_v62, %v8939_v17  ;;  %v9020_v7 = vadd.f32 %v977_v59, %v8941_v35  ;;  %v9023_v1 = vadd.f32 %v979_v11, %v8943_v39  ;;  %v9026_v2 = vadd.f32 %v987_v32, %v8949_v56 }
  0x50   : > { %v9029_v23 = vadd.f32 %v989_v3, %v8951_v57  ;;  %v9031_v15 = vpack.c.bf16 %v1095_v22, %v1094_v13  ;;  %v9033_v54 = vpack.c.bf16 %v1101_v33, %v1100_v47  ;;  %v9035_v5 = vpack.c.bf16 %v1104_v50, %v1103_v37 }
  0x51   : > { %v9037_v20 = vpack.c.bf16 %v1107_v43, %v1106_v19  ;;  %v9040_v59 = vmul.f32 0.25, %v8808_v55  ;;  %v11038_v25 = vrot.slane %v8927_v42, 1  ;;  %v374_v32 = vadd.s32 1, %v8581_v6 }
  0x52   : > { %11036 = vst [vmem:[#allocation43_spill] sm:$0xff] %v9031_v15  ;;  %6985 = vmatprep.mubr.bf16.mxu0 %v9031_v15  ;;  %v9051_v33 = vmul.f32 0.25, %v8813_v58  ;;  %v708_v37 = vrot.slane %v8929_v38, 1  ;;  %v709_v47 = vrot.slane %v8931_v41, 1  ;;  %v11042_v38 = vrot.slane %v8935_v21, 1 }
  0x53   : > { %11037 = vst [vmem:[#allocation44_spill] sm:$0xff] %v9040_v59  ;;  %v700_v62 = vsel %vm697_vm2, %v698_v12, %v11038_v25  ;;  %v701_v55 = vrot.slane %v9040_v59, 1  ;;  %vm392_vm13 = vcmp.ge.s32.totalorder %v374_v32, 0  ;;  %vm410_vm14 = vcmp.lt.s32.totalorder %v374_v32, 32 }
  0x54   : > { %v9048_v22 = vadd.f32 %v700_v62, %v8819_v61  ;;  %11040 = vst [vmem:[#allocation46_spill] sm:$0xff] %v9051_v33  ;;  %v9057_v12 = vmul.f32 0.25, %v8817_v60  ;;  %vm428_vm15 = vmand %vm392_vm13, %vm410_vm14  ;;  %v710_v61 = vsel %vm697_vm2, %v708_v37, %v709_v47  ;;  %v711_v58 = vrot.slane %v9051_v33, 1 }
  0x55   : > { %v11043_v41 = vrot.slane %v8933_v8, 1  ;;  %v11044_v50 = vmov %v11038_v25  ;;  %v844_v19 = vadd.f32 %v701_v55, %v8835_v4  ;;  %vm1350_vm0 = vsmask.f32 7424 }
  0x56   : > { %11039 = vst [vmem:[#allocation45_spill] sm:$0xff] %v9048_v22  ;;  %11041 = vst [vmem:[#allocation47_spill] sm:$0xff] %v9057_v12  ;;  %v1161_v13 = vsel %vm1152_vm3, %v9048_v22, 0.0  ;;  %v702_v60 = vsel %vm697_vm2, %v11044_v50, %v701_v55  ;;  %v484_v3 = vsel %vm428_vm15, %v8744_v9, 0.0  ;;  %v485_v43 = vsel %vm428_vm15, %v8747_v36, 0.0 }
  0x57   : > { %v715_v11 = vsel %vm697_vm2, %v11043_v41, %v11042_v38  ;;  %v9076_v25 = vadd.f32 %v702_v60, %v8828_v0  ;;  %v486_v62 = vsel %vm428_vm15, %v8752_v14, 0.0  ;;  %v538_v32 = vmul.f32 0.75, %v484_v3 }
  0x58   : > { %v539_v8 = vmul.f32 0.75, %v485_v43  ;;  %v1216_v37 = vpack.c.bf16 %v844_v19, %v844_v19  ;;  %v9079_v38 = vmul.f32 0.75, %v486_v62  ;;  %v592_v42 = vmul.f32 0.25, %v484_v3 }
  0x59   : > { %11045 = vst [vmem:[#allocation48_spill] sm:$0xff] %v9076_v25  ;;  %v593_v41 = vmul.f32 0.25, %v485_v43  ;;  %v1215_v50 = vpack.c.bf16 %v9076_v25, %v1161_v13  ;;  %v955_v55 = vrot.slane %v538_v32, 1  ;;  %v9082_v33 = vmul.f32 0.25, %v486_v62 }
  0x5a   : > { %11046 = vst [vmem:[#allocation49_spill] sm:$0xff] %v9079_v38  ;;  %v956_v51 = vrot.slane %v539_v8, 1  ;;  %v1359_v9 = vshll.u32 %v1216_v37, 16  ;;  %v10848_v36 = vrot.slane %v9079_v38, 1  ;;  %v703_v0 = vrot.slane %v592_v42, 1 }
  0x5b   : > { %11047 = vst [vmem:[#allocation50_spill] sm:$0xff] %v9082_v33  ;;  %v704_v60 = vrot.slane %v593_v41, 1  ;;  %v1352_v4 = vshrl.u32 %v1215_v50, 16  ;;  %v1354_v14 = vshll.u32 %v1215_v50, 16  ;;  %v706_v19 = vrot.slane %v9082_v33, 1 }
  0x5c   : > { %v957_v59 = vsel %vm697_vm2, %v955_v55, %v956_v51  ;;  %v1361_v15 = vrot.slane %v1359_v9, 1  ;;  %v959_v13 = vsel %vm697_vm2, %v956_v51, %v10848_v36  ;;  %v712_v55 = vsel %vm697_vm2, %v709_v47, %v711_v58  ;;  %v11083_v36 = vld [vmem:[#allocation10_spill] sm:$0xff] }
  0x5d   : > { %v1097_v3 = vadd.f32 %v957_v59, %v592_v42  ;;  %v705_v43 = vsel %vm697_vm2, %v703_v0, %v704_v60  ;;  %v1356_v62 = vrot.slane %v1354_v14, 1  ;;  %v1098_v37 = vadd.f32 %v959_v13, %v593_v41  ;;  %v9138_v14 = vld [vmem:[%s10798_s1 + $0x10] sm:$0xff]  }
  0x5e   : > { %v707_v25 = vsel %vm697_vm2, %v704_v60, %v706_v19  ;;  %v845_v22 = vadd.f32 %v705_v43, %v538_v32  ;;  %v847_v50 = vadd.f32 %v706_v19, %v9079_v38  ;;  %v9095_v33 = vadd.f32 %v710_v61, %v8844_v18 }
  0x5f   : > { %v846_v6 = vadd.f32 %v707_v25, %v539_v8  ;;  %v1357_v9 = vor.u32 %v1356_v62, %v1352_v4  ;;  %v9097_v53 = vpack.c.bf16 %v1098_v37, %v1097_v3  ;;  %v9102_v59 = vadd.f32 %v712_v55, %v8853_v24  ;;  %v9107_v25 = vld [vmem:[%s10798_s1 + $0x8] sm:$0xff]  }
  0x60   : > { %v1164_v51 = vsel %vm1152_vm3, %v845_v22, 0.0  ;;  %v1218_v8 = vpack.c.bf16 %v847_v50, %v847_v50  ;;  %v850_v18 = vadd.f32 %v711_v58, %v8863_v29  ;;  %v1167_v24 = vsel %vm1152_vm3, %v9095_v33, 0.0 }
  0x61   : > { %v1217_v32 = vpack.c.bf16 %v846_v6, %v1164_v51  ;;  %v9109_v47 = vpack.c.bf16 %v846_v6, %v845_v22  ;;  %v9113_v4 = vsel %vm1350_vm0, %v1357_v9, %v1361_v15  ;;  %6986 = vmatmul.mubr.bf16.vlgmr.msra.gmra.mrb[0].mxu0 %v9097_v53  ;;  %v716_v61 = vrot.slane %v9057_v12, 1 }
  0x62   : > { %11048 = vst [vmem:[#allocation51_spill] sm:$0xff] %v9113_v4  ;;  %v9121_v42 = vadd.f32 %v715_v11, %v8874_v44  ;;  %7129 = vmatprep.mubr.bf16.mxu1 %v9113_v4  ;;  %v1371_v41 = vshll.u32 %v1218_v8, 16  ;;  %7018 = vmatpush3.bf16.msra.mxu0 %v8728_v40  ;;  %v1219_v15 = vpack.c.bf16 %v9102_v59, %v1167_v24  ;;  %v11049_v0 = vrot.slane %v8935_v21, 1 }
  0x63   : > { %v1364_v6 = vshrl.u32 %v1217_v32, 16  ;;  %v1366_v22 = vshll.u32 %v1217_v32, 16  ;;  %6989 = vmatprep.mubr.bf16.mxu0 %v9033_v54  ;;  %v1220_v58 = vpack.c.bf16 %v850_v18, %v850_v18  ;;  %7019 = vmatprep.subr.bf16.mxu0 %v9107_v25  ;;  %v853_v44 = vadd.f32 %v716_v61, %v8879_v10 }
  0x64   : > { %v717_v60 = vsel %vm697_vm2, %v11049_v0, %v716_v61  ;;  %v1170_v11 = vsel %vm1152_vm3, %v9121_v42, 0.0  ;;  %v1373_v13 = vrot.slane %v1371_v41, 1  ;;  %v1376_v3 = vshrl.u32 %v1219_v15, 16 }
  0x65   : > { %v1368_v19 = vrot.slane %v1366_v22, 1  ;;  %v1378_v43 = vshll.u32 %v1219_v15, 16  ;;  %v1383_v62 = vshll.u32 %v1220_v58, 16  ;;  %v9141_v21 = vadd.f32 %v717_v60, %v8876_v34  ;;  %v9166_v58 = vld [vmem:[%s10798_s1 + $0x18] sm:$0xff]  }
  0x66   : > { %v1222_v37 = vpack.c.bf16 %v853_v44, %v853_v44  ;;  %v9144_v50 = vmul.f32 0.25, %v8826_v63  ;;  %7020 = vmatpush3.bf16.msra.mxu0 %v9107_v25  ;;  %v718_v51 = vrot.slane %v8937_v30, 1  ;;  %v719_v32 = vrot.slane %v8939_v17, 1  ;;  %v11055_v44 = vld [vmem:[#allocation18_spill] sm:$0xff] }
  0x67   : > { %v1369_v55 = vor.u32 %v1368_v19, %v1364_v6  ;;  %v1380_v9 = vrot.slane %v1378_v43, 1  ;;  %v1385_v8 = vrot.slane %v1383_v62, 1  ;;  %v1221_v18 = vpack.c.bf16 %v9141_v21, %v1170_v11  ;;  %7021 = vmatprep.subr.bf16.mxu0 %v9138_v14  ;;  %v11057_v62 = vld [vmem:[#allocation32_spill] sm:$0xff] }
  0x68   : > { %11050 = vst [vmem:[#allocation52_spill] sm:$0xff] %v9144_v50  ;;  %v1395_v24 = vshll.u32 %v1222_v37, 16  ;;  %v721_v61 = vrot.slane %v9144_v50, 1  ;;  %v720_v6 = vsel %vm697_vm2, %v718_v51, %v719_v32  ;;  %v9158_v22 = vpack.c.bf16 %v9023_v1, %v9020_v7  ;;  %v11054_v7 = vld [vmem:[#allocation26_spill] sm:$0xff] }
  0x69   : > { %v9153_v34 = vsel %vm1350_vm0, %v1369_v55, %v1373_v13  ;;  %v1381_v63 = vor.u32 %v1380_v9, %v1376_v3  ;;  %6990 = vmatmul.mubr.bf16.gmra.mrb[4].mxu0 %v9035_v5  ;;  %v1388_v30 = vshrl.u32 %v1221_v18, 16  ;;  %v1390_v17 = vshll.u32 %v1221_v18, 16  ;;  %v11059_v55 = vld [vmem:[#allocation31_spill] sm:$0xff] }
  0x6a   : > { %11051 = vst [vmem:[#allocation53_spill] sm:$0xff] %v9153_v34  ;;  %11052 = vst [vmem:[#allocation54_spill] sm:$0xff] %v9158_v22  ;;  %7130 = vmatmul.mubr.bf16.vlgmr.msra.gmra.mrb[0].mxu1 %v9153_v34  ;;  %v1397_v41 = vrot.slane %v1395_v24, 1  ;;  %v722_v15 = vsel %vm697_vm2, %v719_v32, %v721_v61  ;;  %6993 = vmatprep.mubr.bf16.mxu0 %v9037_v20  ;;  %v9174_v1 = vadd.f32 %v720_v6, %v11054_v7 }
  0x6b   : > { %7162 = vmatpush3.bf16.msra.mxu1 %v8728_v40  ;;  %v9170_v0 = vsel %vm1350_vm0, %v1381_v63, %v1385_v8  ;;  %v9177_v60 = vadd.f32 %v722_v15, %v8883_v27  ;;  %v9180_v11 = vmul.f32 0.25, %v11055_v44  ;;  %v1392_v19 = vrot.slane %v1390_v17, 1  ;;  %7022 = vmatpush3.bf16.msra.mxu0 %v9138_v14  ;;  %v9205_v8 = vld [vmem:[%s10798_s1 + $0x20] sm:$0xff]   ;;  %v11063_v17 = vld [vmem:[#allocation28_spill] sm:$0xff]  ;;  %v11064_v44 = vld [vmem:[#allocation39_spill] sm:$0xff] }
  0x6c   : > { %11053 = vst [vmem:[#allocation55_spill] sm:$0xff] %v9170_v0  ;;  %7133 = vmatprep.mubr.bf16.mxu1 %v9170_v0  ;;  %7163 = vmatprep.subr.bf16.mxu1 %v9107_v25  ;;  %v856_v40 = vadd.f32 %v721_v61, %v8886_v31  ;;  %v723_v13 = vrot.slane %v8941_v35, 1  ;;  %v724_v3 = vrot.slane %v8943_v39, 1  ;;  %v1173_v43 = vsel %vm1152_vm3, %v9174_v1, 0.0  ;;  %v11111_v0 = vld [vmem:[#allocation17_spill] sm:$0xff] }
  0x6d   : > { %11056 = vst [vmem:[#allocation26_spill] sm:$0xff] %v9180_v11  ;;  %v726_v27 = vrot.slane %v9180_v11, 1  ;;  %v11058_v37 = vrot.slane %v11057_v62, 1  ;;  %v11060_v9 = vrot.slane %v11059_v55, 1  ;;  %v11061_v32 = vrot.slane %v8900_v45, 1  ;;  %7023 = vmatprep.subr.bf16.mxu0 %v9166_v58 }
  0x6e   : > { %v1393_v18 = vor.u32 %v1392_v19, %v1388_v30  ;;  %v1223_v24 = vpack.c.bf16 %v9177_v60, %v1173_v43  ;;  %v1224_v61 = vpack.c.bf16 %v856_v40, %v856_v40  ;;  %v725_v63 = vsel %vm697_vm2, %v723_v13, %v724_v3  ;;  %v11066_v13 = vld [vmem:[#allocation29_spill] sm:$0xff] }
  0x6f   : > { %v982_v51 = vsel %vm697_vm2, %v11060_v9, %v11058_v37  ;;  %v11062_v35 = vmov %v11058_v37  ;;  %7164 = vmatpush3.bf16.msra.mxu1 %v9107_v25  ;;  %v727_v6 = vsel %vm697_vm2, %v724_v3, %v726_v27  ;;  %v9213_v15 = vadd.f32 %v725_v63, %v11063_v17  ;;  %7024 = vmatpush3.bf16.msra.mxu0 %v9166_v58 }
  0x70   : > { %v984_v39 = vsel %vm697_vm2, %v11062_v35, %v11061_v32  ;;  %v859_v7 = vadd.f32 %v726_v27, %v8893_v28  ;;  %v1112_v37 = vadd.f32 %v982_v51, %v11064_v44  ;;  %v9218_v30 = vsel %vm1350_vm0, %v1393_v18, %v1397_v41  ;;  %7165 = vmatprep.subr.bf16.mxu1 %v9138_v14  ;;  %v11067_v32 = vld [vmem:[#allocation40_spill] sm:$0xff] }
  0x71   : > { %11065 = vst [vmem:[#allocation18_spill] sm:$0xff] %v9218_v30  ;;  %v1400_v19 = vshrl.u32 %v1223_v24, 16  ;;  %v1402_v40 = vshll.u32 %v1223_v24, 16  ;;  %v1407_v43 = vshll.u32 %v1224_v61, 16  ;;  %v9222_v9 = vadd.f32 %v727_v6, %v11066_v13  ;;  %6994 = vmatmul.mubr.bf16.gmra.mrb[8].mxu0 %v9158_v22  ;;  %v11068_v35 = vld [vmem:[#allocation20_spill] sm:$0xff]  ;;  %v9238_v61 = vld [vmem:[%s10798_s1 + $0x28] sm:$0xff]   ;;  %7025 = vmatprep.subr.bf16.mxu0 %v9205_v8 }
  0x72   : > { %v1176_v25 = vsel %vm1152_vm3, %v9213_v15, 0.0  ;;  %v1226_v3 = vpack.c.bf16 %v859_v7, %v859_v7  ;;  %v1113_v27 = vadd.f32 %v984_v39, %v11067_v32  ;;  %7134 = vmatmul.mubr.bf16.gmra.mrb[4].mxu1 %v9218_v30  ;;  %v9232_v18 = vmul.f32 0.25, %v11068_v35  ;;  %v11109_v30 = vld [vmem:[#allocation15_spill] sm:$0xff] }
  0x73   : > { %v1404_v41 = vrot.slane %v1402_v40, 1  ;;  %v1409_v51 = vrot.slane %v1407_v43, 1  ;;  %v728_v24 = vrot.slane %v11064_v44, 1  ;;  %v1225_v39 = vpack.c.bf16 %v9222_v9, %v1176_v25  ;;  %7166 = vmatpush3.bf16.msra.mxu1 %v9138_v14  ;;  %v11072_v43 = vld [vmem:[#allocation21_spill] sm:$0xff]  ;;  %7026 = vmatpush3.bf16.msra.mxu0 %v9205_v8 }
  0x74   : > { %11069 = vst [vmem:[#allocation32_spill] sm:$0xff] %v9232_v18  ;;  %v1419_v63 = vshll.u32 %v1226_v3, 16  ;;  %v9242_v6 = vpack.c.bf16 %v1113_v27, %v1112_v37  ;;  %v729_v17 = vrot.slane %v11067_v32, 1  ;;  %v731_v40 = vrot.slane %v9232_v18, 1  ;;  %7167 = vmatprep.subr.bf16.mxu1 %v9166_v58  ;;  %7027 = vmatprep.subr.bf16.mxu0 %v9238_v61  ;;  %v9270_v27 = vld [vmem:[%s10798_s1 + $0x30] sm:$0xff]  }
  0x75   : > { %v1405_v7 = vor.u32 %v1404_v41, %v1400_v19  ;;  %v9249_v44 = vpack.c.bf16 %v9029_v23, %v9026_v2  ;;  %v9252_v13 = vmul.f32 0.25, %v11072_v43  ;;  %v1412_v25 = vshrl.u32 %v1225_v39, 16  ;;  %v11110_v18 = vld [vmem:[#allocation16_spill] sm:$0xff] }
  0x76   : > { %11070 = vst [vmem:[#allocation31_spill] sm:$0xff] %v9242_v6  ;;  %v1414_v14 = vshll.u32 %v1225_v39, 16  ;;  %v1421_v37 = vrot.slane %v1419_v63, 1  ;;  %6997 = vmatprep.mubr.bf16.mxu0 %v9242_v6  ;;  %v730_v3 = vsel %vm697_vm2, %v728_v24, %v729_v17  ;;  %v732_v2 = vsel %vm697_vm2, %v729_v17, %v731_v40 }
  0x77   : > { %11071 = vst [vmem:[#allocation28_spill] sm:$0xff] %v9249_v44  ;;  %11073 = vst [vmem:[#allocation39_spill] sm:$0xff] %v9252_v13  ;;  %v9259_v19 = vsel %vm1350_vm0, %v1405_v7, %v1409_v51  ;;  %v9263_v23 = vadd.f32 %v730_v3, %v11059_v55  ;;  %v862_v32 = vadd.f32 %v731_v40, %v8900_v45  ;;  %v733_v35 = vrot.slane %v8949_v56, 1  ;;  %v11077_v40 = vld [vmem:[#allocation36_spill] sm:$0xff] }
  0x78   : > { %11074 = vst [vmem:[#allocation29_spill] sm:$0xff] %v9259_v19  ;;  %7137 = vmatprep.mubr.bf16.mxu1 %v9259_v19  ;;  %v1416_v41 = vrot.slane %v1414_v14, 1  ;;  %v9274_v51 = vadd.f32 %v732_v2, %v11057_v62  ;;  %v734_v55 = vrot.slane %v8951_v57, 1  ;;  %7168 = vmatpush3.bf16.msra.mxu1 %v9166_v58  ;;  %v736_v63 = vrot.slane %v9252_v13, 1 }
  0x79   : > { %v1179_v24 = vsel %vm1152_vm3, %v9263_v23, 0.0  ;;  %v1228_v39 = vpack.c.bf16 %v862_v32, %v862_v32  ;;  %v11075_v17 = vrot.slane %v8911_v26, 1  ;;  %v11076_v7 = vrot.slane %v8909_v49, 1  ;;  %7169 = vmatprep.subr.bf16.mxu1 %v9205_v8  ;;  %7028 = vmatpush3.bf16.msra.mxu0 %v9238_v61 }
  0x7a   : > { %v1417_v56 = vor.u32 %v1416_v41, %v1412_v25  ;;  %v1227_v57 = vpack.c.bf16 %v9274_v51, %v1179_v24  ;;  %v735_v58 = vsel %vm697_vm2, %v733_v35, %v734_v55  ;;  %v10852_v43 = vrot.slane %v11077_v40, 1  ;;  %6998 = vmatmul.mubr.bf16.gmra.mrb[12].mxu0 %v9249_v44  ;;  %7029 = vmatprep.subr.bf16.mxu0 %v9270_v27  ;;  %v9303_v25 = vld [vmem:[%s10798_s1 + $0x38] sm:$0xff]  }
  0x7b   : > { %v992_v62 = vsel %vm697_vm2, %v11076_v7, %v11075_v17  ;;  %v1431_v14 = vshll.u32 %v1228_v39, 16  ;;  %v737_v3 = vsel %vm697_vm2, %v734_v55, %v736_v63  ;;  %v9296_v2 = vadd.f32 %v735_v58, %v8902_v46  ;;  %v11079_v39 = vld [vmem:[#allocation34_spill] sm:$0xff] }
  0x7c   : > { %v865_v32 = vadd.f32 %v736_v63, %v8907_v48  ;;  %v9306_v41 = vsel %vm1350_vm0, %v1417_v56, %v1421_v37  ;;  %v1424_v35 = vshrl.u32 %v1227_v57, 16  ;;  %v1426_v24 = vshll.u32 %v1227_v57, 16  ;;  %7170 = vmatpush3.bf16.msra.mxu1 %v9205_v8  ;;  %v11081_v8 = vld [vmem:[#allocation41_spill] sm:$0xff] }
  0x7d   : > { %11078 = vst [vmem:[#allocation40_spill] sm:$0xff] %v9306_v41  ;;  %v9309_v17 = vadd.f32 %v737_v3, %v11079_v39  ;;  %7138 = vmatmul.mubr.bf16.gmra.mrb[8].mxu1 %v9306_v41  ;;  %v1433_v46 = vrot.slane %v1431_v14, 1  ;;  %v1182_v55 = vsel %vm1152_vm3, %v9296_v2, 0.0  ;;  %v11080_v37 = vrot.slane %v8911_v26, 1  ;;  %7171 = vmatprep.subr.bf16.mxu1 %v9238_v61  ;;  %v11082_v3 = vld [vmem:[#allocation42_spill] sm:$0xff] }
  0x7e   : > { %v1230_v63 = vpack.c.bf16 %v865_v32, %v865_v32  ;;  %v1428_v56 = vrot.slane %v1426_v24, 1  ;;  %v1118_v58 = vadd.f32 %v992_v62, %v11081_v8  ;;  %7030 = vmatpush3.bf16.msra.mxu0 %v9270_v27  ;;  %v9327_v32 = vmul.f32 0.25, %v11083_v36  ;;  %v9335_v24 = vld [vmem:[%s10798_s1 + $0x80] sm:$0xff]  }
  0x7f   : > { %v994_v7 = vsel %vm697_vm2, %v11080_v37, %v10852_v43  ;;  %v1229_v57 = vpack.c.bf16 %v9309_v17, %v1182_v55  ;;  %v738_v41 = vrot.slane %v11081_v8, 1  ;;  %v739_v48 = vrot.slane %v11082_v3, 1  ;;  %7031 = vmatprep.subr.bf16.mxu0 %v9303_v25 }
  0x80   : > { %v1119_v14 = vadd.f32 %v994_v7, %v11082_v3  ;;  %v1443_v39 = vshll.u32 %v1230_v63, 16  ;;  %11084 = vst [vmem:[#allocation20_spill] sm:$0xff] %v9327_v32  ;;  %v1429_v62 = vor.u32 %v1428_v56, %v1424_v35  ;;  %7172 = vmatpush3.bf16.msra.mxu1 %v9238_v61  ;;  %v741_v8 = vrot.slane %v9327_v32, 1  ;;  %v11086_v3 = vld [vmem:[#allocation22_spill] sm:$0xff]  ;;  %v11088_v56 = vld [vmem:[#allocation23_spill] sm:$0xff] }
  0x81   : > { %v1436_v55 = vshrl.u32 %v1229_v57, 16  ;;  %v1438_v37 = vshll.u32 %v1229_v57, 16  ;;  %v740_v63 = vsel %vm697_vm2, %v738_v41, %v739_v48  ;;  %v616_v43 = vmul.f32 0.25, %v11086_v3  ;;  %7173 = vmatprep.subr.bf16.mxu1 %v9270_v27 }
  0x82   : > { %v9337_v7 = vpack.c.bf16 %v1119_v14, %v1118_v58  ;;  %v1445_v36 = vrot.slane %v1443_v39, 1  ;;  %v9345_v13 = vsel %vm1350_vm0, %v1429_v62, %v1433_v46  ;;  %v9349_v35 = vadd.f32 %v740_v63, %v8909_v49  ;;  %7032 = vmatpush3.bf16.msra.mxu0 %v9303_v25  ;;  %v11090_v46 = vld [vmem:[#allocation37_spill] sm:$0xff]  ;;  %v11092_v62 = vld [vmem:[#allocation38_spill] sm:$0xff] }
  0x83   : > { %11087 = vst [vmem:[#allocation34_spill] sm:$0xff] %v9345_v13  ;;  %v1440_v19 = vrot.slane %v1438_v37, 1  ;;  %v617_v61 = vmul.f32 0.25, %v11088_v56  ;;  %7141 = vmatprep.mubr.bf16.mxu1 %v9345_v13  ;;  %v742_v41 = vsel %vm697_vm2, %v739_v48, %v741_v8  ;;  %v868_v57 = vadd.f32 %v741_v8, %v11077_v40  ;;  %7065 = vmatprep.subr.bf16.mxu0 %v9335_v24  ;;  %v11097_v40 = vld [vmem:[#allocation2_spill] sm:$0xff] }
  0x84   : > { %11085 = vst [vmem:[#allocation21_spill] sm:$0xff] %v9337_v7  ;;  %7001 = vmatprep.mubr.bf16.mxu0 %v9337_v7  ;;  %v11089_v58 = vrot.slane %v8920_v52, 1  ;;  %v11091_v14 = vrot.slane %v11090_v46, 1  ;;  %v10859_v37 = vrot.slane %v11092_v62, 1  ;;  %v9364_v63 = vadd.f32 %v742_v41, %v8911_v26  ;;  %7174 = vmatpush3.bf16.msra.mxu1 %v9270_v27 }
  0x85   : > { %v1441_v49 = vor.u32 %v1440_v19, %v1436_v55  ;;  %v1185_v48 = vsel %vm1152_vm3, %v9349_v35, 0.0  ;;  %v1232_v8 = vpack.c.bf16 %v868_v57, %v868_v57  ;;  %v743_v19 = vrot.slane %v616_v43, 1  ;;  %7175 = vmatprep.subr.bf16.mxu1 %v9303_v25 }
  0x86   : > { %v997_v39 = vsel %vm697_vm2, %v11091_v14, %v11089_v58  ;;  %v11093_v56 = vmov %v11089_v58  ;;  %v11094_v14 = vld [vmem:[#allocation24_spill] sm:$0xff]  ;;  %v1231_v55 = vpack.c.bf16 %v9364_v63, %v1185_v48  ;;  %v744_v27 = vrot.slane %v617_v61, 1 }
  0x87   : > { %v1121_v3 = vadd.f32 %v997_v39, %v616_v43  ;;  %v999_v58 = vsel %vm697_vm2, %v11093_v56, %v10859_v37  ;;  %v9376_v13 = vmul.f32 0.25, %v11094_v14  ;;  %v9380_v26 = vsel %vm1350_vm0, %v1441_v49, %v1445_v36 }
  0x88   : > { %11096 = vst [vmem:[#allocation42_spill] sm:$0xff] %v9380_v26  ;;  %v1122_v41 = vadd.f32 %v999_v58, %v617_v61  ;;  %7142 = vmatmul.mubr.bf16.gmra.mrb[12].mxu1 %v9380_v26  ;;  %v1455_v57 = vshll.u32 %v1232_v8, 16  ;;  %v383_v56 = vadd.s32 10, %v11097_v40  ;;  %v384_v14 = vadd.s32 11, %v11097_v40 }
  0x89   : > { %11095 = vst [vmem:[#allocation41_spill] sm:$0xff] %v9376_v13  ;;  %v746_v39 = vrot.slane %v9376_v13, 1  ;;  %v1448_v37 = vshrl.u32 %v1231_v55, 16  ;;  %v1450_v43 = vshll.u32 %v1231_v55, 16  ;;  %v745_v36 = vsel %vm697_vm2, %v743_v19, %v744_v27  ;;  %7176 = vmatpush3.bf16.msra.mxu1 %v9303_v25 }
  0x8a   : > { %v9387_v32 = vpack.c.bf16 %v1122_v41, %v1121_v3  ;;  %v1457_v49 = vrot.slane %v1455_v57, 1  ;;  %v9393_v48 = vadd.f32 %v745_v36, %v11090_v46  ;;  %7209 = vmatprep.subr.bf16.mxu1 %v9335_v24  ;;  %vm401_vm5 = vcmp.ge.s32.totalorder %v383_v56, 0  ;;  %v11101_v41 = vld [vmem:[#allocation12_spill] sm:$0xff]  ;;  %v11102_v57 = vld [vmem:[#allocation13_spill] sm:$0xff] }
  0x8b   : > { %v747_v61 = vsel %vm697_vm2, %v744_v27, %v746_v39  ;;  %v871_v8 = vadd.f32 %v746_v39, %v11092_v62  ;;  %v1452_v58 = vrot.slane %v1450_v43, 1  ;;  %vm419_vm1 = vcmp.lt.s32.totalorder %v383_v56, 32 }
  0x8c   : > { %11098 = vst [vmem:[#allocation10_spill] sm:$0xff] %v9387_v32  ;;  %11099 = vst [vmem:[#allocation22_spill] sm:$0xff] %v9393_v48  ;;  %7002 = vmatmul.mubr.bf16.gmra.mrb[16].mxu0 %v9387_v32  ;;  %v9399_v3 = vadd.f32 %v747_v61, %v8920_v52  ;;  %v1188_v25 = vsel %vm1152_vm3, %v9393_v48, 0.0  ;;  %vm402_vm8 = vcmp.ge.s32.totalorder %v384_v14, 0  ;;  %vm420_vm4 = vcmp.lt.s32.totalorder %v384_v14, 32  ;;  %v11103_v52 = vld [vmem:[#allocation14_spill] sm:$0xff] }
  0x8d   : > { %v1234_v19 = vpack.c.bf16 %v871_v8, %v871_v8  ;;  %vm437_vm6 = vmand %vm401_vm5, %vm419_vm1  ;;  %v1453_v46 = vor.u32 %v1452_v58, %v1448_v37 }
  0x8e   : > { %11100 = vst [vmem:[#allocation23_spill] sm:$0xff] %v9399_v3  ;;  %v1233_v55 = vpack.c.bf16 %v9399_v3, %v1188_v25  ;;  %v511_v27 = vsel %vm437_vm6, %v11101_v41, 0.0  ;;  %v512_v39 = vsel %vm437_vm6, %v11102_v57, 0.0  ;;  %v513_v36 = vsel %vm437_vm6, %v11103_v52, 0.0  ;;  %vm9413_vm7 = vmand %vm402_vm8, %vm420_vm4 }
  0x8f   : > { %v1467_v43 = vshll.u32 %v1234_v19, 16  ;;  %v565_v61 = vmul.f32 0.75, %v511_v27  ;;  %v566_v56 = vmul.f32 0.75, %v512_v39  ;;  %v9409_v26 = vsel %vm1350_vm0, %v1453_v46, %v1457_v49 }
  0x90   : > { %11104 = vst [vmem:[#allocation37_spill] sm:$0xff] %v9409_v26  ;;  %v1460_v62 = vshrl.u32 %v1233_v55, 16  ;;  %v1462_v8 = vshll.u32 %v1233_v55, 16  ;;  %v9411_v13 = vmul.f32 0.75, %v513_v36  ;;  %7145 = vmatprep.mubr.bf16.mxu1 %v9409_v26  ;;  %v619_v58 = vmul.f32 0.25, %v511_v27 }
  0x91   : > { %v1469_v14 = vrot.slane %v1467_v43, 1  ;;  %v620_v25 = vmul.f32 0.25, %v512_v39  ;;  %v1000_v19 = vrot.slane %v565_v61, 1  ;;  %v1001_v57 = vrot.slane %v566_v56, 1 }
  0x92   : > { %11105 = vst [vmem:[#allocation24_spill] sm:$0xff] %v9411_v13  ;;  %v1464_v41 = vrot.slane %v1462_v8, 1  ;;  %v10877_v52 = vrot.slane %v9411_v13, 1  ;;  %v9419_v49 = vmul.f32 0.25, %v513_v36  ;;  %v748_v46 = vrot.slane %v619_v58, 1 }
  0x93   : > { %v749_v55 = vrot.slane %v620_v25, 1  ;;  %v514_v45 = vsel %vm9413_vm7, %v11109_v30, 0.0  ;;  %v515_v26 = vsel %vm9413_vm7, %v11110_v18, 0.0  ;;  %v1002_v27 = vsel %vm697_vm2, %v1000_v19, %v1001_v57 }
  0x94   : > { %11108 = vst [vmem:[#allocation12_spill] sm:$0xff] %v9419_v49  ;;  %v1465_v43 = vor.u32 %v1464_v41, %v1460_v62  ;;  %v1004_v39 = vsel %vm697_vm2, %v1001_v57, %v10877_v52  ;;  %v751_v36 = vrot.slane %v9419_v49, 1  ;;  %v1124_v8 = vadd.f32 %v1002_v27, %v619_v58  ;;  %v250_v52 = vld [vmem:[%s8579_s23 + $0xb0] sm:$0xff] }
  0x95   : > { %v1125_v28 = vadd.f32 %v1004_v39, %v620_v25  ;;  %v750_v11 = vsel %vm697_vm2, %v748_v46, %v749_v55  ;;  %v516_v30 = vsel %vm9413_vm7, %v11111_v0, 0.0  ;;  %v568_v25 = vmul.f32 0.75, %v514_v45 }
  0x96   : > { %v9437_v34 = vsel %vm1350_vm0, %v1465_v43, %v1469_v14  ;;  %v752_v18 = vsel %vm697_vm2, %v749_v55, %v751_v36  ;;  %v9440_v62 = vadd.f32 %v750_v11, %v565_v61  ;;  %v874_v19 = vadd.f32 %v751_v36, %v9411_v13  ;;  %v249_v36 = vld [vmem:[%s8579_s23 + $0xa8] sm:$0xff]  ;;  %v251_v13 = vld [vmem:[%s8579_s23 + $0xb8] sm:$0x3] }
  0x97   : > { %11112 = vst [vmem:[#allocation13_spill] sm:$0xff] %v9437_v34  ;;  %7146 = vmatmul.mubr.bf16.gmra.mrb[16].mxu1 %v9437_v34  ;;  %v9444_v41 = vpack.c.bf16 %v1125_v28, %v1124_v8  ;;  %v9446_v58 = vadd.f32 %v752_v18, %v566_v56  ;;  %v569_v57 = vmul.f32 0.75, %v515_v26  ;;  %v9451_v14 = vmul.f32 0.75, %v516_v30 }
  0x98   : > { %v1191_v0 = vsel %vm1152_vm3, %v9440_v62, 0.0  ;;  %v1236_v37 = vpack.c.bf16 %v874_v19, %v874_v19  ;;  %v622_v11 = vmul.f32 0.25, %v514_v45  ;;  %v623_v28 = vmul.f32 0.25, %v515_v26 }
  0x99   : > { %11113 = vst [vmem:[#allocation14_spill] sm:$0xff] %v9444_v41  ;;  %11114 = vst [vmem:[#allocation15_spill] sm:$0xff] %v9451_v14  ;;  %7005 = vmatprep.mubr.bf16.mxu0 %v9444_v41  ;;  %v1235_v61 = vpack.c.bf16 %v9446_v58, %v1191_v0  ;;  %v1005_v46 = vrot.slane %v568_v25, 1  ;;  %v1006_v56 = vrot.slane %v569_v57, 1  ;;  %v10886_v43 = vrot.slane %v9451_v14, 1 }
  0x9a   : > { %v1479_v55 = vshll.u32 %v1236_v37, 16  ;;  %v9456_v27 = vmul.f32 0.25, %v516_v30  ;;  %v753_v39 = vrot.slane %v622_v11, 1  ;;  %v754_v45 = vrot.slane %v623_v28, 1 }
  0x9b   : > { %v1472_v8 = vshrl.u32 %v1235_v61, 16  ;;  %v1474_v18 = vshll.u32 %v1235_v61, 16  ;;  %v1007_v19 = vsel %vm697_vm2, %v1005_v46, %v1006_v56  ;;  %v1009_v26 = vsel %vm697_vm2, %v1006_v56, %v10886_v43 }
  0x9c   : > { %11115 = vst [vmem:[#allocation16_spill] sm:$0xff] %v9456_v27  ;;  %v1481_v34 = vrot.slane %v1479_v55, 1  ;;  %v1127_v0 = vadd.f32 %v1007_v19, %v622_v11  ;;  %v756_v37 = vrot.slane %v9456_v27, 1  ;;  %v1128_v30 = vadd.f32 %v1009_v26, %v623_v28 }
  0x9d   : > { %v1476_v49 = vrot.slane %v1474_v18, 1  ;;  %v755_v31 = vsel %vm697_vm2, %v753_v39, %v754_v45  ;;  %v9467_v50 = vmul.f32 0.25, %v249_v36  ;;  %v9473_v10 = vmul.f32 0.25, %v250_v52  ;;  %v11117_v18 = vld [vmem:[#allocation4_spill] sm:$0xff] }
  0x9e   : > { %v757_v61 = vsel %vm697_vm2, %v754_v45, %v756_v37  ;;  %v9470_v46 = vadd.f32 %v755_v31, %v568_v25  ;;  %v877_v55 = vadd.f32 %v756_v37, %v9451_v14  ;;  %v9475_v56 = vpack.c.bf16 %v1128_v30, %v1127_v0  ;;  %v11118_v25 = vld [vmem:[#allocation5_spill] sm:$0xff] }
  0x9f   : > { %v1477_v12 = vor.u32 %v1476_v49, %v1472_v8  ;;  %v9477_v11 = vadd.f32 %v757_v61, %v569_v57  ;;  %v9479_v19 = vmul.f32 0.25, %v251_v13  ;;  %v330_v31 = vadd.f32 %v9467_v50, %v11117_v18  ;;  %v11120_v57 = vld [vmem:[#allocation6_spill] sm:$0xff] }
  0xa0   : > { %11116 = vst [vmem:[#allocation17_spill] sm:$0xff] %v9475_v56  ;;  %v1194_v28 = vsel %vm1152_vm3, %v9470_v46, 0.0  ;;  %v1238_v39 = vpack.c.bf16 %v877_v55, %v877_v55  ;;  %v331_v45 = vadd.f32 %v9473_v10, %v11118_v25  ;;  %7006 = vmatmul.mubr.bf16.gmra.mrb[20].mxu0 %v9475_v56  ;;  %v385_v0 = vadd.s32 12, %v11097_v40  ;;  %v9515_v56 = vld [vmem:[%s8579_s23 + $0xc0] sm:$0xff] }
  0xa1   : > { %v9489_v26 = vsel %vm1350_vm0, %v1477_v12, %v1481_v34  ;;  %v1237_v49 = vpack.c.bf16 %v9477_v11, %v1194_v28  ;;  %v332_v8 = vadd.f32 %v9479_v19, %v11120_v57  ;;  %v9497_v30 = vmul.f32 0.75, %v249_v36  ;;  %v11121_v28 = vld [vmem:[#allocation7_spill] sm:$0xff]  ;;  %v11122_v57 = vld [vmem:[#allocation8_spill] sm:$0xff]  ;;  %v11123_v36 = vld [vmem:[#allocation9_spill] sm:$0xff] }
  0xa2   : > { %11119 = vst [vmem:[#allocation4_spill] sm:$0xff] %v9489_v26  ;;  %7149 = vmatprep.mubr.bf16.mxu1 %v9489_v26  ;;  %v1491_v37 = vshll.u32 %v1238_v39, 16  ;;  %v9499_v61 = vmul.f32 0.75, %v250_v52  ;;  %v9501_v55 = vmul.f32 0.75, %v251_v13  ;;  %vm403_vm9 = vcmp.ge.s32.totalorder %v385_v0, 0 }
  0xa3   : > { %v1484_v12 = vshrl.u32 %v1237_v49, 16  ;;  %v1486_v34 = vshll.u32 %v1237_v49, 16  ;;  %vm421_vm10 = vcmp.lt.s32.totalorder %v385_v0, 32  ;;  %v363_v25 = vadd.f32 %v11121_v28, %v9497_v30 }
  0xa4   : > { %v1493_v18 = vrot.slane %v1491_v37, 1  ;;  %vm439_vm11 = vmand %vm403_vm9, %vm421_vm10  ;;  %v364_v43 = vadd.f32 %v11122_v57, %v9499_v61  ;;  %v365_v39 = vadd.f32 %v11123_v36, %v9501_v55  ;;  %v386_v28 = vadd.s32 13, %v11097_v40 }
  0xa5   : > { %v1488_v52 = vrot.slane %v1486_v34, 1  ;;  %v517_v26 = vsel %vm439_vm11, %v330_v31, 0.0  ;;  %v518_v13 = vsel %vm439_vm11, %v331_v45, 0.0  ;;  %v519_v14 = vsel %vm439_vm11, %v332_v8, 0.0 }
  0xa6   : > { %v571_v27 = vmul.f32 0.75, %v517_v26  ;;  %v572_v49 = vmul.f32 0.75, %v518_v13  ;;  %v9509_v4 = vmul.f32 0.75, %v519_v14  ;;  %v625_v0 = vmul.f32 0.25, %v517_v26 }
  0xa7   : > { %v1489_v37 = vor.u32 %v1488_v52, %v1484_v12  ;;  %v626_v29 = vmul.f32 0.25, %v518_v13  ;;  %v9511_v38 = vmul.f32 0.25, %v519_v14  ;;  %vm404_vm12 = vcmp.ge.s32.totalorder %v386_v28, 0 }
  0xa8   : > { %11124 = vst [vmem:[#allocation5_spill] sm:$0xff] %v9509_v4  ;;  %v1010_v57 = vrot.slane %v571_v27, 1  ;;  %v1011_v41 = vrot.slane %v572_v49, 1  ;;  %v10905_v34 = vrot.slane %v9509_v4, 1  ;;  %v758_v31 = vrot.slane %v625_v0, 1 }
  0xa9   : > { %11125 = vst [vmem:[#allocation6_spill] sm:$0xff] %v9511_v38  ;;  %v9519_v45 = vsel %vm1350_vm0, %v1489_v37, %v1493_v18  ;;  %v759_v8 = vrot.slane %v626_v29, 1  ;;  %v761_v36 = vrot.slane %v9511_v38, 1  ;;  %vm422_vm13 = vcmp.lt.s32.totalorder %v386_v28, 32 }
  0xaa   : > { %11126 = vst [vmem:[#allocation7_spill] sm:$0xff] %v9519_v45  ;;  %7150 = vmatmul.mubr.bf16.gmra.mrb[20].mxu1 %v9519_v45  ;;  %v1012_v14 = vsel %vm697_vm2, %v1010_v57, %v1011_v41  ;;  %v1014_v26 = vsel %vm697_vm2, %v1011_v41, %v10905_v34  ;;  %v9528_v12 = vmul.f32 0.25, %v9515_v56  ;;  %vm440_vm14 = vmand %vm404_vm12, %vm422_vm13  ;;  %vm8499_vm7 = vmmov 1  }
  0xab   : > { %v1130_v52 = vadd.f32 %v1012_v14, %v625_v0  ;;  %v1131_v13 = vadd.f32 %v1014_v26, %v626_v29  ;;  %v760_v18 = vsel %vm697_vm2, %v758_v31, %v759_v8  ;;  %v762_v37 = vsel %vm697_vm2, %v759_v8, %v761_v36  ;;  %vm9640_vm9 = vmpackc.low %vm8499_vm7, %vm1152_vm3 }
  0xac   : > { %11127 = vst [vmem:[#allocation8_spill] sm:$0xff] %v9528_v12  ;;  %v9532_v38 = vadd.f32 %v760_v18, %v571_v27  ;;  %v9534_v45 = vadd.f32 %v762_v37, %v572_v49  ;;  %v880_v57 = vadd.f32 %v761_v36, %v9509_v4  ;;  %v520_v32 = vsel %vm440_vm14, %v363_v25, 0.0 }
  0xad   : > { %v9537_v7 = vpack.c.bf16 %v1131_v13, %v1130_v52  ;;  %v521_v41 = vsel %vm440_vm14, %v364_v43, 0.0  ;;  %v522_v28 = vsel %vm440_vm14, %v365_v39, 0.0  ;;  %v574_v34 = vmul.f32 0.75, %v520_v32 }
  0xae   : > { %v1197_v29 = vsel %vm1152_vm3, %v9532_v38, 0.0  ;;  %v1240_v0 = vpack.c.bf16 %v880_v57, %v880_v57  ;;  %v575_v31 = vmul.f32 0.75, %v521_v41  ;;  %v9542_v8 = vmul.f32 0.75, %v522_v28  ;;  %v253_v57 = vld [vmem:[%s8579_s23 + $0xc8] sm:$0xff] }
  0xaf   : > { %11128 = vst [vmem:[#allocation9_spill] sm:$0xff] %v9537_v7  ;;  %7009 = vmatprep.mubr.bf16.mxu0 %v9537_v7  ;;  %v1239_v27 = vpack.c.bf16 %v9534_v45, %v1197_v29  ;;  %v628_v49 = vmul.f32 0.25, %v520_v32  ;;  %v629_v25 = vmul.f32 0.25, %v521_v41  ;;  %v1015_v36 = vrot.slane %v574_v34, 1  ;;  %v254_v29 = vld [vmem:[%s8579_s23 + $0xd0] sm:$0x3] }
  0xb0   : > { %v1503_v43 = vshll.u32 %v1240_v0, 16  ;;  %v1016_v39 = vrot.slane %v575_v31, 1  ;;  %v10917_v14 = vrot.slane %v9542_v8, 1  ;;  %v9547_v26 = vmul.f32 0.25, %v522_v28 }
  0xb1   : > { %v1496_v52 = vshrl.u32 %v1239_v27, 16  ;;  %v1498_v13 = vshll.u32 %v1239_v27, 16  ;;  %v763_v18 = vrot.slane %v628_v49, 1  ;;  %v764_v37 = vrot.slane %v629_v25, 1 }
  0xb2   : > { %v1505_v4 = vrot.slane %v1503_v43, 1  ;;  %v1017_v7 = vsel %vm697_vm2, %v1015_v36, %v1016_v39  ;;  %v1019_v32 = vsel %vm697_vm2, %v1016_v39, %v10917_v14  ;;  %v766_v41 = vrot.slane %v9547_v26, 1 }
  0xb3   : > { %v1500_v0 = vrot.slane %v1498_v13, 1  ;;  %v1133_v44 = vadd.f32 %v1017_v7, %v628_v49  ;;  %v1134_v3 = vadd.f32 %v1019_v32, %v629_v25  ;;  %v765_v28 = vsel %vm697_vm2, %v763_v18, %v764_v37 }
  0xb4   : > { %v767_v27 = vsel %vm697_vm2, %v764_v37, %v766_v41  ;;  %v9558_v48 = vadd.f32 %v765_v28, %v574_v34  ;;  %v883_v43 = vadd.f32 %v766_v41, %v9542_v8  ;;  %v9561_v6 = vmul.f32 0.25, %v253_v57 }
  0xb5   : > { %v1501_v36 = vor.u32 %v1500_v0, %v1496_v52  ;;  %v9563_v22 = vpack.c.bf16 %v1134_v3, %v1133_v44  ;;  %v9565_v39 = vadd.f32 %v767_v27, %v575_v31  ;;  %v9567_v14 = vmul.f32 0.25, %v254_v29 }
  0xb6   : > { %11129 = vst [vmem:[#allocation56_spill] sm:$0xff] %v9561_v6  ;;  %v1200_v7 = vsel %vm1152_vm3, %v9558_v48, 0.0  ;;  %v1242_v49 = vpack.c.bf16 %v883_v43, %v883_v43  ;;  %v333_v34 = vadd.f32 %v9528_v12, %v9497_v30  ;;  %v334_v25 = vadd.f32 %v9561_v6, %v9499_v61 }
  0xb7   : > { %11130 = vst [vmem:[#allocation57_spill] sm:$0xff] %v9563_v22  ;;  %11131 = vst [vmem:[#allocation58_spill] sm:$0xff] %v9567_v14  ;;  %v9577_v13 = vsel %vm1350_vm0, %v1501_v36, %v1505_v4  ;;  %7010 = vmatmul.mubr.bf16.gmra.mrb[24].mxu0 %v9563_v22  ;;  %v1241_v44 = vpack.c.bf16 %v9565_v39, %v1200_v7  ;;  %v335_v3 = vadd.f32 %v9567_v14, %v9501_v55 }
  0xb8   : > { %11132 = vst [vmem:[#allocation59_spill] sm:$0xff] %v9577_v13  ;;  %v387_v31 = vadd.s32 14, %v11097_v40  ;;  %7153 = vmatprep.mubr.bf16.mxu1 %v9577_v13  ;;  %v1515_v52 = vshll.u32 %v1242_v49, 16  ;;  %v9586_v30 = vmul.f32 0.75, %v9515_v56  ;;  %v9588_v18 = vmul.f32 0.75, %v253_v57 }
  0xb9   : > { %v9590_v61 = vmul.f32 0.75, %v254_v29  ;;  %v1508_v4 = vshrl.u32 %v1241_v44, 16  ;;  %v1510_v37 = vshll.u32 %v1241_v44, 16 }
  0xba   : > { %vm405_vm15 = vcmp.ge.s32.totalorder %v387_v31, 0  ;;  %vm423_vm5 = vcmp.lt.s32.totalorder %v387_v31, 32  ;;  %v1517_v32 = vrot.slane %v1515_v52, 1  ;;  %v366_v55 = vadd.f32 %v9467_v50, %v9586_v30 }
  0xbb   : > { %11133 = vst [vmem:[#allocation60_spill] sm:$0xff] %v9590_v61  ;;  %vm441_vm1 = vmand %vm405_vm15, %vm423_vm5  ;;  %v367_v41 = vadd.f32 %v9473_v10, %v9588_v18  ;;  %v368_v56 = vadd.f32 %v9479_v19, %v9590_v61  ;;  %v1512_v0 = vrot.slane %v1510_v37, 1  ;;  %v388_v50 = vadd.s32 15, %v11097_v40  ;;  %v11137_v61 = vld [vmem:[#allocation48_spill] sm:$0xff] }
  0xbc   : > { %v523_v57 = vsel %vm441_vm1, %v333_v34, 0.0  ;;  %v524_v28 = vsel %vm441_vm1, %v334_v25, 0.0  ;;  %v525_v29 = vsel %vm441_vm1, %v335_v3, 0.0 }
  0xbd   : > { %v577_v27 = vmul.f32 0.75, %v523_v57  ;;  %v578_v43 = vmul.f32 0.75, %v524_v28  ;;  %v9598_v36 = vmul.f32 0.75, %v525_v29  ;;  %v631_v7 = vmul.f32 0.25, %v523_v57 }
  0xbe   : > { %v1513_v49 = vor.u32 %v1512_v0, %v1508_v4  ;;  %v632_v44 = vmul.f32 0.25, %v524_v28  ;;  %v9600_v31 = vmul.f32 0.25, %v525_v29  ;;  %vm406_vm6 = vcmp.ge.s32.totalorder %v388_v50, 0 }
  0xbf   : > { %v1020_v52 = vrot.slane %v577_v27, 1  ;;  %v1021_v10 = vrot.slane %v578_v43, 1  ;;  %v10927_v14 = vrot.slane %v9598_v36, 1  ;;  %v768_v19 = vrot.slane %v631_v7, 1 }
  0xc0   : > { %v9605_v34 = vsel %vm1350_vm0, %v1513_v49, %v1517_v32  ;;  %v769_v25 = vrot.slane %v632_v44, 1  ;;  %v771_v3 = vrot.slane %v9600_v31, 1  ;;  %vm424_vm8 = vcmp.lt.s32.totalorder %v388_v50, 32 }
  0xc1   : > { %11134 = vst [vmem:[#allocation61_spill] sm:$0xff] %v9605_v34  ;;  %7154 = vmatmul.mubr.bf16.gmra.mrb[24].mxu1 %v9605_v34  ;;  %v1022_v4 = vsel %vm697_vm2, %v1020_v52, %v1021_v10  ;;  %v1024_v37 = vsel %vm697_vm2, %v1021_v10, %v10927_v14  ;;  %vm442_vm4 = vmand %vm406_vm6, %vm424_vm8 }
  0xc2   : > { %v1136_v0 = vadd.f32 %v1022_v4, %v631_v7  ;;  %v1137_v57 = vadd.f32 %v1024_v37, %v632_v44  ;;  %v770_v28 = vsel %vm697_vm2, %v768_v19, %v769_v25  ;;  %v772_v32 = vsel %vm697_vm2, %v769_v25, %v771_v3 }
  0xc3   : > { %v884_v29 = vadd.f32 %v770_v28, %v577_v27  ;;  %v885_v49 = vadd.f32 %v772_v32, %v578_v43  ;;  %v886_v6 = vadd.f32 %v771_v3, %v9598_v36  ;;  %v526_v12 = vsel %vm442_vm4, %v366_v55, 0.0 }
  0xc4   : > { %v9616_v34 = vpack.c.bf16 %v1137_v57, %v1136_v0  ;;  %v527_v52 = vsel %vm442_vm4, %v367_v41, 0.0  ;;  %v528_v13 = vsel %vm442_vm4, %v368_v56, 0.0  ;;  %v580_v22 = vmul.f32 0.75, %v526_v12 }
  0xc5   : > { %v1203_v50 = vsel %vm1152_vm3, %v884_v29, 0.0  ;;  %v1244_v7 = vpack.c.bf16 %v886_v6, %v886_v6  ;;  %v581_v44 = vmul.f32 0.75, %v527_v52  ;;  %v9620_v10 = vmul.f32 0.75, %v528_v13 }
  0xc6   : > { %11135 = vst [vmem:[#allocation62_spill] sm:$0xff] %v9616_v34  ;;  %7013 = vmatprep.mubr.bf16.mxu0 %v9616_v34  ;;  %v1243_v19 = vpack.c.bf16 %v885_v49, %v1203_v50  ;;  %v634_v27 = vmul.f32 0.25, %v526_v12  ;;  %v635_v43 = vmul.f32 0.25, %v527_v52  ;;  %v1025_v25 = vrot.slane %v580_v22, 1 }
  0xc7   : > { %v1527_v3 = vshll.u32 %v1244_v7, 16  ;;  %v1026_v55 = vrot.slane %v581_v44, 1  ;;  %v1028_v4 = vrot.slane %v9620_v10, 1  ;;  %v9624_v41 = vmul.f32 0.25, %v528_v13 }
  0xc8   : > { %v1520_v56 = vshrl.u32 %v1243_v19, 16  ;;  %v1522_v37 = vshll.u32 %v1243_v19, 16  ;;  %v773_v0 = vrot.slane %v634_v27, 1  ;;  %v774_v57 = vrot.slane %v635_v43, 1 }
  0xc9   : > { %v1529_v6 = vrot.slane %v1527_v3, 1  ;;  %v1027_v28 = vsel %vm697_vm2, %v1025_v25, %v1026_v55  ;;  %v1029_v32 = vsel %vm697_vm2, %v1026_v55, %v1028_v4  ;;  %v776_v12 = vrot.slane %v9624_v41, 1  ;;  %v11136_v3 = vld [vmem:[#allocation45_spill] sm:$0xff] }
  0xca   : > { %v1524_v52 = vrot.slane %v1522_v37, 1  ;;  %v1139_v50 = vadd.f32 %v1027_v28, %v634_v27  ;;  %v1140_v7 = vadd.f32 %v1029_v32, %v635_v43  ;;  %v775_v14 = vsel %vm697_vm2, %v773_v0, %v774_v57  ;;  %v11272_v55 = vld [vmem:[#allocation29_spill] sm:$0xff] }
  0xcb   : > { %v777_v13 = vsel %vm697_vm2, %v774_v57, %v776_v12  ;;  %v9633_v34 = vadd.f32 %v775_v14, %v580_v22  ;;  %v889_v19 = vadd.f32 %v776_v12, %v9620_v10  ;;  %v6238_v25 = vpack.c.bf16 %v11137_v61, %v11136_v3  ;;  %v11157_v3 = vld [vmem:[#allocation19_spill] sm:$0xff] }
  0xcc   : > { %v1525_v27 = vor.u32 %v1524_v52, %v1520_v56  ;;  %v9644_v43 = vpack.c.bf16 %v1140_v7, %v1139_v50  ;;  %v9646_v37 = vadd.f32 %v777_v13, %v581_v44  ;;  %v9661_v44 = vpack.c.bf16 %v9446_v58, %v9440_v62 }
  0xcd   : > { %v1206_v22 = vsel %vm1152_vm3, %v9633_v34, 0.0  ;;  %v1246_v14 = vpack.c.bf16 %v889_v19, %v889_v19  ;;  %v9669_v32 = vpack.c.bf16 %v9534_v45, %v9532_v38  ;;  %v9673_v12 = vpack.c.bf16 %v9565_v39, %v9558_v48  ;;  %v11144_v48 = vld [vmem:[#allocation43_spill] sm:$0xff]  ;;  %v8406_v45 = vld [vmem:[%s10798_s1 + $0x98] sm:$0xff]  }
  0xce   : > { %v9652_v0 = vsel %vm1350_vm0, %v1525_v27, %v1529_v6  ;;  %7014 = vmatmul.mubr.bf16.gmra.mrb[28].mxu0 %v9644_v43  ;;  %v1245_v61 = vpack.c.bf16 %v9646_v37, %v1206_v22  ;;  %v9665_v6 = vpack.c.bf16 %v9477_v11, %v9470_v46  ;;  %v9675_v52 = vpack.c.bf16 %v885_v49, %v884_v29  ;;  %v8404_v46 = vld [vmem:[%s10798_s1 + $0x88] sm:$0xff]   ;;  %v9775_v49 = vld [vmem:[%s10798_s1 + $0xc0] sm:$0xff]  }
  0xcf   : > { %7157 = vmatprep.mubr.bf16.mxu1 %v9652_v0  ;;  %v1539_v57 = vshll.u32 %v1246_v14, 16  ;;  %7033 = vmatprep.mubr.msk.bf16.mxu0 %vm9640_vm9, %v6238_v25  ;;  %11141 = vst [vmem:[#allocation48_spill] sm:$0xff] %v9669_v32  ;;  %11142 = vst [vmem:[#allocation63_spill] sm:$0xff] %v9673_v12  ;;  %v9679_v58 = vpack.c.bf16 %v9102_v59, %v9095_v33  ;;  %v8405_v33 = vld [vmem:[%s10798_s1 + $0x90] sm:$0xff]   ;;  %v9701_v59 = vpack.c.bf16 %v9141_v21, %v9121_v42  ;;  %v8407_v21 = vld [vmem:[%s10798_s1 + $0xa0] sm:$0xff]  }
  0xd0   : > { %v1532_v56 = vshrl.u32 %v1245_v61, 16  ;;  %v1534_v28 = vshll.u32 %v1245_v61, 16  ;;  %11140 = vst [vmem:[#allocation45_spill] sm:$0xff] %v9665_v6  ;;  %11143 = vst [vmem:[#allocation64_spill] sm:$0xff] %v9675_v52  ;;  %v9705_v11 = vpack.c.bf16 %v9177_v60, %v9174_v1  ;;  %v9721_v42 = vpack.c.bf16 %v9222_v9, %v9213_v15  ;;  %v8408_v60 = vld [vmem:[%s10798_s1 + $0xa8] sm:$0xff]   ;;  %v8409_v9 = vld [vmem:[%s10798_s1 + $0xb0] sm:$0xff]  }
  0xd1   : > { %v1541_v7 = vrot.slane %v1539_v57, 1  ;;  %v9728_v1 = vpack.c.bf16 %v9274_v51, %v9263_v23  ;;  %v9743_v15 = vpack.c.bf16 %v9309_v17, %v9296_v2  ;;  %v9750_v23 = vpack.c.bf16 %v9364_v63, %v9349_v35  ;;  %v8410_v51 = vld [vmem:[%s10798_s1 + $0xb8] sm:$0xff]   ;;  %v11145_v2 = vld [vmem:[#allocation54_spill] sm:$0xff]  ;;  %v11146_v17 = vld [vmem:[#allocation31_spill] sm:$0xff] }
  0xd2   : > { %v1536_v50 = vrot.slane %v1534_v28, 1  ;;  %v11148_v63 = vld [vmem:[#allocation22_spill] sm:$0xff]  ;;  %v11149_v39 = vld [vmem:[#allocation23_spill] sm:$0xff]  ;;  %v11150_v13 = vrot.slane %v9598_v36, 1  ;;  %v11152_v36 = vld [vmem:[#allocation21_spill] sm:$0xff]  ;;  %v9805_v10 = vadd.s32 16, %v11035_v16 }
  0xd3   : > { %v9770_v29 = vpack.c.bf16 %v11149_v39, %v11148_v63  ;;  %v11158_v25 = vrot.slane %v11157_v3, 1  ;;  %v11159_v14 = vld [vmem:[#allocation17_spill] sm:$0xff]  ;;  %v1562_v57 = vshll.u32 %v11144_v48, 16  ;;  %v389_v39 = vadd.s32 16, %v11097_v40  ;;  %v11180_v40 = vld [vmem:[#allocation52_spill] sm:$0xff] }
  0xd4   : > { %v1537_v62 = vor.u32 %v1536_v50, %v1532_v56  ;;  %v9780_v19 = vadd.f32 %v11150_v13, %v9600_v31  ;;  %v11153_v31 = vld [vmem:[#allocation10_spill] sm:$0xff]  ;;  %11154 = vst [vmem:[#allocation43_spill] sm:$0xff] %v9805_v10  ;;  %vm1253_vm10 = vcmp.ne.s32.totalorder %v9805_v10, 16  ;;  %v11160_v61 = vld [vmem:[#allocation9_spill] sm:$0xff]  ;;  %v9843_v13 = vpack.c.bf16 %v9646_v37, %v9633_v34 }
  0xd5   : > { %v11161_v56 = vld [vmem:[#allocation50_spill] sm:$0xff]  ;;  %v11162_v28 = vld [vmem:[#allocation49_spill] sm:$0xff]  ;;  %vm407_vm11 = vcmp.ge.s32.totalorder %v389_v39, 0  ;;  %vm425_vm12 = vcmp.lt.s32.totalorder %v389_v39, 32 }
  0xd6   : > { %v9685_v38 = vsel %vm1350_vm0, %v1537_v62, %v1541_v7  ;;  %7034 = vmatmul.mubr.msk.bf16.vlgmr.msra.gmra.mrb[0].mxu0 %vm9640_vm9, %v9109_v47  ;;  %v11163_v50 = vrot.slane %v11162_v28, 1  ;;  %v11164_v62 = vld [vmem:[#allocation46_spill] sm:$0xff]  ;;  %11170 = vst [vmem:[#allocation23_spill] sm:$0xff] %v9843_v13  ;;  %v11171_v28 = vld [vmem:[#allocation60_spill] sm:$0xff]  ;;  %vm443_vm13 = vmand %vm407_vm11, %vm425_vm12 }
  0xd7   : > { %7158 = vmatmul.mubr.bf16.gmra.mrb[28].mxu1 %v9685_v38  ;;  %7066 = vmatpush3.bf16.msra.mxu0 %v9335_v24 }
  0xd8   : > { %7177 = vmatprep.mubr.bf16.mxu1 %v11144_v48  ;;  %7037 = vmatprep.mubr.msk.bf16.mxu0 %vm9640_vm9, %v9679_v58  ;;  %v1099_v7 = vadd.f32 %v11163_v50, %v11161_v56 }
  0xd9   : > { %7067 = vmatprep.subr.bf16.mxu0 %v8404_v46 }
  0xda   : > { %v1265_v56 = vsel %vm1253_vm10, %v1099_v7, 0.0 }
  0xdb   : > { %7068 = vmatpush3.bf16.msra.mxu0 %v8404_v46  ;;  %v1317_v7 = vpack.c.bf16 %v1265_v56, %v1265_v56 }
  0xdc   : > { %7069 = vmatprep.subr.bf16.mxu0 %v8405_v33 }
  0xde   : > { %7038 = vmatmul.mubr.msk.bf16.gmra.mrb[4].mxu0 %vm9640_vm9, %v9701_v59 }
  0xdf   : > { %7178 = vmatmul.mubr.bf16.vlgmr.msra.gmra.mrb[0].mxu1 %v9097_v53  ;;  %7041 = vmatprep.mubr.msk.bf16.mxu0 %vm9640_vm9, %v9705_v11 }
  0xe0   : > { %7210 = vmatpush3.bf16.msra.mxu1 %v9335_v24  ;;  %7181 = vmatprep.mubr.bf16.mxu1 %v9033_v54  ;;  %v11147_v24 = vrot.slane %v9542_v8, 1  ;;  %v9789_v8 = vadd.f32 %v1028_v4, %v9624_v41  ;;  %v11155_v4 = vld [vmem:[#allocation14_spill] sm:$0xff]  ;;  %v11156_v41 = vld [vmem:[#allocation44_spill] sm:$0xff] }
  0xe1   : > { %7211 = vmatprep.subr.bf16.mxu1 %v8404_v46  ;;  %7070 = vmatpush3.bf16.msra.mxu0 %v8405_v33  ;;  %v1096_v27 = vadd.f32 %v11158_v25, %v11156_v41 }
  0xe2   : > { %7071 = vmatprep.subr.bf16.mxu0 %v8406_v45  ;;  %v9766_v35 = vadd.f32 %v11147_v24, %v9547_v26  ;;  %v11151_v26 = vld [vmem:[#allocation28_spill] sm:$0xff] }
  0xe3   : > { %v1262_v22 = vsel %vm1253_vm10, %v1096_v27, 0.0  ;;  %v1560_v27 = vshrl.u32 %v11144_v48, 16  ;;  %v11173_v48 = vld [vmem:[#allocation57_spill] sm:$0xff] }
  0xe4   : > { %7212 = vmatpush3.bf16.msra.mxu1 %v8404_v46  ;;  %v11165_v46 = vld [vmem:[#allocation11_spill] sm:$0xff] }
  0xe5   : > { %7213 = vmatprep.subr.bf16.mxu1 %v8405_v33  ;;  %7072 = vmatpush3.bf16.msra.mxu0 %v8406_v45 }
  0xe6   : > { %7042 = vmatmul.mubr.msk.bf16.gmra.mrb[8].mxu0 %vm9640_vm9, %v9721_v42  ;;  %7073 = vmatprep.subr.bf16.mxu0 %v8407_v21 }
  0xe7   : > { %7182 = vmatmul.mubr.bf16.gmra.mrb[4].mxu1 %v9035_v5  ;;  %7045 = vmatprep.mubr.msk.bf16.mxu0 %vm9640_vm9, %v9728_v1 }
  0xe8   : > { %7185 = vmatprep.mubr.bf16.mxu1 %v9037_v20  ;;  %7214 = vmatpush3.bf16.msra.mxu1 %v8405_v33  ;;  %v11166_v33 = vrot.slane %v11165_v46, 1 }
  0xe9   : > { %7215 = vmatprep.subr.bf16.mxu1 %v8406_v45  ;;  %7074 = vmatpush3.bf16.msra.mxu0 %v8407_v21 }
  0xea   : > { %7075 = vmatprep.subr.bf16.mxu0 %v8408_v60 }
  0xec   : > { %7216 = vmatpush3.bf16.msra.mxu1 %v8406_v45  ;;  %v1102_v45 = vadd.f32 %v11166_v33, %v11164_v62  ;;  %v1574_v33 = vshll.u32 %v9097_v53, 16 }
  0xed   : > { %7217 = vmatprep.subr.bf16.mxu1 %v8407_v21  ;;  %7076 = vmatpush3.bf16.msra.mxu0 %v8408_v60 }
  0xee   : > { %7046 = vmatmul.mubr.msk.bf16.gmra.mrb[12].mxu0 %vm9640_vm9, %v9743_v15  ;;  %7077 = vmatprep.subr.bf16.mxu0 %v8409_v9  ;;  %v1268_v34 = vsel %vm1253_vm10, %v1102_v45, 0.0 }
  0xef   : > { %7186 = vmatmul.mubr.bf16.gmra.mrb[8].mxu1 %v11145_v2  ;;  %7049 = vmatprep.mubr.msk.bf16.mxu0 %vm9640_vm9, %v9750_v23  ;;  %v1319_v39 = vpack.c.bf16 %v1268_v34, %v1268_v34  ;;  %v1584_v34 = vshrl.u32 %v9033_v54, 16 }
  0xf0   : > { %7189 = vmatprep.mubr.bf16.mxu1 %v11146_v17  ;;  %7218 = vmatpush3.bf16.msra.mxu1 %v8407_v21  ;;  %v9830_v21 = vld [vmem:[%s8579_s23 + $0xd8] sm:$0xff] }
  0xf1   : > { %7219 = vmatprep.subr.bf16.mxu1 %v8408_v60  ;;  %7078 = vmatpush3.bf16.msra.mxu0 %v8409_v9  ;;  %11167 = vst [vmem:[#allocation54_spill] sm:$0xff] %v9830_v21  ;;  %v309_v24 = vmul.f32 0.25, %v9830_v21  ;;  %v1572_v21 = vshrl.u32 %v9097_v53, 16 }
  0xf2   : > { %7079 = vmatprep.subr.bf16.mxu0 %v8410_v51 }
  0xf3   : > { %v336_v3 = vadd.f32 %v309_v24, %v9586_v30  ;;  %v11176_v24 = vld [vmem:[#allocation62_spill] sm:$0xff] }
  0xf4   : > { %7220 = vmatpush3.bf16.msra.mxu1 %v8408_v60  ;;  %v9833_v60 = vld [vmem:[%s8579_s23 + $0xe0] sm:$0xff] }
  0xf5   : > { %7221 = vmatprep.subr.bf16.mxu1 %v8409_v9  ;;  %7080 = vmatpush3.bf16.msra.mxu0 %v8410_v51  ;;  %11168 = vst [vmem:[#allocation31_spill] sm:$0xff] %v9833_v60  ;;  %v310_v63 = vmul.f32 0.25, %v9833_v60  ;;  %v529_v37 = vsel %vm443_vm13, %v336_v3, 0.0 }
  0xf6   : > { %7050 = vmatmul.mubr.msk.bf16.gmra.mrb[16].mxu0 %vm9640_vm9, %v9770_v29  ;;  %7257 = vmatprep.subr.bf16.mxu0 %v9775_v49 }
  0xf7   : > { %7190 = vmatmul.mubr.bf16.gmra.mrb[12].mxu1 %v11151_v26  ;;  %7053 = vmatprep.mubr.msk.bf16.mxu0 %vm9640_vm9, %v9661_v44  ;;  %v337_v25 = vadd.f32 %v310_v63, %v9588_v18  ;;  %v9859_v18 = vmul.f32 0.25, %v529_v37 }
  0xf8   : > { %7193 = vmatprep.mubr.bf16.mxu1 %v11152_v36  ;;  %7222 = vmatpush3.bf16.msra.mxu1 %v8409_v9  ;;  %v1315_v9 = vpack.c.bf16 %v1262_v22, %v1262_v22  ;;  %v1564_v22 = vrot.slane %v1562_v57, 1  ;;  %v11174_v57 = vld [vmem:[#allocation51_spill] sm:$0xff] }
  0xf9   : > { %7223 = vmatprep.subr.bf16.mxu1 %v8410_v51  ;;  %v530_v46 = vsel %vm443_vm13, %v337_v25, 0.0  ;;  %11172 = vst [vmem:[#allocation28_spill] sm:$0xff] %v9859_v18  ;;  %v778_v3 = vrot.slane %v9859_v18, 1 }
  0xfa   : > { %v1567_v62 = vshll.u32 %v1315_v9, 16  ;;  %v9864_v9 = vmul.f32 0.25, %v530_v46  ;;  %v1565_v63 = vor.u32 %v1564_v22, %v1560_v27  ;;  %v9881_v22 = vmul.f32 0.75, %v529_v37  ;;  %v8412_v37 = vld [vmem:[%s10798_s1 + $0xc8] sm:$0xff]  }
  0xfb   : > { %v9884_v18 = vmul.f32 0.75, %v530_v46 }
  0xfc   : > { %7224 = vmatpush3.bf16.msra.mxu1 %v8410_v51  ;;  %v9836_v51 = vld [vmem:[%s8579_s23 + $0xe8] sm:$0x3]  ;;  %11175 = vst [vmem:[#allocation21_spill] sm:$0xff] %v9864_v9  ;;  %v1569_v25 = vrot.slane %v1567_v62, 1  ;;  %11183 = vst [vmem:[#allocation10_spill] sm:$0xff] %v9881_v22 }
  0xfd   : > { %7401 = vmatprep.subr.bf16.mxu1 %v9775_v49  ;;  %11169 = vst [vmem:[#allocation22_spill] sm:$0xff] %v9836_v51  ;;  %v311_v41 = vmul.f32 0.25, %v9836_v51  ;;  %v779_v51 = vrot.slane %v9864_v9, 1  ;;  %11184 = vst [vmem:[#allocation14_spill] sm:$0xff] %v9884_v18 }
  0xfe   : > { %7054 = vmatmul.mubr.msk.bf16.gmra.mrb[20].mxu0 %vm9640_vm9, %v9665_v6 }
  0xff   : > { %7194 = vmatmul.mubr.bf16.gmra.mrb[16].mxu1 %v11153_v31  ;;  %7057 = vmatprep.mubr.msk.bf16.mxu0 %vm9640_vm9, %v9669_v32  ;;  %v338_v50 = vadd.f32 %v311_v41, %v11171_v28  ;;  %v1586_v41 = vshll.u32 %v9033_v54, 16  ;;  %v11177_v28 = vld [vmem:[#allocation47_spill] sm:$0xff]  ;;  %v780_v62 = vsel %vm697_vm2, %v778_v3, %v779_v51 }
 0x100   : > { %7197 = vmatprep.mubr.bf16.mxu1 %v11155_v4 }
 0x101   : > { %v9857_v30 = vsel %vm443_vm13, %v338_v50, 0.0  ;;  %v11178_v50 = vld [vmem:[#allocation25_spill] sm:$0xff]  ;;  %v1588_v9 = vrot.slane %v1586_v41, 1 }
 0x102   : > { %v9867_v45 = vmul.f32 0.25, %v9857_v30 }
 0x104   : > { %v10943_v60 = vrot.slane %v9867_v45, 1 }
 0x106   : > { %7058 = vmatmul.mubr.msk.bf16.gmra.mrb[24].mxu0 %vm9640_vm9, %v9673_v12  ;;  %v9891_v12 = vadd.f32 %v780_v62, %v9881_v22  ;;  %v8413_v62 = vld [vmem:[%s10798_s1 + $0xd0] sm:$0xff]  }
 0x107   : > { %7198 = vmatmul.mubr.bf16.gmra.mrb[20].mxu1 %v11159_v14  ;;  %7061 = vmatprep.mubr.msk.bf16.mxu0 %vm9640_vm9, %v9675_v52 }
 0x108   : > { %7201 = vmatprep.mubr.bf16.mxu1 %v11160_v61  ;;  %11185 = vst [vmem:[#allocation44_spill] sm:$0xff] %v9891_v12 }
 0x10e   : > { %7062 = vmatmul.mubr.msk.bf16.gmra.mrb[28].mxu0 %vm9640_vm9, %v9843_v13  ;;  %v11181_v13 = vld [vmem:[#allocation27_spill] sm:$0xff] }
 0x10f   : > { %7202 = vmatmul.mubr.bf16.gmra.mrb[24].mxu1 %v11173_v48  ;;  %7081 = vmatprep.mubr.bf16.mxu0 %v11174_v57  ;;  %v11179_v57 = vrot.slane %v11178_v50, 1  ;;  %v11182_v52 = vrot.slane %v11181_v13, 1  ;;  %v1576_v50 = vrot.slane %v1574_v33, 1  ;;  %v1209_v33 = vsel %vm1152_vm3, %v9891_v12, 0.0  ;;  %v11190_v12 = vld [vmem:[#allocation30_spill] sm:$0xff] }
 0x110   : > { %7205 = vmatprep.mubr.bf16.mxu1 %v11176_v24 }
 0x111   : > { %v1105_v56 = vadd.f32 %v11179_v57, %v11177_v28  ;;  %v1108_v27 = vadd.f32 %v11182_v52, %v11180_v40  ;;  %v782_v28 = vsel %vm697_vm2, %v779_v51, %v10943_v60  ;;  %v1579_v57 = vshll.u32 %v1317_v7, 16  ;;  %v11187_v51 = vld [vmem:[#allocation53_spill] sm:$0xff] }
 0x112   : > { %v1570_v40 = vsel %vm1350_vm0, %v1565_v63, %v1569_v25  ;;  %v1591_v52 = vshll.u32 %v1319_v39, 16  ;;  %v9900_v46 = vadd.f32 %v782_v28, %v9884_v18  ;;  %v1598_v63 = vshll.u32 %v9035_v5, 16  ;;  %v11188_v25 = vld [vmem:[#allocation55_spill] sm:$0xff] }
 0x113   : > { %v1271_v13 = vsel %vm1253_vm10, %v1105_v56, 0.0  ;;  %v1274_v7 = vsel %vm1253_vm10, %v1108_v27, 0.0  ;;  %v1577_v41 = vor.u32 %v1576_v50, %v1572_v21  ;;  %v1581_v3 = vrot.slane %v1579_v57, 1  ;;  %v11193_v21 = vld [vmem:[#allocation33_spill] sm:$0xff] }
 0x114   : > { %11186 = vst [vmem:[#allocation19_spill] sm:$0xff] %v9900_v46  ;;  %v9912_v39 = vpack.c.bf16 %v9900_v46, %v1209_v33  ;;  %v1321_v56 = vpack.c.bf16 %v1271_v13, %v1271_v13  ;;  %v1610_v27 = vshll.u32 %v9037_v20, 16  ;;  %v1589_v28 = vor.u32 %v1588_v9, %v1584_v34 }
 0x115   : > { %v1593_v60 = vrot.slane %v1591_v52, 1  ;;  %v1323_v16 = vpack.c.bf16 %v1274_v7, %v1274_v7  ;;  %v11191_v33 = vrot.slane %v11190_v12, 1  ;;  %v11194_v50 = vrot.slane %v11193_v21, 1  ;;  %v11197_v7 = vld [vmem:[#allocation18_spill] sm:$0xff]  ;;  %v11199_v21 = vld [vmem:[#allocation39_spill] sm:$0xff] }
 0x116   : > { %7082 = vmatmul.mubr.bf16.vlgmr.msra.gmra.mrb[0].mxu0 %v11187_v51  ;;  %v11189_v51 = vld [vmem:[#allocation26_spill] sm:$0xff]  ;;  %v1596_v13 = vshrl.u32 %v9035_v5, 16  ;;  %v9927_v18 = vsel %vm1350_vm0, %v1577_v41, %v1581_v3  ;;  %v1603_v22 = vshll.u32 %v1321_v56, 16  ;;  %v1608_v9 = vshrl.u32 %v9037_v20, 16  ;;  %v8414_v41 = vld [vmem:[%s10798_s1 + $0xd8] sm:$0xff]  }
 0x117   : > { %7206 = vmatmul.mubr.bf16.gmra.mrb[28].mxu1 %v9644_v43  ;;  %7258 = vmatpush3.bf16.msra.mxu0 %v9775_v49  ;;  %v1111_v46 = vadd.f32 %v11191_v33, %v11189_v51  ;;  %11195 = vst [vmem:[#allocation17_spill] sm:$0xff] %v9927_v18  ;;  %v1612_v34 = vrot.slane %v1610_v27, 1  ;;  %v9931_v52 = vsel %vm1350_vm0, %v1589_v28, %v1593_v60  ;;  %v1615_v12 = vshll.u32 %v1323_v16, 16  ;;  %v11198_v56 = vld [vmem:[#allocation29_spill] sm:$0xff] }
 0x118   : > { %7225 = vmatprep.mubr.bf16.mxu1 %v1570_v40  ;;  %7085 = vmatprep.mubr.bf16.mxu0 %v11188_v25  ;;  %v11192_v40 = vld [vmem:[#allocation32_spill] sm:$0xff]  ;;  %v1600_v25 = vrot.slane %v1598_v63, 1  ;;  %11196 = vst [vmem:[#allocation9_spill] sm:$0xff] %v9931_v52  ;;  %v1605_v16 = vrot.slane %v1603_v22, 1  ;;  %v1622_v27 = vshll.u32 %v11145_v2, 16  ;;  %v8415_v22 = vld [vmem:[%s10798_s1 + $0xe0] sm:$0xff]  }
 0x119   : > { %7259 = vmatprep.subr.bf16.mxu0 %v8412_v37  ;;  %v1114_v57 = vadd.f32 %v11194_v50, %v11192_v40  ;;  %v1277_v51 = vsel %vm1253_vm10, %v1111_v46, 0.0  ;;  %v1613_v60 = vor.u32 %v1612_v34, %v1608_v9  ;;  %v1617_v28 = vrot.slane %v1615_v12, 1  ;;  %v11200_v50 = vld [vmem:[#allocation35_spill] sm:$0xff] }
 0x11a   : > { %v1601_v3 = vor.u32 %v1600_v25, %v1596_v13  ;;  %v1325_v46 = vpack.c.bf16 %v1277_v51, %v1277_v51  ;;  %v1634_v40 = vshll.u32 %v11146_v17, 16  ;;  %v11201_v25 = vrot.slane %v11200_v50, 1  ;;  %v11202_v13 = vld [vmem:[#allocation20_spill] sm:$0xff] }
 0x11b   : > { %7260 = vmatpush3.bf16.msra.mxu0 %v8412_v37  ;;  %v1280_v63 = vsel %vm1253_vm10, %v1114_v57, 0.0  ;;  %v1620_v9 = vshrl.u32 %v11145_v2, 16  ;;  %v1624_v12 = vrot.slane %v1622_v27, 1 }
 0x11c   : > { %7261 = vmatprep.subr.bf16.mxu0 %v8413_v62  ;;  %v1327_v33 = vpack.c.bf16 %v1280_v63, %v1280_v63  ;;  %v1117_v57 = vadd.f32 %v11201_v25, %v11199_v21  ;;  %v9958_v34 = vsel %vm1350_vm0, %v1601_v3, %v1605_v16  ;;  %v1627_v51 = vshll.u32 %v1325_v46, 16  ;;  %v11208_v16 = vld [vmem:[#allocation34_spill] sm:$0xff] }
 0x11d   : > { %11205 = vst [vmem:[#allocation50_spill] sm:$0xff] %v9958_v34  ;;  %v1632_v63 = vshrl.u32 %v11146_v17, 16  ;;  %v9962_v21 = vsel %vm1350_vm0, %v1613_v60, %v1617_v28  ;;  %v1636_v50 = vrot.slane %v1634_v40, 1  ;;  %v1646_v60 = vshll.u32 %v11151_v26, 16 }
 0x11e   : > { %7086 = vmatmul.mubr.bf16.gmra.mrb[4].mxu0 %v11197_v7  ;;  %11206 = vst [vmem:[#allocation49_spill] sm:$0xff] %v9962_v21  ;;  %v1283_v25 = vsel %vm1253_vm10, %v1117_v57, 0.0  ;;  %v1625_v46 = vor.u32 %v1624_v12, %v1620_v9  ;;  %v1629_v27 = vrot.slane %v1627_v51, 1  ;;  %v11213_v7 = vld [vmem:[#allocation24_spill] sm:$0xff]  ;;  %v1644_v9 = vshrl.u32 %v11151_v26, 16 }
 0x11f   : > { %7226 = vmatmul.mubr.bf16.vlgmr.msra.gmra.mrb[0].mxu1 %v9927_v18  ;;  %7089 = vmatprep.mubr.bf16.mxu0 %v11198_v56  ;;  %v1329_v28 = vpack.c.bf16 %v1283_v25, %v1283_v25  ;;  %v11214_v32 = vrot.slane %v11213_v7, 1  ;;  %v1648_v12 = vrot.slane %v1646_v60, 1  ;;  %v11217_v25 = vld [vmem:[#allocation42_spill] sm:$0xff] }
 0x120   : > { %7402 = vmatpush3.bf16.msra.mxu1 %v9775_v49  ;;  %7229 = vmatprep.mubr.bf16.mxu1 %v9931_v52  ;;  %v11203_v49 = vld [vmem:[#allocation36_spill] sm:$0xff]  ;;  %v9988_v51 = vsel %vm1350_vm0, %v1625_v46, %v1629_v27  ;;  %v1670_v27 = vshll.u32 %v11153_v31, 16 }
 0x121   : > { %7403 = vmatprep.subr.bf16.mxu1 %v8412_v37  ;;  %7262 = vmatpush3.bf16.msra.mxu0 %v8413_v62  ;;  %v11204_v18 = vrot.slane %v11203_v49, 1  ;;  %v11209_v49 = vld [vmem:[#allocation41_spill] sm:$0xff]  ;;  %11215 = vst [vmem:[#allocation46_spill] sm:$0xff] %v9988_v51 }
 0x122   : > { %7263 = vmatprep.subr.bf16.mxu0 %v8414_v41 }
 0x123   : > { %v1120_v52 = vadd.f32 %v11204_v18, %v11202_v13  ;;  %v1639_v18 = vshll.u32 %v1327_v33, 16  ;;  %v11207_v13 = vld [vmem:[#allocation40_spill] sm:$0xff]  ;;  %v1658_v33 = vshll.u32 %v11152_v36, 16 }
 0x124   : > { %7404 = vmatpush3.bf16.msra.mxu1 %v8412_v37  ;;  %v8416_v37 = vld [vmem:[%s10798_s1 + $0xe8] sm:$0xff]  }
 0x125   : > { %7405 = vmatprep.subr.bf16.mxu1 %v8413_v62  ;;  %7264 = vmatpush3.bf16.msra.mxu0 %v8414_v41  ;;  %v1286_v3 = vsel %vm1253_vm10, %v1120_v52, 0.0  ;;  %v1637_v52 = vor.u32 %v1636_v50, %v1632_v63  ;;  %v1641_v40 = vrot.slane %v1639_v18, 1  ;;  %v1651_v63 = vshll.u32 %v1329_v28, 16 }
 0x126   : > { %7090 = vmatmul.mubr.bf16.gmra.mrb[8].mxu0 %v11207_v13  ;;  %7265 = vmatprep.subr.bf16.mxu0 %v8415_v22  ;;  %v1331_v57 = vpack.c.bf16 %v1286_v3, %v1286_v3  ;;  %v11210_v13 = vld [vmem:[#allocation38_spill] sm:$0xff]  ;;  %v1660_v50 = vrot.slane %v1658_v33, 1  ;;  %v1649_v3 = vor.u32 %v1648_v12, %v1644_v9  ;;  %v1682_v33 = vshll.u32 %v11155_v4, 16  ;;  %v11223_v12 = vld [vmem:[#allocation5_spill] sm:$0xff] }
 0x127   : > { %7230 = vmatmul.mubr.bf16.gmra.mrb[4].mxu1 %v9958_v34  ;;  %7093 = vmatprep.mubr.bf16.mxu0 %v11208_v16  ;;  %v11211_v56 = vrot.slane %v11210_v13, 1  ;;  %v11212_v16 = vld [vmem:[#allocation12_spill] sm:$0xff]  ;;  %v9992_v18 = vsel %vm1350_vm0, %v1637_v52, %v1641_v40  ;;  %v11220_v40 = vld [vmem:[#allocation15_spill] sm:$0xff]  ;;  %v11222_v9 = vld [vmem:[#allocation6_spill] sm:$0xff] }
 0x128   : > { %7233 = vmatprep.mubr.bf16.mxu1 %v9962_v21  ;;  %7406 = vmatpush3.bf16.msra.mxu1 %v8413_v62  ;;  %v1126_v6 = vadd.f32 %v11214_v32, %v11212_v16  ;;  %v8417_v62 = vld [vmem:[%s10798_s1 + $0xf0] sm:$0xff]   ;;  %11216 = vst [vmem:[#allocation11_spill] sm:$0xff] %v9992_v18  ;;  %v1663_v32 = vshll.u32 %v1331_v57, 16  ;;  %v11218_v16 = vld [vmem:[#allocation37_spill] sm:$0xff]  ;;  %v11221_v57 = vrot.slane %v11220_v40, 1 }
 0x129   : > { %7407 = vmatprep.subr.bf16.mxu1 %v8414_v41  ;;  %v1123_v34 = vadd.f32 %v11211_v56, %v11209_v49  ;;  %7266 = vmatpush3.bf16.msra.mxu0 %v8415_v22  ;;  %v1656_v56 = vshrl.u32 %v11152_v36, 16  ;;  %v11219_v52 = vld [vmem:[#allocation16_spill] sm:$0xff] }
 0x12a   : > { %7267 = vmatprep.subr.bf16.mxu0 %v8416_v37  ;;  %v1292_v13 = vsel %vm1253_vm10, %v1126_v6, 0.0  ;;  %v1665_v28 = vrot.slane %v1663_v32, 1  ;;  %v1129_v49 = vadd.f32 %v11221_v57, %v11219_v52  ;;  %v11227_v57 = vld [vmem:[#allocation13_spill] sm:$0xff] }
 0x12b   : > { %v1289_v7 = vsel %vm1253_vm10, %v1123_v34, 0.0  ;;  %v1653_v34 = vrot.slane %v1651_v63, 1  ;;  %v1661_v60 = vor.u32 %v1660_v50, %v1656_v56  ;;  %v1335_v6 = vpack.c.bf16 %v1292_v13, %v1292_v13  ;;  %v10016_v63 = vld [vmem:[%s10798_s1 + $0x100] sm:$0xff]  }
 0x12c   : > { %7408 = vmatpush3.bf16.msra.mxu1 %v8414_v41  ;;  %v8418_v41 = vld [vmem:[%s10798_s1 + $0xf8] sm:$0xff]   ;;  %v1333_v46 = vpack.c.bf16 %v1289_v7, %v1289_v7  ;;  %v1672_v50 = vrot.slane %v1670_v27, 1  ;;  %v1680_v7 = vshrl.u32 %v11155_v4, 16  ;;  %v1295_v40 = vsel %vm1253_vm10, %v1129_v49, 0.0 }
 0x12d   : > { %7409 = vmatprep.subr.bf16.mxu1 %v8415_v22  ;;  %7268 = vmatpush3.bf16.msra.mxu0 %v8416_v37  ;;  %v10020_v56 = vsel %vm1350_vm0, %v1649_v3, %v1653_v34  ;;  %v10024_v13 = vsel %vm1350_vm0, %v1661_v60, %v1665_v28  ;;  %v1687_v52 = vshll.u32 %v1335_v6, 16  ;;  %v1694_v27 = vshll.u32 %v11159_v14, 16 }
 0x12e   : > { %7094 = vmatmul.mubr.bf16.gmra.mrb[12].mxu0 %v11217_v25  ;;  %7269 = vmatprep.subr.bf16.mxu0 %v8417_v62  ;;  %11225 = vst [vmem:[#allocation60_spill] sm:$0xff] %v10020_v56  ;;  %v1675_v32 = vshll.u32 %v1333_v46, 16  ;;  %11226 = vst [vmem:[#allocation57_spill] sm:$0xff] %v10024_v13  ;;  %v1337_v46 = vpack.c.bf16 %v1295_v40, %v1295_v40  ;;  %v1706_v49 = vshll.u32 %v11160_v61, 16 }
 0x12f   : > { %7234 = vmatmul.mubr.bf16.gmra.mrb[8].mxu1 %v9988_v51  ;;  %7097 = vmatprep.mubr.bf16.mxu0 %v11218_v16  ;;  %v11224_v51 = vrot.slane %v11223_v12, 1  ;;  %v1689_v6 = vrot.slane %v1687_v52, 1  ;;  %v1696_v12 = vrot.slane %v1694_v27, 1  ;;  %v1304_v52 = vsel %vm1253_vm10, %v9780_v19, 0.0 }
 0x130   : > { %7237 = vmatprep.mubr.bf16.mxu1 %v9992_v18  ;;  %7410 = vmatpush3.bf16.msra.mxu1 %v8415_v22  ;;  %v1668_v22 = vshrl.u32 %v11153_v31, 16  ;;  %v1677_v60 = vrot.slane %v1675_v32, 1  ;;  %v1343_v27 = vpack.c.bf16 %v1304_v52, %v1304_v52 }
 0x131   : > { %7411 = vmatprep.subr.bf16.mxu1 %v8416_v37  ;;  %7270 = vmatpush3.bf16.msra.mxu0 %v8417_v62  ;;  %v1132_v18 = vadd.f32 %v11224_v51, %v11222_v9  ;;  %v1684_v51 = vrot.slane %v1682_v33, 1 }
 0x132   : > { %7271 = vmatprep.subr.bf16.mxu0 %v8418_v41  ;;  %v1673_v34 = vor.u32 %v1672_v50, %v1668_v22  ;;  %v1704_v22 = vshrl.u32 %v11160_v61, 16 }
 0x133   : > { %v1298_v3 = vsel %vm1253_vm10, %v1132_v18, 0.0  ;;  %v1685_v28 = vor.u32 %v1684_v51, %v1680_v7  ;;  %v1692_v18 = vshrl.u32 %v11159_v14, 16  ;;  %v1301_v7 = vsel %vm1253_vm10, %v9766_v35, 0.0  ;;  %v11231_v51 = vld [vmem:[#allocation7_spill] sm:$0xff] }
 0x134   : > { %7412 = vmatpush3.bf16.msra.mxu1 %v8416_v37  ;;  %v11228_v37 = vld [vmem:[#allocation4_spill] sm:$0xff]  ;;  %v1339_v33 = vpack.c.bf16 %v1298_v3, %v1298_v3  ;;  %v10039_v9 = vsel %vm1350_vm0, %v1673_v34, %v1677_v60  ;;  %v1341_v34 = vpack.c.bf16 %v1301_v7, %v1301_v7  ;;  %v1718_v60 = vshll.u32 %v11173_v48, 16 }
 0x135   : > { %7413 = vmatprep.subr.bf16.mxu1 %v8417_v62  ;;  %7272 = vmatpush3.bf16.msra.mxu0 %v8418_v41  ;;  %11229 = vst [vmem:[#allocation51_spill] sm:$0xff] %v10039_v9  ;;  %v10043_v50 = vsel %vm1350_vm0, %v1685_v28, %v1689_v6  ;;  %v1697_v40 = vor.u32 %v1696_v12, %v1692_v18  ;;  %v1730_v28 = vshll.u32 %v11176_v24, 16  ;;  %v1716_v6 = vshrl.u32 %v11173_v48, 16 }
 0x136   : > { %7098 = vmatmul.mubr.bf16.gmra.mrb[16].mxu0 %v11227_v57  ;;  %7305 = vmatprep.subr.bf16.mxu0 %v10016_v63  ;;  %11230 = vst [vmem:[#allocation62_spill] sm:$0xff] %v10043_v50  ;;  %v1711_v32 = vshll.u32 %v1339_v33, 16  ;;  %v1720_v33 = vrot.slane %v1718_v60, 1  ;;  %v1735_v12 = vshll.u32 %v1343_v27, 16  ;;  %v1740_v60 = vshrl.u32 %v9644_v43, 16 }
 0x137   : > { %7238 = vmatmul.mubr.bf16.gmra.mrb[12].mxu1 %v10020_v56  ;;  %7101 = vmatprep.mubr.bf16.mxu0 %v11228_v37  ;;  %v1699_v56 = vshll.u32 %v1337_v46, 16  ;;  %v10079_v27 = vmul.f32 0.75, %v9857_v30 }
 0x138   : > { %7241 = vmatprep.mubr.bf16.mxu1 %v10024_v13  ;;  %7414 = vmatpush3.bf16.msra.mxu1 %v8417_v62  ;;  %v1708_v62 = vrot.slane %v1706_v49, 1  ;;  %v1713_v46 = vrot.slane %v1711_v32, 1  ;;  %v1723_v49 = vshll.u32 %v1341_v34, 16  ;;  %v1742_v32 = vshll.u32 %v9644_v43, 16 }
 0x139   : > { %7415 = vmatprep.subr.bf16.mxu1 %v8418_v41  ;;  %v1701_v3 = vrot.slane %v1699_v56, 1  ;;  %v1732_v56 = vrot.slane %v1730_v28, 1  ;;  %v1721_v7 = vor.u32 %v1720_v33, %v1716_v6  ;;  %v1737_v34 = vrot.slane %v1735_v12, 1 }
 0x13a   : > { %v1709_v35 = vor.u32 %v1708_v62, %v1704_v22  ;;  %v1307_v22 = vsel %vm1253_vm10, %v9789_v8, 0.0  ;;  %v11235_v62 = vld [vmem:[#allocation61_spill] sm:$0xff]  ;;  %v1725_v52 = vrot.slane %v1723_v49, 1  ;;  %v11237_v6 = vrot.slane %v9867_v45, 1 }
 0x13b   : > { %v10060_v19 = vsel %vm1350_vm0, %v1697_v40, %v1701_v3  ;;  %v1345_v40 = vpack.c.bf16 %v1307_v22, %v1307_v22  ;;  %v2994_v12 = vshll.u32 %v9912_v39, 16 }
 0x13c   : > { %7416 = vmatpush3.bf16.msra.mxu1 %v8418_v41  ;;  %v11232_v41 = vld [vmem:[#allocation59_spill] sm:$0xff]  ;;  %11233 = vst [vmem:[#allocation47_spill] sm:$0xff] %v10060_v19  ;;  %v10064_v18 = vsel %vm1350_vm0, %v1709_v35, %v1713_v46  ;;  %v1744_v35 = vrot.slane %v1742_v32, 1  ;;  %v10076_v8 = vsel %vm1350_vm0, %v1721_v7, %v1725_v52 }
 0x13d   : > { %7449 = vmatprep.subr.bf16.mxu1 %v10016_v63  ;;  %11234 = vst [vmem:[#allocation25_spill] sm:$0xff] %v10064_v18  ;;  %11236 = vst [vmem:[#allocation52_spill] sm:$0xff] %v10076_v8  ;;  %v1747_v46 = vshll.u32 %v1345_v40, 16  ;;  %v2996_v22 = vrot.slane %v2994_v12, 1  ;;  %v11243_v12 = vld [vmem:[#allocation10_spill] sm:$0xff] }
 0x13e   : > { %7102 = vmatmul.mubr.bf16.gmra.mrb[20].mxu0 %v11231_v51  ;;  %v1745_v33 = vor.u32 %v1744_v35, %v1740_v60  ;;  %v8423_v60 = vld [vmem:[%s10798_s1 + $0x120] sm:$0xff]   ;;  %v8425_v35 = vld [vmem:[%s10798_s1 + $0x130] sm:$0xff]  }
 0x13f   : > { %7242 = vmatmul.mubr.bf16.gmra.mrb[16].mxu1 %v10039_v9  ;;  %7105 = vmatprep.mubr.bf16.mxu0 %v11232_v41  ;;  %v1728_v9 = vshrl.u32 %v11176_v24, 16  ;;  %v1749_v30 = vrot.slane %v1747_v46, 1  ;;  %v8426_v46 = vld [vmem:[%s10798_s1 + $0x138] sm:$0xff]  }
 0x140   : > { %7245 = vmatprep.mubr.bf16.mxu1 %v10043_v50 }
 0x141   : > { %v1733_v3 = vor.u32 %v1732_v56, %v1728_v9  ;;  %v892_v9 = vadd.f32 %v11237_v6, %v10079_v27  ;;  %v2992_v56 = vshrl.u32 %v9912_v39, 16  ;;  %v10096_v7 = vsel %vm1350_vm0, %v1745_v33, %v1749_v30  ;;  %v8421_v39 = vld [vmem:[%s10798_s1 + $0x110] sm:$0xff]   ;;  %v8427_v6 = vld [vmem:[%s10798_s1 + $0x140] sm:$0xff]   ;;  %v11240_v30 = vld [vmem:[#allocation63_spill] sm:$0xff] }
 0x142   : > { %v11239_v33 = vld [vmem:[#allocation48_spill] sm:$0xff] }
 0x143   : > { %v10082_v28 = vsel %vm1350_vm0, %v1733_v3, %v1737_v34  ;;  %v1248_v49 = vpack.c.bf16 %v892_v9, %v892_v9  ;;  %v2997_v52 = vor.u32 %v2996_v22, %v2992_v56  ;;  %v8420_v3 = vld [vmem:[%s10798_s1 + $0x108] sm:$0xff]   ;;  %v8422_v34 = vld [vmem:[%s10798_s1 + $0x118] sm:$0xff]   ;;  %v1030_v22 = vrot.slane %v11243_v12, 1 }
 0x144   : > { %v11238_v9 = vld [vmem:[#allocation45_spill] sm:$0xff]  ;;  %v11242_v56 = vld [vmem:[#allocation23_spill] sm:$0xff] }
 0x145   : > { %v2999_v32 = vshll.u32 %v1248_v49, 16  ;;  %v11241_v49 = vld [vmem:[#allocation64_spill] sm:$0xff]  ;;  %v11248_v12 = vld [vmem:[#allocation21_spill] sm:$0xff] }
 0x146   : > { %7106 = vmatmul.mubr.bf16.gmra.mrb[24].mxu0 %v11235_v62 }
 0x147   : > { %7246 = vmatmul.mubr.bf16.gmra.mrb[20].mxu1 %v10060_v19  ;;  %7109 = vmatprep.mubr.bf16.mxu0 %v9652_v0  ;;  %v3001_v40 = vrot.slane %v2999_v32, 1  ;;  %v11244_v32 = vld [vmem:[#allocation14_spill] sm:$0xff] }
 0x148   : > { %7249 = vmatprep.mubr.bf16.mxu1 %v10064_v18 }
 0x14e   : > { %7110 = vmatmul.mubr.bf16.gmra.mrb[28].mxu0 %v9685_v38 }
 0x14f   : > { %7250 = vmatmul.mubr.bf16.gmra.mrb[24].mxu1 %v10076_v8  ;;  %7273 = vmatprep.mubr.msk.bf16.mxu0 %vm9640_vm9, %v9109_v47  ;;  %v10105_v47 = vsel %vm1350_vm0, %v2997_v52, %v3001_v40  ;;  %v1031_v52 = vrot.slane %v11244_v32, 1  ;;  %v10966_v40 = vrot.slane %v10079_v27, 1 }
 0x150   : > { %7253 = vmatprep.mubr.bf16.mxu1 %v10082_v28 }
 0x156   : > { %7274 = vmatmul.mubr.msk.bf16.vlgmr.msra.gmra.mrb[0].mxu0 %vm9640_vm9, %v9679_v58 }
 0x157   : > { %7254 = vmatmul.mubr.bf16.gmra.mrb[28].mxu1 %v10096_v7  ;;  %7306 = vmatpush3.bf16.msra.mxu0 %v10016_v63 }
 0x158   : > { %7417 = vmatprep.mubr.bf16.mxu1 %v9097_v53  ;;  %7277 = vmatprep.mubr.msk.bf16.mxu0 %vm9640_vm9, %v9701_v59 }
 0x159   : > { %7307 = vmatprep.subr.bf16.mxu0 %v8420_v3 }
 0x15b   : > { %7308 = vmatpush3.bf16.msra.mxu0 %v8420_v3 }
 0x15c   : > { %7309 = vmatprep.subr.bf16.mxu0 %v8421_v39 }
 0x15e   : > { %7278 = vmatmul.mubr.msk.bf16.gmra.mrb[4].mxu0 %vm9640_vm9, %v9705_v11 }
 0x15f   : > { %7418 = vmatmul.mubr.bf16.vlgmr.msra.gmra.mrb[0].mxu1 %v9033_v54  ;;  %7281 = vmatprep.mubr.msk.bf16.mxu0 %vm9640_vm9, %v9721_v42 }
 0x160   : > { %7450 = vmatpush3.bf16.msra.mxu1 %v10016_v63  ;;  %7421 = vmatprep.mubr.bf16.mxu1 %v9035_v5  ;;  %v8424_v63 = vld [vmem:[%s10798_s1 + $0x128] sm:$0xff]  }
 0x161   : > { %7451 = vmatprep.subr.bf16.mxu1 %v8420_v3  ;;  %7310 = vmatpush3.bf16.msra.mxu0 %v8421_v39 }
 0x162   : > { %7311 = vmatprep.subr.bf16.mxu0 %v8422_v34 }
 0x164   : > { %7452 = vmatpush3.bf16.msra.mxu1 %v8420_v3  ;;  %v11245_v3 = vld [vmem:[#allocation44_spill] sm:$0xff] }
 0x165   : > { %7453 = vmatprep.subr.bf16.mxu1 %v8421_v39  ;;  %7312 = vmatpush3.bf16.msra.mxu0 %v8422_v34 }
 0x166   : > { %7282 = vmatmul.mubr.msk.bf16.gmra.mrb[8].mxu0 %vm9640_vm9, %v9728_v1  ;;  %7313 = vmatprep.subr.bf16.mxu0 %v8423_v60 }
 0x167   : > { %7422 = vmatmul.mubr.bf16.gmra.mrb[4].mxu1 %v9037_v20  ;;  %7285 = vmatprep.mubr.msk.bf16.mxu0 %vm9640_vm9, %v9743_v15 }
 0x168   : > { %7425 = vmatprep.mubr.bf16.mxu1 %v11145_v2  ;;  %7454 = vmatpush3.bf16.msra.mxu1 %v8421_v39  ;;  %v11246_v39 = vld [vmem:[#allocation19_spill] sm:$0xff] }
 0x169   : > { %7455 = vmatprep.subr.bf16.mxu1 %v8422_v34  ;;  %7314 = vmatpush3.bf16.msra.mxu0 %v8423_v60 }
 0x16a   : > { %7315 = vmatprep.subr.bf16.mxu0 %v8424_v63 }
 0x16c   : > { %7456 = vmatpush3.bf16.msra.mxu1 %v8422_v34  ;;  %v10188_v34 = vpack.c.bf16 %v11246_v39, %v11245_v3  ;;  %v8430_v39 = vld [vmem:[%s10798_s1 + $0x158] sm:$0xff]  }
 0x16d   : > { %7457 = vmatprep.subr.bf16.mxu1 %v8423_v60  ;;  %7316 = vmatpush3.bf16.msra.mxu0 %v8424_v63 }
 0x16e   : > { %7286 = vmatmul.mubr.msk.bf16.gmra.mrb[12].mxu0 %vm9640_vm9, %v9750_v23  ;;  %7317 = vmatprep.subr.bf16.mxu0 %v8425_v35 }
 0x16f   : > { %7426 = vmatmul.mubr.bf16.gmra.mrb[8].mxu1 %v11146_v17  ;;  %7289 = vmatprep.mubr.msk.bf16.mxu0 %vm9640_vm9, %v9770_v29 }
 0x170   : > { %7429 = vmatprep.mubr.bf16.mxu1 %v11151_v26  ;;  %7458 = vmatpush3.bf16.msra.mxu1 %v8423_v60  ;;  %v1032_v60 = vsel %vm697_vm2, %v1030_v22, %v1031_v52  ;;  %v8428_v22 = vld [vmem:[%s10798_s1 + $0x148] sm:$0xff]  }
 0x171   : > { %7459 = vmatprep.subr.bf16.mxu1 %v8424_v63  ;;  %7318 = vmatpush3.bf16.msra.mxu0 %v8425_v35 }
 0x172   : > { %7319 = vmatprep.subr.bf16.mxu0 %v8426_v46 }
 0x174   : > { %7460 = vmatpush3.bf16.msra.mxu1 %v8424_v63  ;;  %v1034_v63 = vsel %vm697_vm2, %v1031_v52, %v10966_v40  ;;  %v11249_v52 = vld [vmem:[#allocation53_spill] sm:$0xff]  ;;  %v11254_v40 = vld [vmem:[#allocation34_spill] sm:$0xff] }
 0x175   : > { %7461 = vmatprep.subr.bf16.mxu1 %v8425_v35  ;;  %7320 = vmatpush3.bf16.msra.mxu0 %v8426_v46  ;;  %v1143_v32 = vadd.f32 %v1034_v63, %v11248_v12  ;;  %v11251_v63 = vld [vmem:[#allocation18_spill] sm:$0xff]  ;;  %v11253_v12 = vld [vmem:[#allocation40_spill] sm:$0xff] }
 0x176   : > { %7290 = vmatmul.mubr.msk.bf16.gmra.mrb[16].mxu0 %vm9640_vm9, %v9661_v44  ;;  %7353 = vmatprep.subr.bf16.mxu0 %v8427_v6 }
 0x177   : > { %7430 = vmatmul.mubr.bf16.gmra.mrb[12].mxu1 %v11152_v36  ;;  %7293 = vmatprep.mubr.msk.bf16.mxu0 %vm9640_vm9, %v11238_v9 }
 0x178   : > { %7433 = vmatprep.mubr.bf16.mxu1 %v11153_v31  ;;  %7462 = vmatpush3.bf16.msra.mxu1 %v8425_v35  ;;  %v11247_v35 = vld [vmem:[#allocation28_spill] sm:$0xff] }
 0x179   : > { %7463 = vmatprep.subr.bf16.mxu1 %v8426_v46 }
 0x17c   : > { %7464 = vmatpush3.bf16.msra.mxu1 %v8426_v46  ;;  %v1142_v46 = vadd.f32 %v1032_v60, %v11247_v35  ;;  %v11250_v60 = vld [vmem:[#allocation55_spill] sm:$0xff]  ;;  %v8431_v35 = vld [vmem:[%s10798_s1 + $0x160] sm:$0xff]  }
 0x17d   : > { %7497 = vmatprep.subr.bf16.mxu1 %v8427_v6 }
 0x17e   : > { %7294 = vmatmul.mubr.msk.bf16.gmra.mrb[20].mxu0 %vm9640_vm9, %v11239_v33  ;;  %v10202_v3 = vpack.c.bf16 %v1143_v32, %v1142_v46  ;;  %v8432_v46 = vld [vmem:[%s10798_s1 + $0x168] sm:$0xff]   ;;  %v8433_v32 = vld [vmem:[%s10798_s1 + $0x170] sm:$0xff]  }
 0x17f   : > { %7434 = vmatmul.mubr.bf16.gmra.mrb[16].mxu1 %v11155_v4  ;;  %7297 = vmatprep.mubr.msk.bf16.mxu0 %vm9640_vm9, %v11240_v30 }
 0x180   : > { %7437 = vmatprep.mubr.bf16.mxu1 %v11159_v14 }
 0x186   : > { %7298 = vmatmul.mubr.msk.bf16.gmra.mrb[24].mxu0 %vm9640_vm9, %v11241_v49 }
 0x187   : > { %7438 = vmatmul.mubr.bf16.gmra.mrb[20].mxu1 %v11160_v61  ;;  %7301 = vmatprep.mubr.msk.bf16.mxu0 %vm9640_vm9, %v11242_v56 }
 0x188   : > { %7441 = vmatprep.mubr.bf16.mxu1 %v11173_v48 }
 0x18e   : > { %7302 = vmatmul.mubr.msk.bf16.gmra.mrb[28].mxu0 %vm9640_vm9, %v10188_v34 }
 0x18f   : > { %7442 = vmatmul.mubr.bf16.gmra.mrb[24].mxu1 %v11176_v24  ;;  %7321 = vmatprep.mubr.bf16.mxu0 %v9097_v53  ;;  %v8429_v53 = vld [vmem:[%s10798_s1 + $0x150] sm:$0xff]  }
 0x190   : > { %7445 = vmatprep.mubr.bf16.mxu1 %v9644_v43 }
 0x196   : > { %7322 = vmatmul.mubr.bf16.vlgmr.msra.gmra.mrb[0].mxu0 %v9033_v54 }
 0x197   : > { %7446 = vmatmul.mubr.bf16.gmra.mrb[28].mxu1 %v10202_v3  ;;  %7354 = vmatpush3.bf16.msra.mxu0 %v8427_v6 }
 0x198   : > { %7465 = vmatprep.mubr.bf16.mxu1 %v11249_v52  ;;  %7325 = vmatprep.mubr.bf16.mxu0 %v9035_v5 }
 0x199   : > { %7355 = vmatprep.subr.bf16.mxu0 %v8428_v22 }
 0x19b   : > { %7356 = vmatpush3.bf16.msra.mxu0 %v8428_v22 }
 0x19c   : > { %7357 = vmatprep.subr.bf16.mxu0 %v8429_v53 }
 0x19e   : > { %7326 = vmatmul.mubr.bf16.gmra.mrb[4].mxu0 %v9037_v20 }
 0x19f   : > { %7466 = vmatmul.mubr.bf16.vlgmr.msra.gmra.mrb[0].mxu1 %v11250_v60  ;;  %7329 = vmatprep.mubr.bf16.mxu0 %v11145_v2 }
 0x1a0   : > { %7498 = vmatpush3.bf16.msra.mxu1 %v8427_v6  ;;  %7469 = vmatprep.mubr.bf16.mxu1 %v11251_v63  ;;  %v11252_v6 = vld [vmem:[#allocation29_spill] sm:$0xff] }
 0x1a1   : > { %7499 = vmatprep.subr.bf16.mxu1 %v8428_v22  ;;  %7358 = vmatpush3.bf16.msra.mxu0 %v8429_v53 }
 0x1a2   : > { %7359 = vmatprep.subr.bf16.mxu0 %v8430_v39 }
 0x1a4   : > { %7500 = vmatpush3.bf16.msra.mxu1 %v8428_v22  ;;  %v8434_v22 = vld [vmem:[%s10798_s1 + $0x178] sm:$0xff]  }
 0x1a5   : > { %7501 = vmatprep.subr.bf16.mxu1 %v8429_v53  ;;  %7360 = vmatpush3.bf16.msra.mxu0 %v8430_v39 }
 0x1a6   : > { %7330 = vmatmul.mubr.bf16.gmra.mrb[8].mxu0 %v11146_v17  ;;  %7361 = vmatprep.subr.bf16.mxu0 %v8431_v35 }
 0x1a7   : > { %7470 = vmatmul.mubr.bf16.gmra.mrb[4].mxu1 %v11252_v6  ;;  %7333 = vmatprep.mubr.bf16.mxu0 %v11151_v26 }
 0x1a8   : > { %7473 = vmatprep.mubr.bf16.mxu1 %v11253_v12  ;;  %7502 = vmatpush3.bf16.msra.mxu1 %v8429_v53  ;;  %v8435_v53 = vld [vmem:[%s10798_s1 + $0x180] sm:$0xff]  }
 0x1a9   : > { %7503 = vmatprep.subr.bf16.mxu1 %v8430_v39  ;;  %7362 = vmatpush3.bf16.msra.mxu0 %v8431_v35 }
 0x1aa   : > { %7363 = vmatprep.subr.bf16.mxu0 %v8432_v46 }
 0x1ac   : > { %7504 = vmatpush3.bf16.msra.mxu1 %v8430_v39  ;;  %v8436_v39 = vld [vmem:[%s10798_s1 + $0x188] sm:$0xff]  }
 0x1ad   : > { %7505 = vmatprep.subr.bf16.mxu1 %v8431_v35  ;;  %7364 = vmatpush3.bf16.msra.mxu0 %v8432_v46 }
 0x1ae   : > { %7334 = vmatmul.mubr.bf16.gmra.mrb[12].mxu0 %v11152_v36  ;;  %7365 = vmatprep.subr.bf16.mxu0 %v8433_v32 }
 0x1af   : > { %7474 = vmatmul.mubr.bf16.gmra.mrb[8].mxu1 %v11254_v40  ;;  %7337 = vmatprep.mubr.bf16.mxu0 %v11153_v31 }
 0x1b0   : > { %7477 = vmatprep.mubr.bf16.mxu1 %v11217_v25  ;;  %7506 = vmatpush3.bf16.msra.mxu1 %v8431_v35  ;;  %v11255_v35 = vld [vmem:[#allocation17_spill] sm:$0xff] }
 0x1b1   : > { %7507 = vmatprep.subr.bf16.mxu1 %v8432_v46  ;;  %7366 = vmatpush3.bf16.msra.mxu0 %v8433_v32 }
 0x1b2   : > { %7367 = vmatprep.subr.bf16.mxu0 %v8434_v22 }
 0x1b4   : > { %7508 = vmatpush3.bf16.msra.mxu1 %v8432_v46  ;;  %v8437_v46 = vld [vmem:[%s10798_s1 + $0x190] sm:$0xff]  }
 0x1b5   : > { %7509 = vmatprep.subr.bf16.mxu1 %v8433_v32  ;;  %7368 = vmatpush3.bf16.msra.mxu0 %v8434_v22 }
 0x1b6   : > { %7338 = vmatmul.mubr.bf16.gmra.mrb[16].mxu0 %v11155_v4  ;;  %7545 = vmatprep.subr.bf16.mxu0 %v8435_v53 }
 0x1b7   : > { %7478 = vmatmul.mubr.bf16.gmra.mrb[12].mxu1 %v11218_v16  ;;  %7341 = vmatprep.mubr.bf16.mxu0 %v11159_v14 }
 0x1b8   : > { %7481 = vmatprep.mubr.bf16.mxu1 %v11227_v57  ;;  %7510 = vmatpush3.bf16.msra.mxu1 %v8433_v32  ;;  %v11256_v32 = vld [vmem:[#allocation9_spill] sm:$0xff] }
 0x1b9   : > { %7511 = vmatprep.subr.bf16.mxu1 %v8434_v22 }
 0x1bc   : > { %7512 = vmatpush3.bf16.msra.mxu1 %v8434_v22  ;;  %v11257_v22 = vld [vmem:[#allocation50_spill] sm:$0xff] }
 0x1bd   : > { %7689 = vmatprep.subr.bf16.mxu1 %v8435_v53 }
 0x1be   : > { %7342 = vmatmul.mubr.bf16.gmra.mrb[20].mxu0 %v11160_v61 }
 0x1bf   : > { %7482 = vmatmul.mubr.bf16.gmra.mrb[16].mxu1 %v11228_v37  ;;  %7345 = vmatprep.mubr.bf16.mxu0 %v11173_v48 }
 0x1c0   : > { %7485 = vmatprep.mubr.bf16.mxu1 %v11231_v51 }
 0x1c6   : > { %7346 = vmatmul.mubr.bf16.gmra.mrb[24].mxu0 %v11176_v24 }
 0x1c7   : > { %7486 = vmatmul.mubr.bf16.gmra.mrb[20].mxu1 %v11232_v41  ;;  %7349 = vmatprep.mubr.bf16.mxu0 %v9644_v43 }
 0x1c8   : > { %7489 = vmatprep.mubr.bf16.mxu1 %v11235_v62 }
 0x1ce   : > { %7350 = vmatmul.mubr.bf16.gmra.mrb[28].mxu0 %v10202_v3 }
 0x1cf   : > { %7490 = vmatmul.mubr.bf16.gmra.mrb[24].mxu1 %v9652_v0  ;;  %7369 = vmatprep.mubr.bf16.mxu0 %v11249_v52  ;;  %v8438_v52 = vld [vmem:[%s10798_s1 + $0x198] sm:$0xff]  }
 0x1d0   : > { %7493 = vmatprep.mubr.bf16.mxu1 %v9685_v38 }
 0x1d6   : > { %7370 = vmatmul.mubr.bf16.vlgmr.msra.gmra.mrb[0].mxu0 %v11250_v60 }
 0x1d7   : > { %7494 = vmatmul.mubr.bf16.gmra.mrb[28].mxu1 %v10105_v47  ;;  %7546 = vmatpush3.bf16.msra.mxu0 %v8435_v53 }
 0x1d8   : > { %7513 = vmatprep.mubr.bf16.mxu1 %v11255_v35  ;;  %7373 = vmatprep.mubr.bf16.mxu0 %v11251_v63  ;;  %v8439_v35 = vld [vmem:[%s10798_s1 + $0x1a0] sm:$0xff]  }
 0x1d9   : > { %7547 = vmatprep.subr.bf16.mxu0 %v8436_v39 }
 0x1db   : > { %7548 = vmatpush3.bf16.msra.mxu0 %v8436_v39 }
 0x1dc   : > { %7549 = vmatprep.subr.bf16.mxu0 %v8437_v46 }
 0x1de   : > { %7374 = vmatmul.mubr.bf16.gmra.mrb[4].mxu0 %v11252_v6  ;;  %v11268_v6 = vld [vmem:[#allocation58_spill] sm:$0xff] }
 0x1df   : > { %7514 = vmatmul.mubr.bf16.vlgmr.msra.gmra.mrb[0].mxu1 %v11256_v32  ;;  %7377 = vmatprep.mubr.bf16.mxu0 %v11253_v12  ;;  %v8440_v32 = vld [vmem:[%s10798_s1 + $0x1a8] sm:$0xff]   ;;  %v11267_v12 = vld [vmem:[#allocation56_spill] sm:$0xff] }
 0x1e0   : > { %7690 = vmatpush3.bf16.msra.mxu1 %v8435_v53  ;;  %7517 = vmatprep.mubr.bf16.mxu1 %v11257_v22  ;;  %v11258_v53 = vld [vmem:[#allocation46_spill] sm:$0xff]  ;;  %v11259_v22 = vld [vmem:[#allocation11_spill] sm:$0xff] }
 0x1e1   : > { %7691 = vmatprep.subr.bf16.mxu1 %v8436_v39  ;;  %7550 = vmatpush3.bf16.msra.mxu0 %v8437_v46 }
 0x1e2   : > { %7551 = vmatprep.subr.bf16.mxu0 %v8438_v52 }
 0x1e4   : > { %7692 = vmatpush3.bf16.msra.mxu1 %v8436_v39  ;;  %v8441_v39 = vld [vmem:[%s10798_s1 + $0x1b0] sm:$0xff]  }
 0x1e5   : > { %7693 = vmatprep.subr.bf16.mxu1 %v8437_v46  ;;  %7552 = vmatpush3.bf16.msra.mxu0 %v8438_v52 }
 0x1e6   : > { %7378 = vmatmul.mubr.bf16.gmra.mrb[8].mxu0 %v11254_v40  ;;  %7553 = vmatprep.subr.bf16.mxu0 %v8439_v35  ;;  %v11263_v40 = vld [vmem:[#allocation31_spill] sm:$0xff] }
 0x1e7   : > { %7518 = vmatmul.mubr.bf16.gmra.mrb[4].mxu1 %v9962_v21  ;;  %7381 = vmatprep.mubr.bf16.mxu0 %v11217_v25  ;;  %v8442_v21 = vld [vmem:[%s10798_s1 + $0x1b8] sm:$0xff]   ;;  %v11262_v25 = vld [vmem:[#allocation54_spill] sm:$0xff] }
 0x1e8   : > { %7521 = vmatprep.mubr.bf16.mxu1 %v11258_v53  ;;  %7694 = vmatpush3.bf16.msra.mxu1 %v8437_v46  ;;  %v11260_v46 = vld [vmem:[#allocation60_spill] sm:$0xff]  ;;  %v11261_v53 = vld [vmem:[#allocation2_spill] sm:$0xff] }
 0x1e9   : > { %7695 = vmatprep.subr.bf16.mxu1 %v8438_v52  ;;  %7554 = vmatpush3.bf16.msra.mxu0 %v8439_v35 }
 0x1ea   : > { %7555 = vmatprep.subr.bf16.mxu0 %v8440_v32 }
 0x1ec   : > { %7696 = vmatpush3.bf16.msra.mxu1 %v8438_v52  ;;  %v10300_v52 = vld [vmem:[%s10798_s1 + $0x1c0] sm:$0xff]  }
 0x1ed   : > { %7697 = vmatprep.subr.bf16.mxu1 %v8439_v35  ;;  %7556 = vmatpush3.bf16.msra.mxu0 %v8440_v32 }
 0x1ee   : > { %7382 = vmatmul.mubr.bf16.gmra.mrb[12].mxu0 %v11218_v16  ;;  %7557 = vmatprep.subr.bf16.mxu0 %v8441_v39  ;;  %v390_v16 = vadd.s32 17, %v11261_v53  ;;  %v11265_v53 = vld [vmem:[#allocation51_spill] sm:$0xff] }
 0x1ef   : > { %7522 = vmatmul.mubr.bf16.gmra.mrb[8].mxu1 %v11259_v22  ;;  %7385 = vmatprep.mubr.bf16.mxu0 %v11227_v57  ;;  %v342_v22 = vmul.f32 0.75, %v11262_v25  ;;  %v343_v57 = vmul.f32 0.75, %v11263_v40 }
 0x1f0   : > { %7525 = vmatprep.mubr.bf16.mxu1 %v11260_v46  ;;  %7698 = vmatpush3.bf16.msra.mxu1 %v8439_v35  ;;  %v11264_v35 = vld [vmem:[#allocation22_spill] sm:$0xff]  ;;  %vm408_vm14 = vcmp.ge.s32.totalorder %v390_v16, 0  ;;  %vm426_vm15 = vcmp.lt.s32.totalorder %v390_v16, 32 }
 0x1f1   : > { %7699 = vmatprep.subr.bf16.mxu1 %v8440_v32  ;;  %7558 = vmatpush3.bf16.msra.mxu0 %v8441_v39  ;;  %v344_v46 = vmul.f32 0.75, %v11264_v35  ;;  %v370_v40 = vadd.f32 %v343_v57, %v11267_v12  ;;  %vm444_vm5 = vmand %vm408_vm14, %vm426_vm15 }
 0x1f2   : > { %7559 = vmatprep.subr.bf16.mxu0 %v8442_v21 }
 0x1f4   : > { %7700 = vmatpush3.bf16.msra.mxu1 %v8440_v32  ;;  %v11266_v32 = vld [vmem:[#allocation8_spill] sm:$0xff] }
 0x1f5   : > { %7701 = vmatprep.subr.bf16.mxu1 %v8441_v39  ;;  %7560 = vmatpush3.bf16.msra.mxu0 %v8442_v21  ;;  %v369_v25 = vadd.f32 %v342_v22, %v11266_v32 }
 0x1f6   : > { %7386 = vmatmul.mubr.bf16.gmra.mrb[16].mxu0 %v11228_v37  ;;  %7593 = vmatprep.subr.bf16.mxu0 %v10300_v52  ;;  %v371_v37 = vadd.f32 %v344_v46, %v11268_v6 }
 0x1f7   : > { %7526 = vmatmul.mubr.bf16.gmra.mrb[12].mxu1 %v10024_v13  ;;  %7389 = vmatprep.mubr.bf16.mxu0 %v11231_v51  ;;  %v532_v35 = vsel %vm444_vm5, %v369_v25, 0.0  ;;  %v533_v13 = vsel %vm444_vm5, %v370_v40, 0.0 }
 0x1f8   : > { %7529 = vmatprep.mubr.bf16.mxu1 %v11265_v53  ;;  %7702 = vmatpush3.bf16.msra.mxu1 %v8441_v39  ;;  %v534_v51 = vsel %vm444_vm5, %v371_v37, 0.0  ;;  %v10319_v16 = vmul.f32 0.25, %v532_v35  ;;  %v10321_v57 = vmul.f32 0.25, %v533_v13  ;;  %v10339_v25 = vmul.f32 0.75, %v532_v35 }
 0x1f9   : > { %7703 = vmatprep.subr.bf16.mxu1 %v8442_v21  ;;  %v10326_v12 = vmul.f32 0.25, %v534_v51 }
 0x1fa   : > { %v783_v22 = vrot.slane %v10319_v16, 1  ;;  %v784_v37 = vrot.slane %v10321_v57, 1 }
 0x1fb   : > { %11270 = vst [vmem:[#allocation27_spill] sm:$0xff] %v10326_v12  ;;  %v786_v46 = vrot.slane %v10326_v12, 1 }
 0x1fc   : > { %7704 = vmatpush3.bf16.msra.mxu1 %v8442_v21  ;;  %v11269_v21 = vrot.slane %v10079_v27, 1  ;;  %v3007_v27 = vshll.u32 %v10202_v3, 16  ;;  %v785_v32 = vsel %vm697_vm2, %v783_v22, %v784_v37 }
 0x1fd   : > { %7737 = vmatprep.subr.bf16.mxu1 %v10300_v52  ;;  %v787_v40 = vsel %vm697_vm2, %v784_v37, %v786_v46  ;;  %v10346_v12 = vadd.f32 %v785_v32, %v10339_v25 }
 0x1fe   : > { %7390 = vmatmul.mubr.bf16.gmra.mrb[20].mxu0 %v11232_v41  ;;  %v1144_v6 = vadd.f32 %v11269_v21, %v9867_v45  ;;  %v10342_v21 = vmul.f32 0.75, %v533_v13  ;;  %v3009_v10 = vrot.slane %v3007_v27, 1 }
 0x1ff   : > { %7530 = vmatmul.mubr.bf16.gmra.mrb[16].mxu1 %v10043_v50  ;;  %7393 = vmatprep.mubr.bf16.mxu0 %v11235_v62  ;;  %v1212_v35 = vsel %vm1152_vm3, %v10346_v12, 0.0 }
 0x200   : > { %7533 = vmatprep.mubr.bf16.mxu1 %v10060_v19  ;;  %v1310_v39 = vsel %vm1253_vm10, %v1144_v6, 0.0  ;;  %v3005_v6 = vshrl.u32 %v10202_v3, 16  ;;  %v10349_v19 = vadd.f32 %v787_v40, %v10342_v21 }
 0x201   : > { %v1347_v45 = vpack.c.bf16 %v1310_v39, %v1310_v39 }
 0x202   : > { %v1249_v37 = vpack.c.bf16 %v10349_v19, %v1212_v35  ;;  %v3010_v39 = vor.u32 %v3009_v10, %v3005_v6  ;;  %v8444_v10 = vld [vmem:[%s10798_s1 + $0x1c8] sm:$0xff]   ;;  %v11289_v6 = vld [vmem:[#allocation25_spill] sm:$0xff] }
 0x204   : > { %v4373_v32 = vshll.u32 %v1249_v37, 16 }
 0x206   : > { %7394 = vmatmul.mubr.bf16.gmra.mrb[24].mxu0 %v9652_v0  ;;  %v4375_v40 = vrot.slane %v4373_v32, 1 }
 0x207   : > { %7534 = vmatmul.mubr.bf16.gmra.mrb[20].mxu1 %v10064_v18  ;;  %7397 = vmatprep.mubr.bf16.mxu0 %v9685_v38  ;;  %v3012_v18 = vshll.u32 %v1347_v45, 16  ;;  %v4371_v45 = vshrl.u32 %v1249_v37, 16 }
 0x208   : > { %7537 = vmatprep.mubr.bf16.mxu1 %v10076_v8  ;;  %v10351_v8 = vmul.f32 0.75, %v534_v51 }
 0x209   : > { %v3014_v51 = vrot.slane %v3012_v18, 1  ;;  %v8445_v18 = vld [vmem:[%s10798_s1 + $0x1d0] sm:$0xff]  }
 0x20a   : > { %v895_v13 = vadd.f32 %v786_v46, %v10351_v8  ;;  %v4376_v46 = vor.u32 %v4375_v40, %v4371_v45  ;;  %v10571_v40 = vld [vmem:[%s10800_s3] ss:$0 sm:$0xff] }
 0x20b   : > { %v10365_v50 = vsel %vm1350_vm0, %v3010_v39, %v3014_v51 }
 0x20c   : > { %v1250_v27 = vpack.c.bf16 %v895_v13, %v895_v13  ;;  %v11290_v13 = vld [vmem:[#allocation27_spill] sm:$0xff] }
 0x20e   : > { %7398 = vmatmul.mubr.bf16.gmra.mrb[28].mxu0 %v10105_v47  ;;  %v4378_v22 = vshll.u32 %v1250_v27, 16 }
 0x20f   : > { %7538 = vmatmul.mubr.bf16.gmra.mrb[24].mxu1 %v10082_v28  ;;  %7561 = vmatprep.mubr.msk.bf16.mxu0 %vm9640_vm9, %v9679_v58 }
 0x210   : > { %7541 = vmatprep.mubr.bf16.mxu1 %v10096_v7  ;;  %v4380_v35 = vrot.slane %v4378_v22, 1 }
 0x212   : > { %v10374_v58 = vsel %vm1350_vm0, %v4376_v46, %v4380_v35 }
 0x216   : > { %7562 = vmatmul.mubr.msk.bf16.vlgmr.msra.gmra.mrb[0].mxu0 %vm9640_vm9, %v9701_v59  ;;  %v8446_v59 = vld [vmem:[%s10798_s1 + $0x1d8] sm:$0xff]  }
 0x217   : > { %7542 = vmatmul.mubr.bf16.gmra.mrb[28].mxu1 %v10365_v50  ;;  %7594 = vmatpush3.bf16.msra.mxu0 %v10300_v52 }
 0x218   : > { %7705 = vmatprep.mubr.bf16.mxu1 %v9033_v54  ;;  %7565 = vmatprep.mubr.msk.bf16.mxu0 %vm9640_vm9, %v9705_v11  ;;  %v8447_v11 = vld [vmem:[%s10798_s1 + $0x1e0] sm:$0xff]  }
 0x219   : > { %7595 = vmatprep.subr.bf16.mxu0 %v8444_v10 }
 0x21b   : > { %7596 = vmatpush3.bf16.msra.mxu0 %v8444_v10 }
 0x21c   : > { %7597 = vmatprep.subr.bf16.mxu0 %v8445_v18 }
 0x21e   : > { %7566 = vmatmul.mubr.msk.bf16.gmra.mrb[4].mxu0 %vm9640_vm9, %v9721_v42  ;;  %v8448_v42 = vld [vmem:[%s10798_s1 + $0x1e8] sm:$0xff]  }
 0x21f   : > { %7706 = vmatmul.mubr.bf16.vlgmr.msra.gmra.mrb[0].mxu1 %v9035_v5  ;;  %7569 = vmatprep.mubr.msk.bf16.mxu0 %vm9640_vm9, %v9728_v1  ;;  %v8449_v1 = vld [vmem:[%s10798_s1 + $0x1f0] sm:$0xff]  }
 0x220   : > { %7738 = vmatpush3.bf16.msra.mxu1 %v10300_v52  ;;  %7709 = vmatprep.mubr.bf16.mxu1 %v9037_v20  ;;  %v8452_v52 = vld [vmem:[%s10798_s1 + $0x208] sm:$0xff]  }
 0x221   : > { %7739 = vmatprep.subr.bf16.mxu1 %v8444_v10  ;;  %7598 = vmatpush3.bf16.msra.mxu0 %v8445_v18 }
 0x222   : > { %7599 = vmatprep.subr.bf16.mxu0 %v8446_v59 }
 0x224   : > { %7740 = vmatpush3.bf16.msra.mxu1 %v8444_v10 }
 0x225   : > { %7741 = vmatprep.subr.bf16.mxu1 %v8445_v18  ;;  %7600 = vmatpush3.bf16.msra.mxu0 %v8446_v59 }
 0x226   : > { %7570 = vmatmul.mubr.msk.bf16.gmra.mrb[8].mxu0 %vm9640_vm9, %v9743_v15  ;;  %7601 = vmatprep.subr.bf16.mxu0 %v8447_v11  ;;  %v8450_v15 = vld [vmem:[%s10798_s1 + $0x1f8] sm:$0xff]  }
 0x227   : > { %7710 = vmatmul.mubr.bf16.gmra.mrb[4].mxu1 %v11145_v2  ;;  %7573 = vmatprep.mubr.msk.bf16.mxu0 %vm9640_vm9, %v9750_v23  ;;  %v8451_v23 = vld [vmem:[%s10798_s1 + $0x200] sm:$0xff]  }
 0x228   : > { %7713 = vmatprep.mubr.bf16.mxu1 %v11146_v17  ;;  %7742 = vmatpush3.bf16.msra.mxu1 %v8445_v18 }
 0x229   : > { %7743 = vmatprep.subr.bf16.mxu1 %v8446_v59  ;;  %7602 = vmatpush3.bf16.msra.mxu0 %v8447_v11 }
 0x22a   : > { %7603 = vmatprep.subr.bf16.mxu0 %v8448_v42 }
 0x22c   : > { %7744 = vmatpush3.bf16.msra.mxu1 %v8446_v59 }
 0x22d   : > { %7745 = vmatprep.subr.bf16.mxu1 %v8447_v11  ;;  %7604 = vmatpush3.bf16.msra.mxu0 %v8448_v42 }
 0x22e   : > { %7574 = vmatmul.mubr.msk.bf16.gmra.mrb[12].mxu0 %vm9640_vm9, %v9770_v29  ;;  %7605 = vmatprep.subr.bf16.mxu0 %v8449_v1  ;;  %v1036_v29 = vrot.slane %v10342_v21, 1  ;;  %v11288_v21 = vld [vmem:[#allocation47_spill] sm:$0xff] }
 0x22f   : > { %7714 = vmatmul.mubr.bf16.gmra.mrb[8].mxu1 %v11151_v26  ;;  %7577 = vmatprep.mubr.msk.bf16.mxu0 %vm9640_vm9, %v9661_v44  ;;  %v1035_v44 = vrot.slane %v10339_v25, 1  ;;  %v11278_v25 = vld [vmem:[#allocation4_spill] sm:$0xff] }
 0x230   : > { %7717 = vmatprep.mubr.bf16.mxu1 %v11152_v36  ;;  %7746 = vmatpush3.bf16.msra.mxu1 %v8447_v11 }
 0x231   : > { %7747 = vmatprep.subr.bf16.mxu1 %v8448_v42  ;;  %7606 = vmatpush3.bf16.msra.mxu0 %v8449_v1 }
 0x232   : > { %7607 = vmatprep.subr.bf16.mxu0 %v8450_v15 }
 0x234   : > { %7748 = vmatpush3.bf16.msra.mxu1 %v8448_v42 }
 0x235   : > { %7749 = vmatprep.subr.bf16.mxu1 %v8449_v1  ;;  %7608 = vmatpush3.bf16.msra.mxu0 %v8450_v15 }
 0x236   : > { %7578 = vmatmul.mubr.msk.bf16.gmra.mrb[16].mxu0 %vm9640_vm9, %v11238_v9  ;;  %7641 = vmatprep.subr.bf16.mxu0 %v8451_v23  ;;  %v1038_v9 = vrot.slane %v10351_v8, 1 }
 0x237   : > { %7718 = vmatmul.mubr.bf16.gmra.mrb[12].mxu1 %v11153_v31  ;;  %7581 = vmatprep.mubr.msk.bf16.mxu0 %vm9640_vm9, %v11239_v33  ;;  %v6515_v33 = vpack.c.bf16 %v10349_v19, %v10346_v12  ;;  %v11276_v12 = vld [vmem:[#allocation37_spill] sm:$0xff] }
 0x238   : > { %7721 = vmatprep.mubr.bf16.mxu1 %v11155_v4  ;;  %7750 = vmatpush3.bf16.msra.mxu1 %v8449_v1  ;;  %v1147_v37 = vadd.f32 %v1038_v9, %v11290_v13 }
 0x239   : > { %7751 = vmatprep.subr.bf16.mxu1 %v8450_v15 }
 0x23a   : > { %v1313_v51 = vsel %vm1253_vm10, %v1147_v37, 0.0 }
 0x23c   : > { %7752 = vmatpush3.bf16.msra.mxu1 %v8450_v15 }
 0x23d   : > { %7785 = vmatprep.subr.bf16.mxu1 %v8451_v23 }
 0x23e   : > { %7582 = vmatmul.mubr.msk.bf16.gmra.mrb[20].mxu0 %vm9640_vm9, %v11240_v30  ;;  %v1037_v30 = vsel %vm697_vm2, %v1035_v44, %v1036_v29 }
 0x23f   : > { %7722 = vmatmul.mubr.bf16.gmra.mrb[16].mxu1 %v11159_v14  ;;  %7585 = vmatprep.mubr.msk.bf16.mxu0 %vm9640_vm9, %v11241_v49  ;;  %v1039_v49 = vsel %vm697_vm2, %v1036_v29, %v1038_v9 }
 0x240   : > { %7725 = vmatprep.mubr.bf16.mxu1 %v11160_v61 }
 0x246   : > { %7586 = vmatmul.mubr.msk.bf16.gmra.mrb[24].mxu0 %vm9640_vm9, %v11242_v56  ;;  %v1145_v56 = vadd.f32 %v1037_v30, %v10319_v16  ;;  %v11274_v16 = vld [vmem:[#allocation34_spill] sm:$0xff] }
 0x247   : > { %7726 = vmatmul.mubr.bf16.gmra.mrb[20].mxu1 %v11173_v48  ;;  %7589 = vmatprep.mubr.msk.bf16.mxu0 %vm9640_vm9, %v10188_v34  ;;  %v1146_v34 = vadd.f32 %v1039_v49, %v10321_v57  ;;  %v8457_v57 = vld [vmem:[%s10798_s1 + $0x230] sm:$0xff]  }
 0x248   : > { %7729 = vmatprep.mubr.bf16.mxu1 %v11176_v24 }
 0x249   : > { %v10468_v19 = vpack.c.bf16 %v1146_v34, %v1145_v56 }
 0x24e   : > { %7590 = vmatmul.mubr.msk.bf16.gmra.mrb[28].mxu0 %vm9640_vm9, %v6515_v33 }
 0x24f   : > { %7730 = vmatmul.mubr.bf16.gmra.mrb[24].mxu1 %v9644_v43  ;;  %7609 = vmatprep.mubr.bf16.mxu0 %v9033_v54  ;;  %v8453_v54 = vld [vmem:[%s10798_s1 + $0x210] sm:$0xff]  }
 0x250   : > { %7733 = vmatprep.mubr.bf16.mxu1 %v10202_v3 }
 0x256   : > { %7610 = vmatmul.mubr.bf16.vlgmr.msra.gmra.mrb[0].mxu0 %v9035_v5  ;;  %v8454_v5 = vld [vmem:[%s10798_s1 + $0x218] sm:$0xff]  }
 0x257   : > { %7734 = vmatmul.mubr.bf16.gmra.mrb[28].mxu1 %v10468_v19  ;;  %7642 = vmatpush3.bf16.msra.mxu0 %v8451_v23 }
 0x258   : > { %7753 = vmatprep.mubr.bf16.mxu1 %v11250_v60  ;;  %7613 = vmatprep.mubr.bf16.mxu0 %v9037_v20  ;;  %v8455_v20 = vld [vmem:[%s10798_s1 + $0x220] sm:$0xff]  }
 0x259   : > { %7643 = vmatprep.subr.bf16.mxu0 %v8452_v52 }
 0x25b   : > { %7644 = vmatpush3.bf16.msra.mxu0 %v8452_v52 }
 0x25c   : > { %7645 = vmatprep.subr.bf16.mxu0 %v8453_v54 }
 0x25e   : > { %7614 = vmatmul.mubr.bf16.gmra.mrb[4].mxu0 %v11145_v2  ;;  %v8456_v2 = vld [vmem:[%s10798_s1 + $0x228] sm:$0xff]  }
 0x25f   : > { %7754 = vmatmul.mubr.bf16.vlgmr.msra.gmra.mrb[0].mxu1 %v11251_v63  ;;  %7617 = vmatprep.mubr.bf16.mxu0 %v11146_v17  ;;  %v11273_v17 = vld [vmem:[#allocation40_spill] sm:$0xff] }
 0x260   : > { %7786 = vmatpush3.bf16.msra.mxu1 %v8451_v23  ;;  %7757 = vmatprep.mubr.bf16.mxu1 %v11272_v55 }
 0x261   : > { %7787 = vmatprep.subr.bf16.mxu1 %v8452_v52  ;;  %7646 = vmatpush3.bf16.msra.mxu0 %v8453_v54 }
 0x262   : > { %7647 = vmatprep.subr.bf16.mxu0 %v8454_v5 }
 0x264   : > { %7788 = vmatpush3.bf16.msra.mxu1 %v8452_v52 }
 0x265   : > { %7789 = vmatprep.subr.bf16.mxu1 %v8453_v54  ;;  %7648 = vmatpush3.bf16.msra.mxu0 %v8454_v5 }
 0x266   : > { %7618 = vmatmul.mubr.bf16.gmra.mrb[8].mxu0 %v11151_v26  ;;  %7649 = vmatprep.subr.bf16.mxu0 %v8455_v20  ;;  %v8458_v26 = vld [vmem:[%s10798_s1 + $0x238] sm:$0xff]  }
 0x267   : > { %7758 = vmatmul.mubr.bf16.gmra.mrb[4].mxu1 %v11273_v17  ;;  %7621 = vmatprep.mubr.bf16.mxu0 %v11152_v36  ;;  %v11275_v36 = vld [vmem:[#allocation42_spill] sm:$0xff] }
 0x268   : > { %7761 = vmatprep.mubr.bf16.mxu1 %v11274_v16  ;;  %7790 = vmatpush3.bf16.msra.mxu1 %v8453_v54 }
 0x269   : > { %7791 = vmatprep.subr.bf16.mxu1 %v8454_v5  ;;  %7650 = vmatpush3.bf16.msra.mxu0 %v8455_v20 }
 0x26a   : > { %7651 = vmatprep.subr.bf16.mxu0 %v8456_v2 }
 0x26c   : > { %7792 = vmatpush3.bf16.msra.mxu1 %v8454_v5 }
 0x26d   : > { %7793 = vmatprep.subr.bf16.mxu1 %v8455_v20  ;;  %7652 = vmatpush3.bf16.msra.mxu0 %v8456_v2 }
 0x26e   : > { %7622 = vmatmul.mubr.bf16.gmra.mrb[12].mxu0 %v11153_v31  ;;  %7653 = vmatprep.subr.bf16.mxu0 %v8457_v57  ;;  %v11277_v31 = vld [vmem:[#allocation13_spill] sm:$0xff] }
 0x26f   : > { %7762 = vmatmul.mubr.bf16.gmra.mrb[8].mxu1 %v11275_v36  ;;  %7625 = vmatprep.mubr.bf16.mxu0 %v11155_v4  ;;  %v11279_v4 = vld [vmem:[#allocation7_spill] sm:$0xff] }
 0x270   : > { %7765 = vmatprep.mubr.bf16.mxu1 %v11276_v12  ;;  %7794 = vmatpush3.bf16.msra.mxu1 %v8455_v20 }
 0x271   : > { %7795 = vmatprep.subr.bf16.mxu1 %v8456_v2  ;;  %7654 = vmatpush3.bf16.msra.mxu0 %v8457_v57 }
 0x272   : > { %7655 = vmatprep.subr.bf16.mxu0 %v8458_v26 }
 0x274   : > { %7796 = vmatpush3.bf16.msra.mxu1 %v8456_v2 }
 0x275   : > { %7797 = vmatprep.subr.bf16.mxu1 %v8457_v57  ;;  %7656 = vmatpush3.bf16.msra.mxu0 %v8458_v26 }
 0x276   : > { %7626 = vmatmul.mubr.bf16.gmra.mrb[16].mxu0 %v11159_v14  ;;  %v11281_v14 = vld [vmem:[#allocation50_spill] sm:$0xff] }
 0x277   : > { %7766 = vmatmul.mubr.bf16.gmra.mrb[12].mxu1 %v11277_v31  ;;  %7629 = vmatprep.mubr.bf16.mxu0 %v11160_v61  ;;  %v11282_v61 = vld [vmem:[#allocation49_spill] sm:$0xff] }
 0x278   : > { %7769 = vmatprep.mubr.bf16.mxu1 %v11278_v25  ;;  %7798 = vmatpush3.bf16.msra.mxu1 %v8457_v57 }
 0x279   : > { %7799 = vmatprep.subr.bf16.mxu1 %v8458_v26 }
 0x27c   : > { %7800 = vmatpush3.bf16.msra.mxu1 %v8458_v26 }
 0x27e   : > { %7630 = vmatmul.mubr.bf16.gmra.mrb[20].mxu0 %v11173_v48  ;;  %v11283_v48 = vld [vmem:[#allocation46_spill] sm:$0xff] }
 0x27f   : > { %7770 = vmatmul.mubr.bf16.gmra.mrb[16].mxu1 %v11279_v4  ;;  %7633 = vmatprep.mubr.bf16.mxu0 %v11176_v24  ;;  %v11284_v24 = vld [vmem:[#allocation11_spill] sm:$0xff] }
 0x280   : > { %7773 = vmatprep.mubr.bf16.mxu1 %v11232_v41 }
 0x286   : > { %7634 = vmatmul.mubr.bf16.gmra.mrb[24].mxu0 %v9644_v43  ;;  %v11280_v43 = vld [vmem:[#allocation9_spill] sm:$0xff] }
 0x287   : > { %7774 = vmatmul.mubr.bf16.gmra.mrb[20].mxu1 %v11235_v62  ;;  %7637 = vmatprep.mubr.bf16.mxu0 %v10202_v3  ;;  %v11285_v3 = vld [vmem:[#allocation60_spill] sm:$0xff] }
 0x288   : > { %7777 = vmatprep.mubr.bf16.mxu1 %v9652_v0 }
 0x28e   : > { %7638 = vmatmul.mubr.bf16.gmra.mrb[28].mxu0 %v10468_v19 }
 0x28f   : > { %7778 = vmatmul.mubr.bf16.gmra.mrb[24].mxu1 %v9685_v38  ;;  %7657 = vmatprep.mubr.bf16.mxu0 %v11250_v60  ;;  %v11286_v60 = vld [vmem:[#allocation57_spill] sm:$0xff] }
 0x290   : > { %7781 = vmatprep.mubr.bf16.mxu1 %v10105_v47 }
 0x296   : > { %7658 = vmatmul.mubr.bf16.vlgmr.msra.gmra.mrb[0].mxu0 %v11251_v63  ;;  %v11287_v63 = vld [vmem:[#allocation62_spill] sm:$0xff] }
 0x297   : > { %7782 = vmatmul.mubr.bf16.gmra.mrb[28].mxu1 %v10374_v58  ;;  %7661 = vmatprep.mubr.bf16.mxu0 %v11272_v55 }
 0x298   : > { %7801 = vmatprep.mubr.bf16.mxu1 %v11280_v43 }
 0x29e   : > { %7662 = vmatmul.mubr.bf16.gmra.mrb[4].mxu0 %v11273_v17 }
 0x29f   : > { %7802 = vmatmul.mubr.bf16.vlgmr.msra.gmra.mrb[0].mxu1 %v11281_v14  ;;  %7665 = vmatprep.mubr.bf16.mxu0 %v11274_v16 }
 0x2a0   : > { %7805 = vmatprep.mubr.bf16.mxu1 %v11282_v61 }
 0x2a6   : > { %7666 = vmatmul.mubr.bf16.gmra.mrb[8].mxu0 %v11275_v36 }
 0x2a7   : > { %7806 = vmatmul.mubr.bf16.gmra.mrb[4].mxu1 %v11283_v48  ;;  %7669 = vmatprep.mubr.bf16.mxu0 %v11276_v12 }
 0x2a8   : > { %7809 = vmatprep.mubr.bf16.mxu1 %v11284_v24 }
 0x2ae   : > { %7670 = vmatmul.mubr.bf16.gmra.mrb[12].mxu0 %v11277_v31 }
 0x2af   : > { %7810 = vmatmul.mubr.bf16.gmra.mrb[8].mxu1 %v11285_v3  ;;  %7673 = vmatprep.mubr.bf16.mxu0 %v11278_v25 }
 0x2b0   : > { %7813 = vmatprep.mubr.bf16.mxu1 %v11286_v60 }
 0x2b6   : > { %7674 = vmatmul.mubr.bf16.gmra.mrb[16].mxu0 %v11279_v4 }
 0x2b7   : > { %7814 = vmatmul.mubr.bf16.gmra.mrb[12].mxu1 %v11265_v53  ;;  %7677 = vmatprep.mubr.bf16.mxu0 %v11232_v41  ;;  %v11292_v41 = vld [vmem:[#allocation52_spill] sm:$0xff]  ;;  %v4384_v53 = vshrl.u32 %v10468_v19, 16 }
 0x2b8   : > { %7817 = vmatprep.mubr.bf16.mxu1 %v11287_v63 }
 0x2be   : > { %7678 = vmatmul.mubr.bf16.gmra.mrb[20].mxu0 %v11235_v62  ;;  %v1349_v62 = vpack.c.bf16 %v1313_v51, %v1313_v51 }
 0x2bf   : > { %7818 = vmatmul.mubr.bf16.gmra.mrb[16].mxu1 %v11288_v21  ;;  %7681 = vmatprep.mubr.bf16.mxu0 %v9652_v0  ;;  %v4386_v0 = vshll.u32 %v10468_v19, 16 }
 0x2c0   : > { %7821 = vmatprep.mubr.bf16.mxu1 %v11289_v6  ;;  %v4391_v8 = vshll.u32 %v1349_v62, 16 }
 0x2c1   : > { %v4388_v27 = vrot.slane %v4386_v0, 1 }
 0x2c2   : > { %v4393_v45 = vrot.slane %v4391_v8, 1 }
 0x2c6   : > { %7682 = vmatmul.mubr.bf16.gmra.mrb[24].mxu0 %v9685_v38  ;;  %v4389_v38 = vor.u32 %v4388_v27, %v4384_v53 }
 0x2c7   : > { %7822 = vmatmul.mubr.bf16.gmra.mrb[20].mxu1 %v11292_v41  ;;  %7685 = vmatprep.mubr.bf16.mxu0 %v10105_v47 }
 0x2c8   : > { %7825 = vmatprep.mubr.bf16.mxu1 %v10082_v28  ;;  %v4394_v32 = vsel %vm1350_vm0, %v4389_v38, %v4393_v45  ;;  %v10565_v28 = vld [vmem:[%s10799_s2] ss:$0 sm:$0xff] }
 0x2ce   : > { %7686 = vmatmul.mubr.bf16.gmra.mrb[28].mxu0 %v10374_v58 }
 0x2cf   : > { %7826 = vmatmul.mubr.bf16.gmra.mrb[24].mxu1 %v10096_v7 }
 0x2d0   : > { %7829 = vmatprep.mubr.bf16.mxu1 %v10365_v50 }
 0x2d7   : > { %7830 = vmatmul.mubr.bf16.gmra.mrb[28].mxu1 %v4394_v32 }
 0x369   : > { %v7659_v47 = vpop.f32.mrb[0].mxu0 }
 0x36a   : > { %v5759_v7 = vadd.f32 %v7659_v47, %v10565_v28  ;;  %v5011_v50 = vpop.f32.mrb[1].mxu0 }
 0x36b   : > { %v5757_v22 = vadd.f32 %v10565_v28, %v5011_v50  ;;  %v7660_v46 = vpop.f32.mrb[2].mxu0 }
 0x36c   : > { %vm5823_vm2 = vcmp.gt.f32.partialorder %v5759_v7, 0.0  ;;  %v5861_v35 = vmul.f32 %v10571_v40, %v5759_v7  ;;  %v5760_v10 = vadd.f32 %v7660_v46, %v10565_v28  ;;  %v5014_v58 = vpop.f32.mrb[3].mxu0 }
 0x36d   : > { %vm5821_vm3 = vcmp.gt.f32.partialorder %v5757_v22, 0.0  ;;  %v5859_v18 = vmul.f32 %v10571_v40, %v5757_v22  ;;  %v5758_v59 = vadd.f32 %v10565_v28, %v5014_v58 }
 0x36e   : > { %v5893_v11 = vsel %vm5823_vm2, %v5759_v7, %v5861_v35  ;;  %vm5824_vm0 = vcmp.gt.f32.partialorder %v5760_v10, 0.0  ;;  %v5862_v42 = vmul.f32 %v10571_v40, %v5760_v10 }
 0x36f   : > { %6023 = vst [vmem:[%s10578_s25 + $0x20] sm:$0xff] %v5893_v11  ;;  %v5891_v1 = vsel %vm5821_vm3, %v5757_v22, %v5859_v18  ;;  %vm5822_vm1 = vcmp.gt.f32.partialorder %v5758_v59, 0.0  ;;  %v5860_v15 = vmul.f32 %v10571_v40, %v5758_v59 }
 0x370   : > { %6019 = vst [vmem:[%s10578_s25] sm:$0xff] %v5891_v1  ;;  %v5894_v23 = vsel %vm5824_vm0, %v5760_v10, %v5862_v42 }
 0x371   : > { %6025 = vst [vmem:[%s10578_s25 + $0x30] sm:$0xff] %v5894_v23  ;;  %v5892_v44 = vsel %vm5822_vm1, %v5758_v59, %v5860_v15  ;;  %v7663_v29 = vpop.f32.mrb[4].mxu0 }
 0x372   : > { %v7803_v9 = vpop.f32.mrb[0].mxu1  ;;  %6021 = vst [vmem:[%s10578_s25 + $0x10] sm:$0xff] %v5892_v44  ;;  %v5763_v33 = vadd.f32 %v7663_v29, %v10565_v28  ;;  %v5027_v30 = vpop.f32.mrb[5].mxu0 }
 0x373   : > { %v5791_v49 = vadd.f32 %v7803_v9, %v10565_v28  ;;  %v5590_v56 = vpop.f32.mrb[1].mxu1  ;;  %v5761_v34 = vadd.f32 %v10565_v28, %v5027_v30  ;;  %v7664_v19 = vpop.f32.mrb[6].mxu0 }
 0x374   : > { %v5789_v52 = vadd.f32 %v10565_v28, %v5590_v56  ;;  %v7804_v54 = vpop.f32.mrb[2].mxu1  ;;  %vm5827_vm6 = vcmp.gt.f32.partialorder %v5763_v33, 0.0  ;;  %v5865_v5 = vmul.f32 %v10571_v40, %v5763_v33  ;;  %v5764_v55 = vadd.f32 %v7664_v19, %v10565_v28  ;;  %v5030_v20 = vpop.f32.mrb[7].mxu0 }
 0x375   : > { %vm5925_vm8 = vcmp.gt.f32.partialorder %v5791_v49, 0.0  ;;  %v5957_v2 = vmul.f32 %v10571_v40, %v5791_v49  ;;  %v5792_v17 = vadd.f32 %v7804_v54, %v10565_v28  ;;  %v5593_v16 = vpop.f32.mrb[3].mxu1  ;;  %vm5825_vm4 = vcmp.gt.f32.partialorder %v5761_v34, 0.0 }
 0x376   : > { %vm5923_vm7 = vcmp.gt.f32.partialorder %v5789_v52, 0.0  ;;  %v5955_v57 = vmul.f32 %v10571_v40, %v5789_v52  ;;  %v5790_v26 = vadd.f32 %v10565_v28, %v5593_v16  ;;  %v5897_v36 = vsel %vm5827_vm6, %v5763_v33, %v5865_v5 }
 0x377   : > { %v5989_v12 = vsel %vm5925_vm8, %v5791_v49, %v5957_v2  ;;  %vm5926_vm9 = vcmp.gt.f32.partialorder %v5792_v17, 0.0  ;;  %v5958_v31 = vmul.f32 %v10571_v40, %v5792_v17  ;;  %6031 = vst [vmem:[%s10578_s25 + $0x60] sm:$0xff] %v5897_v36  ;;  %v5863_v25 = vmul.f32 %v10571_v40, %v5761_v34 }
 0x378   : > { %6024 = vst [vmem:[%s10578_s25 + $0x28] sm:$0xff] %v5989_v12  ;;  %v5987_v4 = vsel %vm5923_vm7, %v5789_v52, %v5955_v57  ;;  %vm5924_vm10 = vcmp.gt.f32.partialorder %v5790_v26, 0.0  ;;  %v5956_v43 = vmul.f32 %v10571_v40, %v5790_v26  ;;  %vm5828_vm11 = vcmp.gt.f32.partialorder %v5764_v55, 0.0 }
 0x379   : > { %6020 = vst [vmem:[%s10578_s25 + $0x8] sm:$0xff] %v5987_v4  ;;  %v5990_v14 = vsel %vm5926_vm9, %v5792_v17, %v5958_v31  ;;  %v5895_v61 = vsel %vm5825_vm4, %v5761_v34, %v5863_v25  ;;  %v5866_v48 = vmul.f32 %v10571_v40, %v5764_v55  ;;  %v5762_v24 = vadd.f32 %v10565_v28, %v5030_v20  ;;  %v7667_v3 = vpop.f32.mrb[8].mxu0 }
 0x37a   : > { %6026 = vst [vmem:[%s10578_s25 + $0x38] sm:$0xff] %v5990_v14  ;;  %v5988_v60 = vsel %vm5924_vm10, %v5790_v26, %v5956_v43  ;;  %v7807_v63 = vpop.f32.mrb[4].mxu1  ;;  %6027 = vst [vmem:[%s10578_s25 + $0x40] sm:$0xff] %v5895_v61  ;;  %v5767_v21 = vadd.f32 %v7667_v3, %v10565_v28  ;;  %v5043_v6 = vpop.f32.mrb[9].mxu0 }
 0x37b   : > { %6022 = vst [vmem:[%s10578_s25 + $0x18] sm:$0xff] %v5988_v60  ;;  %v5795_v13 = vadd.f32 %v7807_v63, %v10565_v28  ;;  %v5606_v37 = vpop.f32.mrb[5].mxu1  ;;  %v5898_v39 = vsel %vm5828_vm11, %v5764_v55, %v5866_v48  ;;  %vm5826_vm12 = vcmp.gt.f32.partialorder %v5762_v24, 0.0  ;;  %v5864_v51 = vmul.f32 %v10571_v40, %v5762_v24  ;;  %v7668_v41 = vpop.f32.mrb[10].mxu0 }
 0x37c   : > { %v5793_v62 = vadd.f32 %v10565_v28, %v5606_v37  ;;  %6033 = vst [vmem:[%s10578_s25 + $0x70] sm:$0xff] %v5898_v39  ;;  %v7808_v0 = vpop.f32.mrb[6].mxu1  ;;  %vm5831_vm13 = vcmp.gt.f32.partialorder %v5767_v21, 0.0  ;;  %v5869_v53 = vmul.f32 %v10571_v40, %v5767_v21  ;;  %v5765_v27 = vadd.f32 %v10565_v28, %v5043_v6  ;;  %v5046_v8 = vpop.f32.mrb[11].mxu0 }
 0x37d   : > { %vm5929_vm14 = vcmp.gt.f32.partialorder %v5795_v13, 0.0  ;;  %v5961_v38 = vmul.f32 %v10571_v40, %v5795_v13  ;;  %v5796_v45 = vadd.f32 %v7808_v0, %v10565_v28  ;;  %v5896_v32 = vsel %vm5826_vm12, %v5762_v24, %v5864_v51  ;;  %v5609_v47 = vpop.f32.mrb[7].mxu1 }
 0x37e   : > { %vm5927_vm15 = vcmp.gt.f32.partialorder %v5793_v62, 0.0  ;;  %v5959_v7 = vmul.f32 %v10571_v40, %v5793_v62  ;;  %6029 = vst [vmem:[%s10578_s25 + $0x50] sm:$0xff] %v5896_v32  ;;  %v5794_v50 = vadd.f32 %v10565_v28, %v5609_v47  ;;  %v5901_v22 = vsel %vm5831_vm13, %v5767_v21, %v5869_v53 }
 0x37f   : > { %v5993_v46 = vsel %vm5929_vm14, %v5795_v13, %v5961_v38  ;;  %vm5930_vm5 = vcmp.gt.f32.partialorder %v5796_v45, 0.0  ;;  %v5962_v35 = vmul.f32 %v10571_v40, %v5796_v45  ;;  %6039 = vst [vmem:[%s10578_s25 + $0xa0] sm:$0xff] %v5901_v22  ;;  %vm5829_vm2 = vcmp.gt.f32.partialorder %v5765_v27, 0.0 }
 0x380   : > { %6032 = vst [vmem:[%s10578_s25 + $0x68] sm:$0xff] %v5993_v46  ;;  %v5991_v10 = vsel %vm5927_vm15, %v5793_v62, %v5959_v7  ;;  %vm5928_vm3 = vcmp.gt.f32.partialorder %v5794_v50, 0.0  ;;  %v5960_v58 = vmul.f32 %v10571_v40, %v5794_v50  ;;  %v5867_v18 = vmul.f32 %v10571_v40, %v5765_v27 }
 0x381   : > { %6028 = vst [vmem:[%s10578_s25 + $0x48] sm:$0xff] %v5991_v10  ;;  %v5994_v59 = vsel %vm5930_vm5, %v5796_v45, %v5962_v35  ;;  %v5768_v11 = vadd.f32 %v7668_v41, %v10565_v28  ;;  %v5766_v42 = vadd.f32 %v10565_v28, %v5046_v8  ;;  %v7671_v1 = vpop.f32.mrb[12].mxu0 }
 0x382   : > { %6034 = vst [vmem:[%s10578_s25 + $0x78] sm:$0xff] %v5994_v59  ;;  %v5992_v15 = vsel %vm5928_vm3, %v5794_v50, %v5960_v58  ;;  %v7811_v23 = vpop.f32.mrb[8].mxu1  ;;  %v5899_v44 = vsel %vm5829_vm2, %v5765_v27, %v5867_v18  ;;  %v5771_v29 = vadd.f32 %v7671_v1, %v10565_v28  ;;  %v5059_v9 = vpop.f32.mrb[13].mxu0 }
 0x383   : > { %6030 = vst [vmem:[%s10578_s25 + $0x58] sm:$0xff] %v5992_v15  ;;  %v5799_v33 = vadd.f32 %v7811_v23, %v10565_v28  ;;  %6035 = vst [vmem:[%s10578_s25 + $0x80] sm:$0xff] %v5899_v44  ;;  %v5622_v30 = vpop.f32.mrb[9].mxu1  ;;  %vm5832_vm0 = vcmp.gt.f32.partialorder %v5768_v11, 0.0  ;;  %v5870_v49 = vmul.f32 %v10571_v40, %v5768_v11  ;;  %vm5830_vm1 = vcmp.gt.f32.partialorder %v5766_v42, 0.0  ;;  %v7672_v56 = vpop.f32.mrb[14].mxu0 }
 0x384   : > { %v5797_v34 = vadd.f32 %v10565_v28, %v5622_v30  ;;  %v7812_v19 = vpop.f32.mrb[10].mxu1  ;;  %v5868_v52 = vmul.f32 %v10571_v40, %v5766_v42  ;;  %vm5835_vm6 = vcmp.gt.f32.partialorder %v5771_v29, 0.0  ;;  %v5873_v54 = vmul.f32 %v10571_v40, %v5771_v29  ;;  %v5062_v5 = vpop.f32.mrb[15].mxu0 }
 0x385   : > { %vm5933_vm8 = vcmp.gt.f32.partialorder %v5799_v33, 0.0  ;;  %v5965_v55 = vmul.f32 %v10571_v40, %v5799_v33  ;;  %v5902_v20 = vsel %vm5832_vm0, %v5768_v11, %v5870_v49  ;;  %v5800_v2 = vadd.f32 %v7812_v19, %v10565_v28  ;;  %v5625_v17 = vpop.f32.mrb[11].mxu1 }
 0x386   : > { %vm5931_vm4 = vcmp.gt.f32.partialorder %v5797_v34, 0.0  ;;  %v5963_v16 = vmul.f32 %v10571_v40, %v5797_v34  ;;  %6041 = vst [vmem:[%s10578_s25 + $0xb0] sm:$0xff] %v5902_v20  ;;  %v5900_v57 = vsel %vm5830_vm1, %v5766_v42, %v5868_v52  ;;  %v5798_v26 = vadd.f32 %v10565_v28, %v5625_v17 }
 0x387   : > { %v5997_v36 = vsel %vm5933_vm8, %v5799_v33, %v5965_v55  ;;  %vm5934_vm7 = vcmp.gt.f32.partialorder %v5800_v2, 0.0  ;;  %v5966_v12 = vmul.f32 %v10571_v40, %v5800_v2  ;;  %6037 = vst [vmem:[%s10578_s25 + $0x90] sm:$0xff] %v5900_v57  ;;  %v5905_v31 = vsel %vm5835_vm6, %v5771_v29, %v5873_v54 }
 0x388   : > { %6040 = vst [vmem:[%s10578_s25 + $0xa8] sm:$0xff] %v5997_v36  ;;  %v5995_v25 = vsel %vm5931_vm4, %v5797_v34, %v5963_v16  ;;  %vm5932_vm9 = vcmp.gt.f32.partialorder %v5798_v26, 0.0  ;;  %v5964_v4 = vmul.f32 %v10571_v40, %v5798_v26  ;;  %6047 = vst [vmem:[%s10578_s25 + $0xe0] sm:$0xff] %v5905_v31  ;;  %v5769_v43 = vadd.f32 %v10565_v28, %v5059_v9 }
 0x389   : > { %6036 = vst [vmem:[%s10578_s25 + $0x88] sm:$0xff] %v5995_v25  ;;  %v5998_v14 = vsel %vm5934_vm7, %v5800_v2, %v5966_v12  ;;  %v5772_v61 = vadd.f32 %v7672_v56, %v10565_v28  ;;  %v5770_v48 = vadd.f32 %v10565_v28, %v5062_v5  ;;  %v7675_v24 = vpop.f32.mrb[16].mxu0 }
 0x38a   : > { %6042 = vst [vmem:[%s10578_s25 + $0xb8] sm:$0xff] %v5998_v14  ;;  %v5996_v3 = vsel %vm5932_vm9, %v5798_v26, %v5964_v4  ;;  %v7815_v60 = vpop.f32.mrb[12].mxu1  ;;  %vm5833_vm10 = vcmp.gt.f32.partialorder %v5769_v43, 0.0  ;;  %v5871_v63 = vmul.f32 %v10571_v40, %v5769_v43  ;;  %v5775_v21 = vadd.f32 %v7675_v24, %v10565_v28  ;;  %v5075_v6 = vpop.f32.mrb[17].mxu0 }
 0x38b   : > { %6038 = vst [vmem:[%s10578_s25 + $0x98] sm:$0xff] %v5996_v3  ;;  %v5803_v13 = vadd.f32 %v7815_v60, %v10565_v28  ;;  %v5638_v37 = vpop.f32.mrb[13].mxu1  ;;  %vm5836_vm11 = vcmp.gt.f32.partialorder %v5772_v61, 0.0  ;;  %v5874_v39 = vmul.f32 %v10571_v40, %v5772_v61  ;;  %vm5834_vm12 = vcmp.gt.f32.partialorder %v5770_v48, 0.0  ;;  %v7676_v51 = vpop.f32.mrb[18].mxu0 }
 0x38c   : > { %v5903_v41 = vsel %vm5833_vm10, %v5769_v43, %v5871_v63  ;;  %v5801_v62 = vadd.f32 %v10565_v28, %v5638_v37  ;;  %v7816_v0 = vpop.f32.mrb[14].mxu1  ;;  %v5872_v53 = vmul.f32 %v10571_v40, %v5770_v48  ;;  %vm5839_vm13 = vcmp.gt.f32.partialorder %v5775_v21, 0.0  ;;  %v5078_v27 = vpop.f32.mrb[19].mxu0 }
 0x38d   : > { %vm5937_vm14 = vcmp.gt.f32.partialorder %v5803_v13, 0.0  ;;  %v5969_v8 = vmul.f32 %v10571_v40, %v5803_v13  ;;  %6043 = vst [vmem:[%s10578_s25 + $0xc0] sm:$0xff] %v5903_v41  ;;  %v5906_v38 = vsel %vm5836_vm11, %v5772_v61, %v5874_v39  ;;  %v5804_v45 = vadd.f32 %v7816_v0, %v10565_v28  ;;  %v5641_v32 = vpop.f32.mrb[15].mxu1 }
 0x38e   : > { %vm5935_vm15 = vcmp.gt.f32.partialorder %v5801_v62, 0.0  ;;  %v5967_v47 = vmul.f32 %v10571_v40, %v5801_v62  ;;  %6049 = vst [vmem:[%s10578_s25 + $0xf0] sm:$0xff] %v5906_v38  ;;  %v5904_v7 = vsel %vm5834_vm12, %v5770_v48, %v5872_v53  ;;  %v5802_v50 = vadd.f32 %v10565_v28, %v5641_v32 }
 0x38f   : > { %v6001_v22 = vsel %vm5937_vm14, %v5803_v13, %v5969_v8  ;;  %vm5938_vm5 = vcmp.gt.f32.partialorder %v5804_v45, 0.0  ;;  %v5970_v46 = vmul.f32 %v10571_v40, %v5804_v45  ;;  %6045 = vst [vmem:[%s10578_s25 + $0xd0] sm:$0xff] %v5904_v7  ;;  %v5877_v35 = vmul.f32 %v10571_v40, %v5775_v21 }
 0x390   : > { %6048 = vst [vmem:[%s10578_s25 + $0xe8] sm:$0xff] %v6001_v22  ;;  %v5999_v10 = vsel %vm5935_vm15, %v5801_v62, %v5967_v47  ;;  %vm5936_vm2 = vcmp.gt.f32.partialorder %v5802_v50, 0.0  ;;  %v5968_v58 = vmul.f32 %v10571_v40, %v5802_v50  ;;  %v5773_v18 = vadd.f32 %v10565_v28, %v5075_v6 }
 0x391   : > { %6044 = vst [vmem:[%s10578_s25 + $0xc8] sm:$0xff] %v5999_v10  ;;  %v6002_v59 = vsel %vm5938_vm5, %v5804_v45, %v5970_v46  ;;  %v5909_v11 = vsel %vm5839_vm13, %v5775_v21, %v5877_v35  ;;  %v5776_v42 = vadd.f32 %v7676_v51, %v10565_v28  ;;  %v5774_v1 = vadd.f32 %v10565_v28, %v5078_v27  ;;  %v7679_v15 = vpop.f32.mrb[20].mxu0 }
 0x392   : > { %6050 = vst [vmem:[%s10578_s25 + $0xf8] sm:$0xff] %v6002_v59  ;;  %v6000_v23 = vsel %vm5936_vm2, %v5802_v50, %v5968_v58  ;;  %6055 = vst [vmem:[%s10578_s25 + $0x120] sm:$0xff] %v5909_v11  ;;  %v7819_v44 = vpop.f32.mrb[16].mxu1  ;;  %vm5837_vm3 = vcmp.gt.f32.partialorder %v5773_v18, 0.0  ;;  %v5875_v29 = vmul.f32 %v10571_v40, %v5773_v18  ;;  %v5779_v9 = vadd.f32 %v7679_v15, %v10565_v28  ;;  %v5091_v33 = vpop.f32.mrb[21].mxu0 }
 0x393   : > { %6046 = vst [vmem:[%s10578_s25 + $0xd8] sm:$0xff] %v6000_v23  ;;  %v5807_v30 = vadd.f32 %v7819_v44, %v10565_v28  ;;  %v5654_v49 = vpop.f32.mrb[17].mxu1  ;;  %vm5840_vm0 = vcmp.gt.f32.partialorder %v5776_v42, 0.0  ;;  %v5878_v56 = vmul.f32 %v10571_v40, %v5776_v42  ;;  %vm5838_vm1 = vcmp.gt.f32.partialorder %v5774_v1, 0.0  ;;  %v7680_v34 = vpop.f32.mrb[22].mxu0 }
 0x394   : > { %v5907_v19 = vsel %vm5837_vm3, %v5773_v18, %v5875_v29  ;;  %v5805_v52 = vadd.f32 %v10565_v28, %v5654_v49  ;;  %v7820_v54 = vpop.f32.mrb[18].mxu1  ;;  %v5876_v5 = vmul.f32 %v10571_v40, %v5774_v1  ;;  %vm5843_vm6 = vcmp.gt.f32.partialorder %v5779_v9, 0.0  ;;  %v5094_v55 = vpop.f32.mrb[23].mxu0 }
 0x395   : > { %vm5941_vm8 = vcmp.gt.f32.partialorder %v5807_v30, 0.0  ;;  %v5973_v20 = vmul.f32 %v10571_v40, %v5807_v30  ;;  %6051 = vst [vmem:[%s10578_s25 + $0x100] sm:$0xff] %v5907_v19  ;;  %v5910_v2 = vsel %vm5840_vm0, %v5776_v42, %v5878_v56  ;;  %v5808_v17 = vadd.f32 %v7820_v54, %v10565_v28  ;;  %v5657_v16 = vpop.f32.mrb[19].mxu1 }
 0x396   : > { %vm5939_vm4 = vcmp.gt.f32.partialorder %v5805_v52, 0.0  ;;  %v5971_v57 = vmul.f32 %v10571_v40, %v5805_v52  ;;  %6057 = vst [vmem:[%s10578_s25 + $0x130] sm:$0xff] %v5910_v2  ;;  %v5908_v26 = vsel %vm5838_vm1, %v5774_v1, %v5876_v5  ;;  %v5806_v36 = vadd.f32 %v10565_v28, %v5657_v16 }
 0x397   : > { %v6005_v12 = vsel %vm5941_vm8, %v5807_v30, %v5973_v20  ;;  %vm5942_vm7 = vcmp.gt.f32.partialorder %v5808_v17, 0.0  ;;  %v5974_v31 = vmul.f32 %v10571_v40, %v5808_v17  ;;  %6053 = vst [vmem:[%s10578_s25 + $0x110] sm:$0xff] %v5908_v26  ;;  %v5881_v25 = vmul.f32 %v10571_v40, %v5779_v9 }
 0x398   : > { %6056 = vst [vmem:[%s10578_s25 + $0x128] sm:$0xff] %v6005_v12  ;;  %v6003_v4 = vsel %vm5939_vm4, %v5805_v52, %v5971_v57  ;;  %vm5940_vm9 = vcmp.gt.f32.partialorder %v5806_v36, 0.0  ;;  %v5972_v43 = vmul.f32 %v10571_v40, %v5806_v36  ;;  %v5777_v14 = vadd.f32 %v10565_v28, %v5091_v33 }
 0x399   : > { %6052 = vst [vmem:[%s10578_s25 + $0x108] sm:$0xff] %v6003_v4  ;;  %v6006_v61 = vsel %vm5942_vm7, %v5808_v17, %v5974_v31  ;;  %v5913_v48 = vsel %vm5843_vm6, %v5779_v9, %v5881_v25  ;;  %v5780_v24 = vadd.f32 %v7680_v34, %v10565_v28  ;;  %v5778_v3 = vadd.f32 %v10565_v28, %v5094_v55  ;;  %v7683_v60 = vpop.f32.mrb[24].mxu0 }
 0x39a   : > { %6058 = vst [vmem:[%s10578_s25 + $0x138] sm:$0xff] %v6006_v61  ;;  %v6004_v63 = vsel %vm5940_vm9, %v5806_v36, %v5972_v43  ;;  %6063 = vst [vmem:[%s10578_s25 + $0x160] sm:$0xff] %v5913_v48  ;;  %v7823_v21 = vpop.f32.mrb[20].mxu1  ;;  %vm5841_vm10 = vcmp.gt.f32.partialorder %v5777_v14, 0.0  ;;  %v5879_v6 = vmul.f32 %v10571_v40, %v5777_v14  ;;  %v5783_v13 = vadd.f32 %v7683_v60, %v10565_v28  ;;  %v5107_v37 = vpop.f32.mrb[25].mxu0 }
 0x39b   : > { %6054 = vst [vmem:[%s10578_s25 + $0x118] sm:$0xff] %v6004_v63  ;;  %v5811_v39 = vadd.f32 %v7823_v21, %v10565_v28  ;;  %v5670_v51 = vpop.f32.mrb[21].mxu1  ;;  %vm5844_vm11 = vcmp.gt.f32.partialorder %v5780_v24, 0.0  ;;  %v5882_v41 = vmul.f32 %v10571_v40, %v5780_v24  ;;  %vm5842_vm12 = vcmp.gt.f32.partialorder %v5778_v3, 0.0  ;;  %v7684_v62 = vpop.f32.mrb[26].mxu0 }
 0x39c   : > { %v5911_v0 = vsel %vm5841_vm10, %v5777_v14, %v5879_v6  ;;  %v5809_v53 = vadd.f32 %v10565_v28, %v5670_v51  ;;  %v7824_v27 = vpop.f32.mrb[22].mxu1  ;;  %v5880_v8 = vmul.f32 %v10571_v40, %v5778_v3  ;;  %vm5847_vm13 = vcmp.gt.f32.partialorder %v5783_v13, 0.0  ;;  %v5110_v38 = vpop.f32.mrb[27].mxu0 }
 0x39d   : > { %vm5945_vm14 = vcmp.gt.f32.partialorder %v5811_v39, 0.0  ;;  %v5977_v45 = vmul.f32 %v10571_v40, %v5811_v39  ;;  %6059 = vst [vmem:[%s10578_s25 + $0x140] sm:$0xff] %v5911_v0  ;;  %v5914_v32 = vsel %vm5844_vm11, %v5780_v24, %v5882_v41  ;;  %v5812_v47 = vadd.f32 %v7824_v27, %v10565_v28  ;;  %v5673_v7 = vpop.f32.mrb[23].mxu1 }
 0x39e   : > { %vm5943_vm15 = vcmp.gt.f32.partialorder %v5809_v53, 0.0  ;;  %v5975_v50 = vmul.f32 %v10571_v40, %v5809_v53  ;;  %6065 = vst [vmem:[%s10578_s25 + $0x170] sm:$0xff] %v5914_v32  ;;  %v5912_v22 = vsel %vm5842_vm12, %v5778_v3, %v5880_v8  ;;  %v5810_v46 = vadd.f32 %v10565_v28, %v5673_v7 }
 0x39f   : > { %v6009_v35 = vsel %vm5945_vm14, %v5811_v39, %v5977_v45  ;;  %vm5946_vm5 = vcmp.gt.f32.partialorder %v5812_v47, 0.0  ;;  %v5978_v10 = vmul.f32 %v10571_v40, %v5812_v47  ;;  %6061 = vst [vmem:[%s10578_s25 + $0x150] sm:$0xff] %v5912_v22  ;;  %v5885_v58 = vmul.f32 %v10571_v40, %v5783_v13 }
 0x3a0   : > { %6064 = vst [vmem:[%s10578_s25 + $0x168] sm:$0xff] %v6009_v35  ;;  %v6007_v18 = vsel %vm5943_vm15, %v5809_v53, %v5975_v50  ;;  %vm5944_vm2 = vcmp.gt.f32.partialorder %v5810_v46, 0.0  ;;  %v5976_v59 = vmul.f32 %v10571_v40, %v5810_v46  ;;  %v5781_v11 = vadd.f32 %v10565_v28, %v5107_v37 }
 0x3a1   : > { %6060 = vst [vmem:[%s10578_s25 + $0x148] sm:$0xff] %v6007_v18  ;;  %v6010_v42 = vsel %vm5946_vm5, %v5812_v47, %v5978_v10  ;;  %v5917_v1 = vsel %vm5847_vm13, %v5783_v13, %v5885_v58  ;;  %v5784_v15 = vadd.f32 %v7684_v62, %v10565_v28  ;;  %v5782_v23 = vadd.f32 %v10565_v28, %v5110_v38  ;;  %v7687_v44 = vpop.f32.mrb[28].mxu0 }
 0x3a2   : > { %6066 = vst [vmem:[%s10578_s25 + $0x178] sm:$0xff] %v6010_v42  ;;  %v6008_v29 = vsel %vm5944_vm2, %v5810_v46, %v5976_v59  ;;  %6071 = vst [vmem:[%s10578_s25 + $0x1a0] sm:$0xff] %v5917_v1  ;;  %v7827_v9 = vpop.f32.mrb[24].mxu1  ;;  %vm5845_vm3 = vcmp.gt.f32.partialorder %v5781_v11, 0.0  ;;  %v5883_v33 = vmul.f32 %v10571_v40, %v5781_v11  ;;  %v5787_v30 = vadd.f32 %v7687_v44, %v10565_v28  ;;  %v5123_v49 = vpop.f32.mrb[29].mxu0 }
 0x3a3   : > { %6062 = vst [vmem:[%s10578_s25 + $0x158] sm:$0xff] %v6008_v29  ;;  %v5815_v56 = vadd.f32 %v7827_v9, %v10565_v28  ;;  %v5686_v34 = vpop.f32.mrb[25].mxu1  ;;  %vm5848_vm0 = vcmp.gt.f32.partialorder %v5784_v15, 0.0  ;;  %v5886_v19 = vmul.f32 %v10571_v40, %v5784_v15  ;;  %vm5846_vm1 = vcmp.gt.f32.partialorder %v5782_v23, 0.0  ;;  %v7688_v52 = vpop.f32.mrb[30].mxu0 }
 0x3a4   : > { %v5915_v54 = vsel %vm5845_vm3, %v5781_v11, %v5883_v33  ;;  %v5813_v5 = vadd.f32 %v10565_v28, %v5686_v34  ;;  %v7828_v55 = vpop.f32.mrb[26].mxu1  ;;  %v5884_v20 = vmul.f32 %v10571_v40, %v5782_v23  ;;  %vm5851_vm6 = vcmp.gt.f32.partialorder %v5787_v30, 0.0  ;;  %v5126_v2 = vpop.f32.mrb[31].mxu0 }
 0x3a5   : > { %vm5949_vm8 = vcmp.gt.f32.partialorder %v5815_v56, 0.0  ;;  %v5981_v17 = vmul.f32 %v10571_v40, %v5815_v56  ;;  %6067 = vst [vmem:[%s10578_s25 + $0x180] sm:$0xff] %v5915_v54  ;;  %v5918_v16 = vsel %vm5848_vm0, %v5784_v15, %v5886_v19  ;;  %v5816_v57 = vadd.f32 %v7828_v55, %v10565_v28  ;;  %v5689_v26 = vpop.f32.mrb[27].mxu1 }
 0x3a6   : > { %vm5947_vm4 = vcmp.gt.f32.partialorder %v5813_v5, 0.0  ;;  %v5979_v36 = vmul.f32 %v10571_v40, %v5813_v5  ;;  %6073 = vst [vmem:[%s10578_s25 + $0x1b0] sm:$0xff] %v5918_v16  ;;  %v5916_v12 = vsel %vm5846_vm1, %v5782_v23, %v5884_v20  ;;  %v5814_v31 = vadd.f32 %v10565_v28, %v5689_v26 }
 0x3a7   : > { %v6013_v25 = vsel %vm5949_vm8, %v5815_v56, %v5981_v17  ;;  %vm5950_vm7 = vcmp.gt.f32.partialorder %v5816_v57, 0.0  ;;  %v5982_v4 = vmul.f32 %v10571_v40, %v5816_v57  ;;  %6069 = vst [vmem:[%s10578_s25 + $0x190] sm:$0xff] %v5916_v12  ;;  %v5889_v43 = vmul.f32 %v10571_v40, %v5787_v30 }
 0x3a8   : > { %6072 = vst [vmem:[%s10578_s25 + $0x1a8] sm:$0xff] %v6013_v25  ;;  %v6011_v14 = vsel %vm5947_vm4, %v5813_v5, %v5979_v36  ;;  %vm5948_vm9 = vcmp.gt.f32.partialorder %v5814_v31, 0.0  ;;  %v5980_v61 = vmul.f32 %v10571_v40, %v5814_v31  ;;  %v5785_v48 = vadd.f32 %v10565_v28, %v5123_v49 }
 0x3a9   : > { %6068 = vst [vmem:[%s10578_s25 + $0x188] sm:$0xff] %v6011_v14  ;;  %v6014_v24 = vsel %vm5950_vm7, %v5816_v57, %v5982_v4  ;;  %v5921_v3 = vsel %vm5851_vm6, %v5787_v30, %v5889_v43  ;;  %v5788_v60 = vadd.f32 %v7688_v52, %v10565_v28  ;;  %v5786_v63 = vadd.f32 %v10565_v28, %v5126_v2 }
 0x3aa   : > { %6074 = vst [vmem:[%s10578_s25 + $0x1b8] sm:$0xff] %v6014_v24  ;;  %v6012_v21 = vsel %vm5948_vm9, %v5814_v31, %v5980_v61  ;;  %6079 = vst [vmem:[%s10578_s25 + $0x1e0] sm:$0xff] %v5921_v3  ;;  %v7831_v6 = vpop.f32.mrb[28].mxu1  ;;  %vm5849_vm10 = vcmp.gt.f32.partialorder %v5785_v48, 0.0  ;;  %v5887_v13 = vmul.f32 %v10571_v40, %v5785_v48 }
 0x3ab   : > { %6070 = vst [vmem:[%s10578_s25 + $0x198] sm:$0xff] %v6012_v21  ;;  %v5819_v37 = vadd.f32 %v7831_v6, %v10565_v28  ;;  %v5702_v39 = vpop.f32.mrb[29].mxu1  ;;  %vm5852_vm11 = vcmp.gt.f32.partialorder %v5788_v60, 0.0  ;;  %v5890_v51 = vmul.f32 %v10571_v40, %v5788_v60  ;;  %vm5850_vm12 = vcmp.gt.f32.partialorder %v5786_v63, 0.0 }
 0x3ac   : > { %v5919_v41 = vsel %vm5849_vm10, %v5785_v48, %v5887_v13  ;;  %v5817_v62 = vadd.f32 %v10565_v28, %v5702_v39  ;;  %v7832_v0 = vpop.f32.mrb[30].mxu1  ;;  %v5888_v53 = vmul.f32 %v10571_v40, %v5786_v63 }
 0x3ad   : > { %vm5953_vm13 = vcmp.gt.f32.partialorder %v5819_v37, 0.0  ;;  %v5985_v27 = vmul.f32 %v10571_v40, %v5819_v37  ;;  %6075 = vst [vmem:[%s10578_s25 + $0x1c0] sm:$0xff] %v5919_v41  ;;  %v5922_v8 = vsel %vm5852_vm11, %v5788_v60, %v5890_v51  ;;  %v5820_v38 = vadd.f32 %v7832_v0, %v10565_v28  ;;  %v5705_v45 = vpop.f32.mrb[31].mxu1 }
 0x3ae   : > { %vm5951_vm14 = vcmp.gt.f32.partialorder %v5817_v62, 0.0  ;;  %v5983_v32 = vmul.f32 %v10571_v40, %v5817_v62  ;;  %6081 = vst [vmem:[%s10578_s25 + $0x1f0] sm:$0xff] %v5922_v8  ;;  %v5920_v47 = vsel %vm5850_vm12, %v5786_v63, %v5888_v53  ;;  %v5818_v7 = vadd.f32 %v10565_v28, %v5705_v45 }
 0x3af   : > { %v6017_v50 = vsel %vm5953_vm13, %v5819_v37, %v5985_v27  ;;  %vm5954_vm15 = vcmp.gt.f32.partialorder %v5820_v38, 0.0  ;;  %v5986_v22 = vmul.f32 %v10571_v40, %v5820_v38  ;;  %6077 = vst [vmem:[%s10578_s25 + $0x1d0] sm:$0xff] %v5920_v47 }
 0x3b0   : > { %6080 = vst [vmem:[%s10578_s25 + $0x1e8] sm:$0xff] %v6017_v50  ;;  %v6015_v46 = vsel %vm5951_vm14, %v5817_v62, %v5983_v32  ;;  %vm5952_vm5 = vcmp.gt.f32.partialorder %v5818_v7, 0.0  ;;  %v5984_v35 = vmul.f32 %v10571_v40, %v5818_v7 }
 0x3b1   : > { %6076 = vst [vmem:[%s10578_s25 + $0x1c8] sm:$0xff] %v6015_v46  ;;  %v6018_v10 = vsel %vm5954_vm15, %v5820_v38, %v5986_v22 }
 0x3b2   : > { %6082 = vst [vmem:[%s10578_s25 + $0x1f8] sm:$0xff] %v6018_v10  ;;  %v6016_v58 = vsel %vm5952_vm5, %v5818_v7, %v5984_v35 }
 0x3b3   : > { %6078 = vst [vmem:[%s10578_s25 + $0x1d8] sm:$0xff] %v6016_v58 }
 0x3b4 PF: > { %s14_s19 = sadd.s32 1, %s8497_s19   ;;  %s11293_s15 = smov %s8489_s17 }
 0x3b5   : > { %p11_p7 = scmp.ge.s32.totalorder %s14_s19, 6   ;;  %s11294_s16 = smov %s8493_s18 }
 0x3b6   : > { %s11295_s17 = smov %s11298_s20  ;;  %s11296_s18 = smov %s11302_s21 }
 0x3b7   :  { %13 = sbr.rel (!%p11_p7) target bundleno = 3 (0x3), region = 75 }

</bundles_post_ra>
